<compile_context>
chip_gen: v7x
topology: tpu7x:2x2x1
jax: 0.10.0
libtpu: 0.0.40
codegen_flags: <defaults>
</compile_context>

<pallas_src>
import math
import functools

import jax
import jax.numpy as jnp
from jax import lax
from jax.experimental import pallas as pl
from jax.experimental.pallas import tpu as pltpu


# ----------------------------- kernel helpers ------------------------------

def _layer_norm(x, w, b, eps=1e-5):
    # x: [M, E] f32, w/b: [1, E] f32
    mu = jnp.mean(x, axis=-1, keepdims=True)
    xc = x - mu
    var = jnp.mean(xc * xc, axis=-1, keepdims=True)
    return xc * lax.rsqrt(var + eps) * w + b


def _mha(q_all, k_all, v_all, *, batch, q_len, kv_len, num_heads):
    """Head-batched attention.

    q_all: [B*q_len, E] f32; k_all/v_all: [B*kv_len, E] f32.
    Returns the per-head contexts concatenated along E (attention-head order)
    as [B*q_len, E] f32 — ready for a single Wo matmul."""
    E = q_all.shape[-1]
    hd = E // num_heads
    scale = 1.0 / math.sqrt(hd)
    ctx_rows = []
    for b in range(batch):  # small static batch loop; heads are batched below
        qb = q_all[b * q_len:(b + 1) * q_len].reshape(q_len, num_heads, hd)
        kb = k_all[b * kv_len:(b + 1) * kv_len].reshape(kv_len, num_heads, hd)
        vb = v_all[b * kv_len:(b + 1) * kv_len].reshape(kv_len, num_heads, hd)
        qh = pltpu.einshape("qhd->hqd", qb) * scale          # [H, q, hd]
        kh = pltpu.einshape("khd->hkd", kb)                  # [H, kv, hd]
        vh = pltpu.einshape("khd->hkd", vb)                  # [H, kv, hd]
        s = jnp.einsum('hqd,hkd->hqk', qh, kh,
                       preferred_element_type=jnp.float32)   # [H, q, kv]
        s = s - jnp.max(s, axis=-1, keepdims=True)
        p = jnp.exp(s)
        p = p / jnp.sum(p, axis=-1, keepdims=True)           # exact softmax
        ch = jnp.einsum('hqk,hkd->hqd', p, vh,
                        preferred_element_type=jnp.float32)  # [H, q, hd]
        ctx_rows.append(pltpu.einshape("hqd->qhd", ch).reshape(q_len, E))
    return jnp.concatenate(ctx_rows, axis=0)                 # [B*q_len, E]


# --------------------------- decoder-stack kernel ---------------------------

def decoder_stack_kernel(x_ref, mem_ref, wmp_ref, bmp_ref,
                         sa_wqkv_ref, sa_bqkv_ref, sa_wo_ref, sa_bo_ref,
                         ca_wq_ref, ca_bq_ref, ca_wkv_ref, ca_bkv_ref,
                         ca_wo_ref, ca_bo_ref,
                         w1_ref, b1_ref, w2_ref, b2_ref,
                         ln1w_ref, ln1b_ref, ln2w_ref, ln2b_ref,
                         ln3w_ref, ln3b_ref,
                         out_ref, *, num_layers, num_heads, batch, seq_len):
    # TODO(synk): optional tgt_mask / memory_mask are not implemented
    #             (this kernel covers the default mask=None path).
    E = x_ref.shape[-1]
    S = seq_len
    B = batch
    Sm = mem_ref.shape[0] // B

    x = x_ref[...]                                            # [B*S, E] f32

    # memory projection (bf16 MXU inputs, f32 accumulation), hoisted
    mem = (jnp.dot(mem_ref[...].astype(jnp.bfloat16), wmp_ref[...],
                   preferred_element_type=jnp.float32) + bmp_ref[...])
    mem_bf = mem.astype(jnp.bfloat16)                         # [B*Sm, E]

    def layer_body(l, x):
        # ---------------- self-attention block (post-norm) ----------------
        x_bf = x.astype(jnp.bfloat16)
        qkv = (jnp.dot(x_bf, sa_wqkv_ref[l],
                       preferred_element_type=jnp.float32)
               + sa_bqkv_ref[l])                              # [B*S, 3E]
        sa_ctx = _mha(qkv[:, :E], qkv[:, E:2 * E], qkv[:, 2 * E:],
                      batch=B, q_len=S, kv_len=S, num_heads=num_heads)
        sa_out = (jnp.dot(sa_ctx.astype(jnp.bfloat16), sa_wo_ref[l],
                          preferred_element_type=jnp.float32) + sa_bo_ref[l])
        x = _layer_norm(x + sa_out, ln1w_ref[l], ln1b_ref[l])

        # ---------------- cross-attention block ----------------
        x_bf = x.astype(jnp.bfloat16)
        q = (jnp.dot(x_bf, ca_wq_ref[l],
                     preferred_element_type=jnp.float32) + ca_bq_ref[l])
        kv = (jnp.dot(mem_bf, ca_wkv_ref[l],
                      preferred_element_type=jnp.float32) + ca_bkv_ref[l])
        ca_ctx = _mha(q, kv[:, :E], kv[:, E:],
                      batch=B, q_len=S, kv_len=Sm, num_heads=num_heads)
        ca_out = (jnp.dot(ca_ctx.astype(jnp.bfloat16), ca_wo_ref[l],
                          preferred_element_type=jnp.float32) + ca_bo_ref[l])
        x = _layer_norm(x + ca_out, ln2w_ref[l], ln2b_ref[l])

        # ---------------- feed-forward block (ReLU) ----------------
        x_bf = x.astype(jnp.bfloat16)
        h = jnp.maximum(
            jnp.dot(x_bf, w1_ref[l],
                    preferred_element_type=jnp.float32) + b1_ref[l], 0.0)
        ff = (jnp.dot(h.astype(jnp.bfloat16), w2_ref[l],
                      preferred_element_type=jnp.float32) + b2_ref[l])
        x = _layer_norm(x + ff, ln3w_ref[l], ln3b_ref[l])
        return x

    x = lax.fori_loop(0, num_layers, layer_body, x)
    out_ref[...] = x


# ------------------------------ fc_out kernel -------------------------------

def fc_out_kernel(x_ref, w_ref, b_ref, o_ref):
    # one MXU-aligned vocab tile per grid step; lane-dense f32 store.
    # TODO(synk): optionally emit bf16 logits to halve writeback bytes.
    o_ref[...] = (jnp.dot(x_ref[...].astype(jnp.bfloat16), w_ref[...],
                          preferred_element_type=jnp.float32) + b_ref[...])


# ------------------------------ JAX wrapper ---------------------------------

def _vmem_limit_bytes(arrays, extra_bytes):
    total = extra_bytes + sum(int(a.size) * jnp.dtype(a.dtype).itemsize
                              for a in arrays)
    return int(min(64 * 1024 * 1024, max(8 * 1024 * 1024, 6 * total)))


def make_params(key, *, vocab_size, embed_size, num_heads, hidden_dim,
                num_layers, max_seq_length, memory_dim):
    E, Hd, V, L, Md = embed_size, hidden_dim, vocab_size, num_layers, memory_dim
    Vpad = ((V + 127) // 128) * 128

    keys = iter(jax.random.split(key, 64))

    def u(shape, fan_in, fan_out, dtype=jnp.bfloat16):
        a = math.sqrt(6.0 / (fan_in + fan_out))
        # NOTE: if loading real PyTorch weights: in_proj_weight is [3E, E]
        # ([q;k;v] stacked on dim 0) and Linear/out_proj weights are [out, in]
        # acting as x @ W^T -> transpose (and re-order) before casting to bf16.
        return jax.random.uniform(next(keys), shape, jnp.float32, -a, a).astype(dtype)

    fcw = u((E, V), E, V, jnp.float32)
    fcw_pad = jnp.pad(fcw, ((0, 0), (0, Vpad - V))).astype(jnp.bfloat16)
    fcb_pad = jnp.zeros((1, Vpad), jnp.float32)

    params = dict(
        emb=jax.random.normal(next(keys), (V, E), jnp.float32),
        wmp=u((Md, E), Md, E), bmp=jnp.zeros((1, E), jnp.float32),
        # self-attention: fused in-proj [E, 3E] (already transposed: x @ w)
        sa_wqkv=u((L, E, 3 * E), E, 3 * E),
        sa_bqkv=jnp.zeros((L, 1, 3 * E), jnp.float32),
        # out-proj as a single [E, E] matmul per layer
        sa_wo=u((L, E, E), E, E),
        sa_bo=jnp.zeros((L, 1, E), jnp.float32),
        # cross-attention: pre-split Wq [E,E] and fused Wkv [E,2E]
        ca_wq=u((L, E, E), E, E), ca_bq=jnp.zeros((L, 1, E), jnp.float32),
        ca_wkv=u((L, E, 2 * E), E, 2 * E),
        ca_bkv=jnp.zeros((L, 1, 2 * E), jnp.float32),
        ca_wo=u((L, E, E), E, E),
        ca_bo=jnp.zeros((L, 1, E), jnp.float32),
        w1=u((L, E, Hd), E, Hd), b1=jnp.zeros((L, 1, Hd), jnp.float32),
        w2=u((L, Hd, E), Hd, E), b2=jnp.zeros((L, 1, E), jnp.float32),
        ln1w=jnp.ones((L, 1, E), jnp.float32), ln1b=jnp.zeros((L, 1, E), jnp.float32),
        ln2w=jnp.ones((L, 1, E), jnp.float32), ln2b=jnp.zeros((L, 1, E), jnp.float32),
        ln3w=jnp.ones((L, 1, E), jnp.float32), ln3b=jnp.zeros((L, 1, E), jnp.float32),
        fcw=fcw_pad, fcb=fcb_pad,
    )

    # positional encoding buffer (pe[:, 0::2]=sin, pe[:, 1::2]=cos)
    position = jnp.arange(max_seq_length, dtype=jnp.float32)[:, None]
    div_term = jnp.exp(jnp.arange(0, E, 2, dtype=jnp.float32)
                       * (-math.log(10000.0) / E))
    pe = jnp.stack([jnp.sin(position * div_term),
                    jnp.cos(position * div_term)], axis=-1).reshape(max_seq_length, E)
    params["pe"] = pe
    return params


def decoder_forward(tgt_tokens, memory, params, *, num_heads, num_layers,
                    vocab_size):
    """tgt_tokens: [B, S] int32; memory: [B, memory_dim, H, W] (NCHW) or
    [B, Sm, memory_dim].  Returns logits [B, S, vocab_size]."""
    B, S = tgt_tokens.shape
    E = params["emb"].shape[1]
    Vpad = params["fcw"].shape[1]
    M = B * S

    # ---- glue (plain JAX): embedding gather, scale, positional encoding ----
    tgt_emb = jnp.take(params["emb"], tgt_tokens, axis=0) * math.sqrt(float(E))
    tgt_emb = (tgt_emb + params["pe"][None, :S, :]).astype(jnp.float32)
    x_flat = tgt_emb.reshape(M, E)                      # batch folded into rows

    # ---- glue: NCHW memory -> [B, Sm, memory_dim] -> [B*Sm, memory_dim] ----
    if memory.ndim == 4:
        b_, c_, h_, w_ = memory.shape
        memory = memory.reshape(b_, c_, h_ * w_).transpose(0, 2, 1)
    memory = memory.astype(jnp.float32)
    Sm, Md = memory.shape[1], memory.shape[2]
    mem_flat = memory.reshape(B * Sm, Md)

    weight_names = ["wmp", "bmp",
                    "sa_wqkv", "sa_bqkv", "sa_wo", "sa_bo",
                    "ca_wq", "ca_bq", "ca_wkv", "ca_bkv", "ca_wo", "ca_bo",
                    "w1", "b1", "w2", "b2",
                    "ln1w", "ln1b", "ln2w", "ln2b", "ln3w", "ln3b"]
    weights = [params[n] for n in weight_names]

    def full_spec(a):
        nd = a.ndim
        return pl.BlockSpec(a.shape, lambda i, _nd=nd: (0,) * _nd)

    stack_kernel = functools.partial(decoder_stack_kernel,
                                     num_layers=num_layers,
                                     num_heads=num_heads,
                                     batch=B, seq_len=S)

    stack_inputs = [x_flat, mem_flat] + weights
    x_final = pl.pallas_call(
        stack_kernel,
        out_shape=jax.ShapeDtypeStruct((M, E), jnp.float32),
        grid_spec=pltpu.PrefetchScalarGridSpec(
            num_scalar_prefetch=0,
            grid=(1,),
            in_specs=[full_spec(a) for a in stack_inputs],
            out_specs=pl.BlockSpec((M, E), lambda i: (0, 0)),
        ),
        compiler_params=pltpu.CompilerParams(
            dimension_semantics=("arbitrary",),
            vmem_limit_bytes=_vmem_limit_bytes(stack_inputs, M * E * 4),
        ),
    )(*stack_inputs)

    # ---- fc_out: tiled over the padded vocab dimension ----
    TN = 128
    for cand in (512, 256, 128):
        if Vpad % cand == 0:
            TN = cand
            break
    fc_inputs = [x_final, params["fcw"], params["fcb"]]
    out_pad = pl.pallas_call(
        fc_out_kernel,
        out_shape=jax.ShapeDtypeStruct((M, Vpad), jnp.float32),
        grid_spec=pltpu.PrefetchScalarGridSpec(
            num_scalar_prefetch=0,
            grid=(Vpad // TN,),
            in_specs=[pl.BlockSpec((M, E), lambda j: (0, 0)),
                      pl.BlockSpec((E, TN), lambda j: (0, j)),
                      pl.BlockSpec((1, TN), lambda j: (0, j))],
            out_specs=pl.BlockSpec((M, TN), lambda j: (0, j)),
        ),
        compiler_params=pltpu.CompilerParams(
            dimension_semantics=("parallel",),
            vmem_limit_bytes=_vmem_limit_bytes(
                [x_final, params["fcb"]], M * TN * 4 + E * TN * 2 * 2),
        ),
    )(*fc_inputs)

    return out_pad.reshape(B, S, Vpad)[:, :, :vocab_size]


# --------------------------------- main -------------------------------------

if __name__ == "__main__":
    # small, module-consistent config
    vocab_size = 64
    embed_size = 32
    num_heads = 4
    hidden_dim = 64
    num_layers = 2
    max_seq_length = 50
    memory_dim = 32

    B, S = 2, 8
    Hs = Ws = 4  # memory spatial dims -> Sm = 16

    key = jax.random.PRNGKey(0)
    k_par, k_tok, k_mem = jax.random.split(key, 3)

    params = make_params(k_par, vocab_size=vocab_size, embed_size=embed_size,
                         num_heads=num_heads, hidden_dim=hidden_dim,
                         num_layers=num_layers, max_seq_length=max_seq_length,
                         memory_dim=memory_dim)

    tgt = jax.random.randint(k_tok, (B, S), 0, vocab_size, dtype=jnp.int32)
    memory = jax.random.normal(k_mem, (B, memory_dim, Hs, Ws), jnp.float32)

    fwd = jax.jit(functools.partial(decoder_forward,
                                    num_heads=num_heads, num_layers=num_layers,
                                    vocab_size=vocab_size))
    logits = fwd(tgt, memory, params)
    jax.block_until_ready(logits)

    assert logits.shape == (B, S, vocab_size), logits.shape
    assert bool(jnp.all(jnp.isfinite(logits)))
    print("KERNEL_OK")
</pallas_src>

<mosaic_0001>
module attributes {stable_mosaic.version = 11 : i64} {
  func.func @fc_out_kernel(%arg0: i32, %arg1: memref<16x32xf32, #tpu.memory_space<vmem>>, %arg2: memref<32x128xbf16, #tpu.memory_space<vmem>>, %arg3: memref<1x128xf32, #tpu.memory_space<vmem>>, %arg4: memref<16x128xf32, #tpu.memory_space<vmem>>) attributes {dimension_semantics = [#tpu.dimension_semantics<parallel>], iteration_bounds = array<i64: 1>, scalar_prefetch = 0 : i64, scratch_operands = 0 : i64, tpu.core_type = #tpu.core_type<tc>, window_params = [{pipeline_mode = #tpu.pipeline_mode<synchronous>, transform_indices = @transform_0, window_bounds = array<i64: 16, 32>}, {transform_indices = @transform_1, window_bounds = array<i64: 32, 128>}, {transform_indices = @transform_2, window_bounds = array<i64: 1, 128>}, {transform_indices = @transform_3, window_bounds = array<i64: 16, 128>}]} {
    %c0 = arith.constant 0 : index
    %c0_0 = arith.constant 0 : index
    %0 = vector.load %arg1[%c0, %c0_0] : memref<16x32xf32, #tpu.memory_space<vmem>>, vector<16x32xf32>
    %1 = arith.truncf %0 : vector<16x32xf32> to vector<16x32xbf16>
    %c0_1 = arith.constant 0 : index
    %c0_2 = arith.constant 0 : index
    %2 = vector.load %arg2[%c0_1, %c0_2] : memref<32x128xbf16, #tpu.memory_space<vmem>>, vector<32x128xbf16>
    %cst = arith.constant dense<0.000000e+00> : vector<16x128xf32>
    %3 = tpu.matmul %1, %2, %cst {dimension_numbers = #tpu.dot_dimension_numbers<[1], [0], [0], [1], [0, 0, 1, 1], [], []>} : vector<16x32xbf16>, vector<32x128xbf16>, vector<16x128xf32> -> vector<16x128xf32>
    %c0_3 = arith.constant 0 : index
    %c0_4 = arith.constant 0 : index
    %4 = vector.load %arg3[%c0_3, %c0_4] : memref<1x128xf32, #tpu.memory_space<vmem>>, vector<1x128xf32>
    %5 = vector.broadcast %4 : vector<1x128xf32> to vector<16x128xf32>
    %6 = arith.addf %3, %5 : vector<16x128xf32>
    %c0_5 = arith.constant 0 : index
    %c0_6 = arith.constant 0 : index
    %7 = vector.load %arg4[%c0_5, %c0_6] : memref<16x128xf32, #tpu.memory_space<vmem>>, vector<16x128xf32>
    tpu.vector_store %arg4[%c0_5, %c0_6], %6 {strides = array<i32>} : memref<16x128xf32, #tpu.memory_space<vmem>>, vector<16x128xf32>,
    return
  }
  func.func @transform_0(%arg0: i32) -> (i32, i32) {
    %c0_i32 = arith.constant 0 : i32
    %c0_i32_0 = arith.constant 0 : i32
    %c0_i32_1 = arith.constant 0 : i32
    return %c0_i32, %c0_i32_0 : i32, i32
  }
  func.func @transform_1(%arg0: i32) -> (i32, i32) {
    %c0_i32 = arith.constant 0 : i32
    %c0_i32_0 = arith.constant 0 : i32
    return %c0_i32, %arg0 : i32, i32
  }
  func.func @transform_2(%arg0: i32) -> (i32, i32) {
    %c0_i32 = arith.constant 0 : i32
    %c0_i32_0 = arith.constant 0 : i32
    return %c0_i32, %arg0 : i32, i32
  }
  func.func @transform_3(%arg0: i32) -> (i32, i32) {
    %c0_i32 = arith.constant 0 : i32
    %c0_i32_0 = arith.constant 0 : i32
    return %c0_i32, %arg0 : i32, i32
  }
}

module attributes {stable_mosaic.version = 11 : i64} {
  func.func @decoder_stack_kernel(%arg0: i32, %arg1: memref<16x32xf32, #tpu.memory_space<vmem>>, %arg2: memref<32x32xf32, #tpu.memory_space<vmem>>, %arg3: memref<32x32xbf16, #tpu.memory_space<vmem>>, %arg4: memref<1x32xf32, #tpu.memory_space<vmem>>, %arg5: memref<2x32x96xbf16, #tpu.memory_space<vmem>>, %arg6: memref<2x1x96xf32, #tpu.memory_space<vmem>>, %arg7: memref<2x32x32xbf16, #tpu.memory_space<vmem>>, %arg8: memref<2x1x32xf32, #tpu.memory_space<vmem>>, %arg9: memref<2x32x32xbf16, #tpu.memory_space<vmem>>, %arg10: memref<2x1x32xf32, #tpu.memory_space<vmem>>, %arg11: memref<2x32x64xbf16, #tpu.memory_space<vmem>>, %arg12: memref<2x1x64xf32, #tpu.memory_space<vmem>>, %arg13: memref<2x32x32xbf16, #tpu.memory_space<vmem>>, %arg14: memref<2x1x32xf32, #tpu.memory_space<vmem>>, %arg15: memref<2x32x64xbf16, #tpu.memory_space<vmem>>, %arg16: memref<2x1x64xf32, #tpu.memory_space<vmem>>, %arg17: memref<2x64x32xbf16, #tpu.memory_space<vmem>>, %arg18: memref<2x1x32xf32, #tpu.memory_space<vmem>>, %arg19: memref<2x1x32xf32, #tpu.memory_space<vmem>>, %arg20: memref<2x1x32xf32, #tpu.memory_space<vmem>>, %arg21: memref<2x1x32xf32, #tpu.memory_space<vmem>>, %arg22: memref<2x1x32xf32, #tpu.memory_space<vmem>>, %arg23: memref<2x1x32xf32, #tpu.memory_space<vmem>>, %arg24: memref<2x1x32xf32, #tpu.memory_space<vmem>>, %arg25: memref<16x32xf32, #tpu.memory_space<vmem>>) attributes {dimension_semantics = [#tpu.dimension_semantics<arbitrary>], iteration_bounds = array<i64: 1>, scalar_prefetch = 0 : i64, scratch_operands = 0 : i64, tpu.core_type = #tpu.core_type<tc>, window_params = [{pipeline_mode = #tpu.pipeline_mode<synchronous>, transform_indices = @transform_0, window_bounds = array<i64: 16, 32>}, {pipeline_mode = #tpu.pipeline_mode<synchronous>, transform_indices = @transform_1, window_bounds = array<i64: 32, 32>}, {pipeline_mode = #tpu.pipeline_mode<synchronous>, transform_indices = @transform_2, window_bounds = array<i64: 32, 32>}, {pipeline_mode = #tpu.pipeline_mode<synchronous>, transform_indices = @transform_3, window_bounds = array<i64: 1, 32>}, {pipeline_mode = #tpu.pipeline_mode<synchronous>, transform_indices = @transform_4, window_bounds = array<i64: 2, 32, 96>}, {pipeline_mode = #tpu.pipeline_mode<synchronous>, transform_indices = @transform_5, window_bounds = array<i64: 2, 1, 96>}, {pipeline_mode = #tpu.pipeline_mode<synchronous>, transform_indices = @transform_6, window_bounds = array<i64: 2, 32, 32>}, {pipeline_mode = #tpu.pipeline_mode<synchronous>, transform_indices = @transform_7, window_bounds = array<i64: 2, 1, 32>}, {pipeline_mode = #tpu.pipeline_mode<synchronous>, transform_indices = @transform_8, window_bounds = array<i64: 2, 32, 32>}, {pipeline_mode = #tpu.pipeline_mode<synchronous>, transform_indices = @transform_9, window_bounds = array<i64: 2, 1, 32>}, {pipeline_mode = #tpu.pipeline_mode<synchronous>, transform_indices = @transform_10, window_bounds = array<i64: 2, 32, 64>}, {pipeline_mode = #tpu.pipeline_mode<synchronous>, transform_indices = @transform_11, window_bounds = array<i64: 2, 1, 64>}, {pipeline_mode = #tpu.pipeline_mode<synchronous>, transform_indices = @transform_12, window_bounds = array<i64: 2, 32, 32>}, {pipeline_mode = #tpu.pipeline_mode<synchronous>, transform_indices = @transform_13, window_bounds = array<i64: 2, 1, 32>}, {pipeline_mode = #tpu.pipeline_mode<synchronous>, transform_indices = @transform_14, window_bounds = array<i64: 2, 32, 64>}, {pipeline_mode = #tpu.pipeline_mode<synchronous>, transform_indices = @transform_15, window_bounds = array<i64: 2, 1, 64>}, {pipeline_mode = #tpu.pipeline_mode<synchronous>, transform_indices = @transform_16, window_bounds = array<i64: 2, 64, 32>}, {pipeline_mode = #tpu.pipeline_mode<synchronous>, transform_indices = @transform_17, window_bounds = array<i64: 2, 1, 32>}, {pipeline_mode = #tpu.pipeline_mode<synchronous>, transform_indices = @transform_18, window_bounds = array<i64: 2, 1, 32>}, {pipeline_mode = #tpu.pipeline_mode<synchronous>, transform_indices = @transform_19, window_bounds = array<i64: 2, 1, 32>}, {pipeline_mode = #tpu.pipeline_mode<synchronous>, transform_indices = @transform_20, window_bounds = array<i64: 2, 1, 32>}, {pipeline_mode = #tpu.pipeline_mode<synchronous>, transform_indices = @transform_21, window_bounds = array<i64: 2, 1, 32>}, {pipeline_mode = #tpu.pipeline_mode<synchronous>, transform_indices = @transform_22, window_bounds = array<i64: 2, 1, 32>}, {pipeline_mode = #tpu.pipeline_mode<synchronous>, transform_indices = @transform_23, window_bounds = array<i64: 2, 1, 32>}, {pipeline_mode = #tpu.pipeline_mode<synchronous>, transform_indices = @transform_24, window_bounds = array<i64: 16, 32>}]} {
    %c0 = arith.constant 0 : index
    %c0_0 = arith.constant 0 : index
    %0 = vector.load %arg1[%c0, %c0_0] : memref<16x32xf32, #tpu.memory_space<vmem>>, vector<16x32xf32>
    %c0_1 = arith.constant 0 : index
    %c0_2 = arith.constant 0 : index
    %1 = vector.load %arg2[%c0_1, %c0_2] : memref<32x32xf32, #tpu.memory_space<vmem>>, vector<32x32xf32>
    %2 = arith.truncf %1 : vector<32x32xf32> to vector<32x32xbf16>
    %c0_3 = arith.constant 0 : index
    %c0_4 = arith.constant 0 : index
    %3 = vector.load %arg3[%c0_3, %c0_4] : memref<32x32xbf16, #tpu.memory_space<vmem>>, vector<32x32xbf16>
    %cst = arith.constant dense<0.000000e+00> : vector<32x32xf32>
    %4 = tpu.matmul %2, %3, %cst {dimension_numbers = #tpu.dot_dimension_numbers<[1], [0], [0], [1], [0, 0, 1, 1], [], []>} : vector<32x32xbf16>, vector<32x32xbf16>, vector<32x32xf32> -> vector<32x32xf32>
    %c0_5 = arith.constant 0 : index
    %c0_6 = arith.constant 0 : index
    %5 = vector.load %arg4[%c0_5, %c0_6] : memref<1x32xf32, #tpu.memory_space<vmem>>, vector<1x32xf32>
    %6 = vector.broadcast %5 : vector<1x32xf32> to vector<32x32xf32>
    %7 = arith.addf %4, %6 : vector<32x32xf32>
    %8 = arith.truncf %7 : vector<32x32xf32> to vector<32x32xbf16>
    %c0_i32 = arith.constant 0 : i32
    %c2_i32 = arith.constant 2 : i32
    %9 = arith.addi %c0_i32, %c2_i32 : i32
    %c1_i32 = arith.constant 1 : i32
    %10 = scf.for %arg26 = %c0_i32 to %9 step %c1_i32 iter_args(%arg27 = %0) -> (vector<16x32xf32>)  : i32 {
      %12 = arith.truncf %arg27 : vector<16x32xf32> to vector<16x32xbf16>
      %13 = arith.index_cast %arg26 : i32 to index
      %c0_10 = arith.constant 0 : index
      %c0_11 = arith.constant 0 : index
      %14 = vector.load %arg5[%13, %c0_10, %c0_11] : memref<2x32x96xbf16, #tpu.memory_space<vmem>>, vector<1x32x96xbf16>
      %15 = vector.shape_cast %14 : vector<1x32x96xbf16> to vector<32x96xbf16>
      %cst_12 = arith.constant dense<0.000000e+00> : vector<16x96xf32>
      %16 = tpu.matmul %12, %15, %cst_12 {dimension_numbers = #tpu.dot_dimension_numbers<[1], [0], [0], [1], [0, 0, 1, 1], [], []>} : vector<16x32xbf16>, vector<32x96xbf16>, vector<16x96xf32> -> vector<16x96xf32>
      %17 = arith.index_cast %arg26 : i32 to index
      %c0_13 = arith.constant 0 : index
      %c0_14 = arith.constant 0 : index
      %18 = vector.load %arg6[%17, %c0_13, %c0_14] : memref<2x1x96xf32, #tpu.memory_space<vmem>>, vector<1x1x96xf32>
      %19 = vector.shape_cast %18 : vector<1x1x96xf32> to vector<1x96xf32>
      %20 = vector.broadcast %19 : vector<1x96xf32> to vector<16x96xf32>
      %21 = arith.addf %16, %20 : vector<16x96xf32>
      %22 = vector.extract_strided_slice %21 {offsets = [0, 0], sizes = [16, 32], strides = [1, 1]} : vector<16x96xf32> to vector<16x32xf32>
      %23 = vector.extract_strided_slice %21 {offsets = [0, 32], sizes = [16, 32], strides = [1, 1]} : vector<16x96xf32> to vector<16x32xf32>
      %24 = vector.extract_strided_slice %21 {offsets = [0, 64], sizes = [16, 32], strides = [1, 1]} : vector<16x96xf32> to vector<16x32xf32>
      %25 = vector.extract_strided_slice %22 {offsets = [0, 0], sizes = [8, 32], strides = [1, 1]} : vector<16x32xf32> to vector<8x32xf32>
      %26 = vector.shape_cast %25 : vector<8x32xf32> to vector<8x4x8xf32>
      %27 = vector.extract_strided_slice %23 {offsets = [0, 0], sizes = [8, 32], strides = [1, 1]} : vector<16x32xf32> to vector<8x32xf32>
      %28 = vector.shape_cast %27 : vector<8x32xf32> to vector<8x4x8xf32>
      %29 = vector.extract_strided_slice %24 {offsets = [0, 0], sizes = [8, 32], strides = [1, 1]} : vector<16x32xf32> to vector<8x32xf32>
      %30 = vector.shape_cast %29 : vector<8x32xf32> to vector<8x4x8xf32>
      %31 = tpu.transpose %26, [1, 0, 2] : vector<8x4x8xf32> -> vector<4x8x8xf32>
      %cst_15 = arith.constant 0.353553385 : f32
      %32 = vector.broadcast %cst_15 : f32 to vector<4x8x8xf32>
      %33 = arith.mulf %31, %32 : vector<4x8x8xf32>
      %34 = tpu.transpose %28, [1, 0, 2] : vector<8x4x8xf32> -> vector<4x8x8xf32>
      %35 = tpu.transpose %30, [1, 0, 2] : vector<8x4x8xf32> -> vector<4x8x8xf32>
      "tpu.trace_start"() <{level = 10 : i32, message = "hqd,hkd->hqk"}> : () -> ()
      %cst_16 = arith.constant dense<0.000000e+00> : vector<4x8x8xf32>
      %36 = tpu.matmul %33, %34, %cst_16 {dimension_numbers = #tpu.dot_dimension_numbers<[2], [2], [1], [1], [0, 0, 0, 1, 1, 1], [0], [0]>} : vector<4x8x8xf32>, vector<4x8x8xf32>, vector<4x8x8xf32> -> vector<4x8x8xf32>
      "tpu.trace_stop"() : () -> ()
      %cst_17 = arith.constant dense<0xFF800000> : vector<4x8xf32>
      %37 = vector.multi_reduction <maximumf>, %36, %cst_17 [2] : vector<4x8x8xf32> to vector<4x8xf32>
      %38 = vector.shape_cast %37 : vector<4x8xf32> to vector<4x8x1xf32>
      %39 = vector.broadcast %38 : vector<4x8x1xf32> to vector<4x8x8xf32>
      %40 = arith.subf %36, %39 : vector<4x8x8xf32>
      %41 = math.exp %40 : vector<4x8x8xf32>
      %cst_18 = arith.constant dense<0.000000e+00> : vector<4x8xf32>
      %42 = vector.multi_reduction <add>, %41, %cst_18 [2] : vector<4x8x8xf32> to vector<4x8xf32>
      %43 = vector.shape_cast %42 : vector<4x8xf32> to vector<4x8x1xf32>
      %44 = vector.broadcast %43 : vector<4x8x1xf32> to vector<4x8x8xf32>
      %45 = arith.divf %41, %44 : vector<4x8x8xf32>
      "tpu.trace_start"() <{level = 10 : i32, message = "hqk,hkd->hqd"}> : () -> ()
      %cst_19 = arith.constant dense<0.000000e+00> : vector<4x8x8xf32>
      %46 = tpu.matmul %45, %35, %cst_19 {dimension_numbers = #tpu.dot_dimension_numbers<[2], [1], [1], [2], [0, 0, 0, 1, 1, 2], [0], [0]>} : vector<4x8x8xf32>, vector<4x8x8xf32>, vector<4x8x8xf32> -> vector<4x8x8xf32>
      "tpu.trace_stop"() : () -> ()
      %47 = tpu.transpose %46, [1, 0, 2] : vector<4x8x8xf32> -> vector<8x4x8xf32>
      %48 = vector.shape_cast %47 : vector<8x4x8xf32> to vector<8x32xf32>
      %49 = vector.extract_strided_slice %22 {offsets = [8, 0], sizes = [8, 32], strides = [1, 1]} : vector<16x32xf32> to vector<8x32xf32>
      %50 = vector.shape_cast %49 : vector<8x32xf32> to vector<8x4x8xf32>
      %51 = vector.extract_strided_slice %23 {offsets = [8, 0], sizes = [8, 32], strides = [1, 1]} : vector<16x32xf32> to vector<8x32xf32>
      %52 = vector.shape_cast %51 : vector<8x32xf32> to vector<8x4x8xf32>
      %53 = vector.extract_strided_slice %24 {offsets = [8, 0], sizes = [8, 32], strides = [1, 1]} : vector<16x32xf32> to vector<8x32xf32>
      %54 = vector.shape_cast %53 : vector<8x32xf32> to vector<8x4x8xf32>
      %55 = tpu.transpose %50, [1, 0, 2] : vector<8x4x8xf32> -> vector<4x8x8xf32>
      %cst_20 = arith.constant 0.353553385 : f32
      %56 = vector.broadcast %cst_20 : f32 to vector<4x8x8xf32>
      %57 = arith.mulf %55, %56 : vector<4x8x8xf32>
      %58 = tpu.transpose %52, [1, 0, 2] : vector<8x4x8xf32> -> vector<4x8x8xf32>
      %59 = tpu.transpose %54, [1, 0, 2] : vector<8x4x8xf32> -> vector<4x8x8xf32>
      "tpu.trace_start"() <{level = 10 : i32, message = "hqd,hkd->hqk"}> : () -> ()
      %cst_21 = arith.constant dense<0.000000e+00> : vector<4x8x8xf32>
      %60 = tpu.matmul %57, %58, %cst_21 {dimension_numbers = #tpu.dot_dimension_numbers<[2], [2], [1], [1], [0, 0, 0, 1, 1, 1], [0], [0]>} : vector<4x8x8xf32>, vector<4x8x8xf32>, vector<4x8x8xf32> -> vector<4x8x8xf32>
      "tpu.trace_stop"() : () -> ()
      %cst_22 = arith.constant dense<0xFF800000> : vector<4x8xf32>
      %61 = vector.multi_reduction <maximumf>, %60, %cst_22 [2] : vector<4x8x8xf32> to vector<4x8xf32>
      %62 = vector.shape_cast %61 : vector<4x8xf32> to vector<4x8x1xf32>
      %63 = vector.broadcast %62 : vector<4x8x1xf32> to vector<4x8x8xf32>
      %64 = arith.subf %60, %63 : vector<4x8x8xf32>
      %65 = math.exp %64 : vector<4x8x8xf32>
      %cst_23 = arith.constant dense<0.000000e+00> : vector<4x8xf32>
      %66 = vector.multi_reduction <add>, %65, %cst_23 [2] : vector<4x8x8xf32> to vector<4x8xf32>
      %67 = vector.shape_cast %66 : vector<4x8xf32> to vector<4x8x1xf32>
      %68 = vector.broadcast %67 : vector<4x8x1xf32> to vector<4x8x8xf32>
      %69 = arith.divf %65, %68 : vector<4x8x8xf32>
      "tpu.trace_start"() <{level = 10 : i32, message = "hqk,hkd->hqd"}> : () -> ()
      %cst_24 = arith.constant dense<0.000000e+00> : vector<4x8x8xf32>
      %70 = tpu.matmul %69, %59, %cst_24 {dimension_numbers = #tpu.dot_dimension_numbers<[2], [1], [1], [2], [0, 0, 0, 1, 1, 2], [0], [0]>} : vector<4x8x8xf32>, vector<4x8x8xf32>, vector<4x8x8xf32> -> vector<4x8x8xf32>
      "tpu.trace_stop"() : () -> ()
      %71 = tpu.transpose %70, [1, 0, 2] : vector<4x8x8xf32> -> vector<8x4x8xf32>
      %72 = vector.shape_cast %71 : vector<8x4x8xf32> to vector<8x32xf32>
      %73 = tpu.concatenate %48, %72 in 0 : vector<8x32xf32>, vector<8x32xf32> -> vector<16x32xf32>
      %74 = arith.truncf %73 : vector<16x32xf32> to vector<16x32xbf16>
      %75 = arith.index_cast %arg26 : i32 to index
      %c0_25 = arith.constant 0 : index
      %c0_26 = arith.constant 0 : index
      %76 = vector.load %arg7[%75, %c0_25, %c0_26] : memref<2x32x32xbf16, #tpu.memory_space<vmem>>, vector<1x32x32xbf16>
      %77 = vector.shape_cast %76 : vector<1x32x32xbf16> to vector<32x32xbf16>
      %cst_27 = arith.constant dense<0.000000e+00> : vector<16x32xf32>
      %78 = tpu.matmul %74, %77, %cst_27 {dimension_numbers = #tpu.dot_dimension_numbers<[1], [0], [0], [1], [0, 0, 1, 1], [], []>} : vector<16x32xbf16>, vector<32x32xbf16>, vector<16x32xf32> -> vector<16x32xf32>
      %79 = arith.index_cast %arg26 : i32 to index
      %c0_28 = arith.constant 0 : index
      %c0_29 = arith.constant 0 : index
      %80 = vector.load %arg8[%79, %c0_28, %c0_29] : memref<2x1x32xf32, #tpu.memory_space<vmem>>, vector<1x1x32xf32>
      %81 = vector.shape_cast %80 : vector<1x1x32xf32> to vector<1x32xf32>
      %82 = vector.broadcast %81 : vector<1x32xf32> to vector<16x32xf32>
      %83 = arith.addf %78, %82 : vector<16x32xf32>
      %84 = arith.addf %arg27, %83 : vector<16x32xf32>
      %85 = arith.index_cast %arg26 : i32 to index
      %c0_30 = arith.constant 0 : index
      %c0_31 = arith.constant 0 : index
      %86 = vector.load %arg19[%85, %c0_30, %c0_31] : memref<2x1x32xf32, #tpu.memory_space<vmem>>, vector<1x1x32xf32>
      %87 = vector.shape_cast %86 : vector<1x1x32xf32> to vector<1x32xf32>
      %88 = arith.index_cast %arg26 : i32 to index
      %c0_32 = arith.constant 0 : index
      %c0_33 = arith.constant 0 : index
      %89 = vector.load %arg20[%88, %c0_32, %c0_33] : memref<2x1x32xf32, #tpu.memory_space<vmem>>, vector<1x1x32xf32>
      %90 = vector.shape_cast %89 : vector<1x1x32xf32> to vector<1x32xf32>
      %cst_34 = arith.constant dense<0.000000e+00> : vector<16xf32>
      %91 = vector.multi_reduction <add>, %84, %cst_34 [1] : vector<16x32xf32> to vector<16xf32>
      %92 = vector.shape_cast %91 : vector<16xf32> to vector<16x1xf32>
      %cst_35 = arith.constant 3.200000e+01 : f32
      %93 = vector.broadcast %cst_35 : f32 to vector<16x1xf32>
      %94 = arith.divf %92, %93 : vector<16x1xf32>
      %95 = vector.broadcast %94 : vector<16x1xf32> to vector<16x32xf32>
      %96 = arith.subf %84, %95 : vector<16x32xf32>
      %97 = arith.mulf %96, %96 : vector<16x32xf32>
      %cst_36 = arith.constant dense<0.000000e+00> : vector<16xf32>
      %98 = vector.multi_reduction <add>, %97, %cst_36 [1] : vector<16x32xf32> to vector<16xf32>
      %99 = vector.shape_cast %98 : vector<16xf32> to vector<16x1xf32>
      %cst_37 = arith.constant 3.200000e+01 : f32
      %100 = vector.broadcast %cst_37 : f32 to vector<16x1xf32>
      %101 = arith.divf %99, %100 : vector<16x1xf32>
      %cst_38 = arith.constant 9.99999974E-6 : f32
      %102 = vector.broadcast %cst_38 : f32 to vector<16x1xf32>
      %103 = arith.addf %101, %102 : vector<16x1xf32>
      %104 = math.rsqrt %103 : vector<16x1xf32>
      %105 = vector.broadcast %104 : vector<16x1xf32> to vector<16x32xf32>
      %106 = arith.mulf %96, %105 : vector<16x32xf32>
      %107 = vector.broadcast %87 : vector<1x32xf32> to vector<16x32xf32>
      %108 = arith.mulf %106, %107 : vector<16x32xf32>
      %109 = vector.broadcast %90 : vector<1x32xf32> to vector<16x32xf32>
      %110 = arith.addf %108, %109 : vector<16x32xf32>
      %111 = arith.truncf %110 : vector<16x32xf32> to vector<16x32xbf16>
      %112 = arith.index_cast %arg26 : i32 to index
      %c0_39 = arith.constant 0 : index
      %c0_40 = arith.constant 0 : index
      %113 = vector.load %arg9[%112, %c0_39, %c0_40] : memref<2x32x32xbf16, #tpu.memory_space<vmem>>, vector<1x32x32xbf16>
      %114 = vector.shape_cast %113 : vector<1x32x32xbf16> to vector<32x32xbf16>
      %cst_41 = arith.constant dense<0.000000e+00> : vector<16x32xf32>
      %115 = tpu.matmul %111, %114, %cst_41 {dimension_numbers = #tpu.dot_dimension_numbers<[1], [0], [0], [1], [0, 0, 1, 1], [], []>} : vector<16x32xbf16>, vector<32x32xbf16>, vector<16x32xf32> -> vector<16x32xf32>
      %116 = arith.index_cast %arg26 : i32 to index
      %c0_42 = arith.constant 0 : index
      %c0_43 = arith.constant 0 : index
      %117 = vector.load %arg10[%116, %c0_42, %c0_43] : memref<2x1x32xf32, #tpu.memory_space<vmem>>, vector<1x1x32xf32>
      %118 = vector.shape_cast %117 : vector<1x1x32xf32> to vector<1x32xf32>
      %119 = vector.broadcast %118 : vector<1x32xf32> to vector<16x32xf32>
      %120 = arith.addf %115, %119 : vector<16x32xf32>
      %121 = arith.index_cast %arg26 : i32 to index
      %c0_44 = arith.constant 0 : index
      %c0_45 = arith.constant 0 : index
      %122 = vector.load %arg11[%121, %c0_44, %c0_45] : memref<2x32x64xbf16, #tpu.memory_space<vmem>>, vector<1x32x64xbf16>
      %123 = vector.shape_cast %122 : vector<1x32x64xbf16> to vector<32x64xbf16>
      %cst_46 = arith.constant dense<0.000000e+00> : vector<32x64xf32>
      %124 = tpu.matmul %8, %123, %cst_46 {dimension_numbers = #tpu.dot_dimension_numbers<[1], [0], [0], [1], [0, 0, 1, 1], [], []>} : vector<32x32xbf16>, vector<32x64xbf16>, vector<32x64xf32> -> vector<32x64xf32>
      %125 = arith.index_cast %arg26 : i32 to index
      %c0_47 = arith.constant 0 : index
      %c0_48 = arith.constant 0 : index
      %126 = vector.load %arg12[%125, %c0_47, %c0_48] : memref<2x1x64xf32, #tpu.memory_space<vmem>>, vector<1x1x64xf32>
      %127 = vector.shape_cast %126 : vector<1x1x64xf32> to vector<1x64xf32>
      %128 = vector.broadcast %127 : vector<1x64xf32> to vector<32x64xf32>
      %129 = arith.addf %124, %128 : vector<32x64xf32>
      %130 = vector.extract_strided_slice %129 {offsets = [0, 0], sizes = [32, 32], strides = [1, 1]} : vector<32x64xf32> to vector<32x32xf32>
      %131 = vector.extract_strided_slice %129 {offsets = [0, 32], sizes = [32, 32], strides = [1, 1]} : vector<32x64xf32> to vector<32x32xf32>
      %132 = vector.extract_strided_slice %120 {offsets = [0, 0], sizes = [8, 32], strides = [1, 1]} : vector<16x32xf32> to vector<8x32xf32>
      %133 = vector.shape_cast %132 : vector<8x32xf32> to vector<8x4x8xf32>
      %134 = vector.extract_strided_slice %130 {offsets = [0, 0], sizes = [16, 32], strides = [1, 1]} : vector<32x32xf32> to vector<16x32xf32>
      %135 = vector.shape_cast %134 : vector<16x32xf32> to vector<16x4x8xf32>
      %136 = vector.extract_strided_slice %131 {offsets = [0, 0], sizes = [16, 32], strides = [1, 1]} : vector<32x32xf32> to vector<16x32xf32>
      %137 = vector.shape_cast %136 : vector<16x32xf32> to vector<16x4x8xf32>
      %138 = tpu.transpose %133, [1, 0, 2] : vector<8x4x8xf32> -> vector<4x8x8xf32>
      %cst_49 = arith.constant 0.353553385 : f32
      %139 = vector.broadcast %cst_49 : f32 to vector<4x8x8xf32>
      %140 = arith.mulf %138, %139 : vector<4x8x8xf32>
      %141 = tpu.transpose %135, [1, 0, 2] : vector<16x4x8xf32> -> vector<4x16x8xf32>
      %142 = tpu.transpose %137, [1, 0, 2] : vector<16x4x8xf32> -> vector<4x16x8xf32>
      "tpu.trace_start"() <{level = 10 : i32, message = "hqd,hkd->hqk"}> : () -> ()
      %cst_50 = arith.constant dense<0.000000e+00> : vector<4x8x16xf32>
      %143 = tpu.matmul %140, %141, %cst_50 {dimension_numbers = #tpu.dot_dimension_numbers<[2], [2], [1], [1], [0, 0, 0, 1, 1, 1], [0], [0]>} : vector<4x8x8xf32>, vector<4x16x8xf32>, vector<4x8x16xf32> -> vector<4x8x16xf32>
      "tpu.trace_stop"() : () -> ()
      %cst_51 = arith.constant dense<0xFF800000> : vector<4x8xf32>
      %144 = vector.multi_reduction <maximumf>, %143, %cst_51 [2] : vector<4x8x16xf32> to vector<4x8xf32>
      %145 = vector.shape_cast %144 : vector<4x8xf32> to vector<4x8x1xf32>
      %146 = vector.broadcast %145 : vector<4x8x1xf32> to vector<4x8x16xf32>
      %147 = arith.subf %143, %146 : vector<4x8x16xf32>
      %148 = math.exp %147 : vector<4x8x16xf32>
      %cst_52 = arith.constant dense<0.000000e+00> : vector<4x8xf32>
      %149 = vector.multi_reduction <add>, %148, %cst_52 [2] : vector<4x8x16xf32> to vector<4x8xf32>
      %150 = vector.shape_cast %149 : vector<4x8xf32> to vector<4x8x1xf32>
      %151 = vector.broadcast %150 : vector<4x8x1xf32> to vector<4x8x16xf32>
      %152 = arith.divf %148, %151 : vector<4x8x16xf32>
      "tpu.trace_start"() <{level = 10 : i32, message = "hqk,hkd->hqd"}> : () -> ()
      %cst_53 = arith.constant dense<0.000000e+00> : vector<4x8x8xf32>
      %153 = tpu.matmul %152, %142, %cst_53 {dimension_numbers = #tpu.dot_dimension_numbers<[2], [1], [1], [2], [0, 0, 0, 1, 1, 2], [0], [0]>} : vector<4x8x16xf32>, vector<4x16x8xf32>, vector<4x8x8xf32> -> vector<4x8x8xf32>
      "tpu.trace_stop"() : () -> ()
      %154 = tpu.transpose %153, [1, 0, 2] : vector<4x8x8xf32> -> vector<8x4x8xf32>
      %155 = vector.shape_cast %154 : vector<8x4x8xf32> to vector<8x32xf32>
      %156 = vector.extract_strided_slice %120 {offsets = [8, 0], sizes = [8, 32], strides = [1, 1]} : vector<16x32xf32> to vector<8x32xf32>
      %157 = vector.shape_cast %156 : vector<8x32xf32> to vector<8x4x8xf32>
      %158 = vector.extract_strided_slice %130 {offsets = [16, 0], sizes = [16, 32], strides = [1, 1]} : vector<32x32xf32> to vector<16x32xf32>
      %159 = vector.shape_cast %158 : vector<16x32xf32> to vector<16x4x8xf32>
      %160 = vector.extract_strided_slice %131 {offsets = [16, 0], sizes = [16, 32], strides = [1, 1]} : vector<32x32xf32> to vector<16x32xf32>
      %161 = vector.shape_cast %160 : vector<16x32xf32> to vector<16x4x8xf32>
      %162 = tpu.transpose %157, [1, 0, 2] : vector<8x4x8xf32> -> vector<4x8x8xf32>
      %cst_54 = arith.constant 0.353553385 : f32
      %163 = vector.broadcast %cst_54 : f32 to vector<4x8x8xf32>
      %164 = arith.mulf %162, %163 : vector<4x8x8xf32>
      %165 = tpu.transpose %159, [1, 0, 2] : vector<16x4x8xf32> -> vector<4x16x8xf32>
      %166 = tpu.transpose %161, [1, 0, 2] : vector<16x4x8xf32> -> vector<4x16x8xf32>
      "tpu.trace_start"() <{level = 10 : i32, message = "hqd,hkd->hqk"}> : () -> ()
      %cst_55 = arith.constant dense<0.000000e+00> : vector<4x8x16xf32>
      %167 = tpu.matmul %164, %165, %cst_55 {dimension_numbers = #tpu.dot_dimension_numbers<[2], [2], [1], [1], [0, 0, 0, 1, 1, 1], [0], [0]>} : vector<4x8x8xf32>, vector<4x16x8xf32>, vector<4x8x16xf32> -> vector<4x8x16xf32>
      "tpu.trace_stop"() : () -> ()
      %cst_56 = arith.constant dense<0xFF800000> : vector<4x8xf32>
      %168 = vector.multi_reduction <maximumf>, %167, %cst_56 [2] : vector<4x8x16xf32> to vector<4x8xf32>
      %169 = vector.shape_cast %168 : vector<4x8xf32> to vector<4x8x1xf32>
      %170 = vector.broadcast %169 : vector<4x8x1xf32> to vector<4x8x16xf32>
      %171 = arith.subf %167, %170 : vector<4x8x16xf32>
      %172 = math.exp %171 : vector<4x8x16xf32>
      %cst_57 = arith.constant dense<0.000000e+00> : vector<4x8xf32>
      %173 = vector.multi_reduction <add>, %172, %cst_57 [2] : vector<4x8x16xf32> to vector<4x8xf32>
      %174 = vector.shape_cast %173 : vector<4x8xf32> to vector<4x8x1xf32>
      %175 = vector.broadcast %174 : vector<4x8x1xf32> to vector<4x8x16xf32>
      %176 = arith.divf %172, %175 : vector<4x8x16xf32>
      "tpu.trace_start"() <{level = 10 : i32, message = "hqk,hkd->hqd"}> : () -> ()
      %cst_58 = arith.constant dense<0.000000e+00> : vector<4x8x8xf32>
      %177 = tpu.matmul %176, %166, %cst_58 {dimension_numbers = #tpu.dot_dimension_numbers<[2], [1], [1], [2], [0, 0, 0, 1, 1, 2], [0], [0]>} : vector<4x8x16xf32>, vector<4x16x8xf32>, vector<4x8x8xf32> -> vector<4x8x8xf32>
      "tpu.trace_stop"() : () -> ()
      %178 = tpu.transpose %177, [1, 0, 2] : vector<4x8x8xf32> -> vector<8x4x8xf32>
      %179 = vector.shape_cast %178 : vector<8x4x8xf32> to vector<8x32xf32>
      %180 = tpu.concatenate %155, %179 in 0 : vector<8x32xf32>, vector<8x32xf32> -> vector<16x32xf32>
      %181 = arith.truncf %180 : vector<16x32xf32> to vector<16x32xbf16>
      %182 = arith.index_cast %arg26 : i32 to index
      %c0_59 = arith.constant 0 : index
      %c0_60 = arith.constant 0 : index
      %183 = vector.load %arg13[%182, %c0_59, %c0_60] : memref<2x32x32xbf16, #tpu.memory_space<vmem>>, vector<1x32x32xbf16>
      %184 = vector.shape_cast %183 : vector<1x32x32xbf16> to vector<32x32xbf16>
      %cst_61 = arith.constant dense<0.000000e+00> : vector<16x32xf32>
      %185 = tpu.matmul %181, %184, %cst_61 {dimension_numbers = #tpu.dot_dimension_numbers<[1], [0], [0], [1], [0, 0, 1, 1], [], []>} : vector<16x32xbf16>, vector<32x32xbf16>, vector<16x32xf32> -> vector<16x32xf32>
      %186 = arith.index_cast %arg26 : i32 to index
      %c0_62 = arith.constant 0 : index
      %c0_63 = arith.constant 0 : index
      %187 = vector.load %arg14[%186, %c0_62, %c0_63] : memref<2x1x32xf32, #tpu.memory_space<vmem>>, vector<1x1x32xf32>
      %188 = vector.shape_cast %187 : vector<1x1x32xf32> to vector<1x32xf32>
      %189 = vector.broadcast %188 : vector<1x32xf32> to vector<16x32xf32>
      %190 = arith.addf %185, %189 : vector<16x32xf32>
      %191 = arith.addf %110, %190 : vector<16x32xf32>
      %192 = arith.index_cast %arg26 : i32 to index
      %c0_64 = arith.constant 0 : index
      %c0_65 = arith.constant 0 : index
      %193 = vector.load %arg21[%192, %c0_64, %c0_65] : memref<2x1x32xf32, #tpu.memory_space<vmem>>, vector<1x1x32xf32>
      %194 = vector.shape_cast %193 : vector<1x1x32xf32> to vector<1x32xf32>
      %195 = arith.index_cast %arg26 : i32 to index
      %c0_66 = arith.constant 0 : index
      %c0_67 = arith.constant 0 : index
      %196 = vector.load %arg22[%195, %c0_66, %c0_67] : memref<2x1x32xf32, #tpu.memory_space<vmem>>, vector<1x1x32xf32>
      %197 = vector.shape_cast %196 : vector<1x1x32xf32> to vector<1x32xf32>
      %cst_68 = arith.constant dense<0.000000e+00> : vector<16xf32>
      %198 = vector.multi_reduction <add>, %191, %cst_68 [1] : vector<16x32xf32> to vector<16xf32>
      %199 = vector.shape_cast %198 : vector<16xf32> to vector<16x1xf32>
      %cst_69 = arith.constant 3.200000e+01 : f32
      %200 = vector.broadcast %cst_69 : f32 to vector<16x1xf32>
      %201 = arith.divf %199, %200 : vector<16x1xf32>
      %202 = vector.broadcast %201 : vector<16x1xf32> to vector<16x32xf32>
      %203 = arith.subf %191, %202 : vector<16x32xf32>
      %204 = arith.mulf %203, %203 : vector<16x32xf32>
      %cst_70 = arith.constant dense<0.000000e+00> : vector<16xf32>
      %205 = vector.multi_reduction <add>, %204, %cst_70 [1] : vector<16x32xf32> to vector<16xf32>
      %206 = vector.shape_cast %205 : vector<16xf32> to vector<16x1xf32>
      %cst_71 = arith.constant 3.200000e+01 : f32
      %207 = vector.broadcast %cst_71 : f32 to vector<16x1xf32>
      %208 = arith.divf %206, %207 : vector<16x1xf32>
      %cst_72 = arith.constant 9.99999974E-6 : f32
      %209 = vector.broadcast %cst_72 : f32 to vector<16x1xf32>
      %210 = arith.addf %208, %209 : vector<16x1xf32>
      %211 = math.rsqrt %210 : vector<16x1xf32>
      %212 = vector.broadcast %211 : vector<16x1xf32> to vector<16x32xf32>
      %213 = arith.mulf %203, %212 : vector<16x32xf32>
      %214 = vector.broadcast %194 : vector<1x32xf32> to vector<16x32xf32>
      %215 = arith.mulf %213, %214 : vector<16x32xf32>
      %216 = vector.broadcast %197 : vector<1x32xf32> to vector<16x32xf32>
      %217 = arith.addf %215, %216 : vector<16x32xf32>
      %218 = arith.truncf %217 : vector<16x32xf32> to vector<16x32xbf16>
      %219 = arith.index_cast %arg26 : i32 to index
      %c0_73 = arith.constant 0 : index
      %c0_74 = arith.constant 0 : index
      %220 = vector.load %arg15[%219, %c0_73, %c0_74] : memref<2x32x64xbf16, #tpu.memory_space<vmem>>, vector<1x32x64xbf16>
      %221 = vector.shape_cast %220 : vector<1x32x64xbf16> to vector<32x64xbf16>
      %cst_75 = arith.constant dense<0.000000e+00> : vector<16x64xf32>
      %222 = tpu.matmul %218, %221, %cst_75 {dimension_numbers = #tpu.dot_dimension_numbers<[1], [0], [0], [1], [0, 0, 1, 1], [], []>} : vector<16x32xbf16>, vector<32x64xbf16>, vector<16x64xf32> -> vector<16x64xf32>
      %223 = arith.index_cast %arg26 : i32 to index
      %c0_76 = arith.constant 0 : index
      %c0_77 = arith.constant 0 : index
      %224 = vector.load %arg16[%223, %c0_76, %c0_77] : memref<2x1x64xf32, #tpu.memory_space<vmem>>, vector<1x1x64xf32>
      %225 = vector.shape_cast %224 : vector<1x1x64xf32> to vector<1x64xf32>
      %226 = vector.broadcast %225 : vector<1x64xf32> to vector<16x64xf32>
      %227 = arith.addf %222, %226 : vector<16x64xf32>
      %cst_78 = arith.constant 0.000000e+00 : f32
      %228 = vector.broadcast %cst_78 : f32 to vector<16x64xf32>
      %229 = arith.maximumf %227, %228 : vector<16x64xf32>
      %230 = arith.truncf %229 : vector<16x64xf32> to vector<16x64xbf16>
      %231 = arith.index_cast %arg26 : i32 to index
      %c0_79 = arith.constant 0 : index
      %c0_80 = arith.constant 0 : index
      %232 = vector.load %arg17[%231, %c0_79, %c0_80] : memref<2x64x32xbf16, #tpu.memory_space<vmem>>, vector<1x64x32xbf16>
      %233 = vector.shape_cast %232 : vector<1x64x32xbf16> to vector<64x32xbf16>
      %cst_81 = arith.constant dense<0.000000e+00> : vector<16x32xf32>
      %234 = tpu.matmul %230, %233, %cst_81 {dimension_numbers = #tpu.dot_dimension_numbers<[1], [0], [0], [1], [0, 0, 1, 1], [], []>} : vector<16x64xbf16>, vector<64x32xbf16>, vector<16x32xf32> -> vector<16x32xf32>
      %235 = arith.index_cast %arg26 : i32 to index
      %c0_82 = arith.constant 0 : index
      %c0_83 = arith.constant 0 : index
      %236 = vector.load %arg18[%235, %c0_82, %c0_83] : memref<2x1x32xf32, #tpu.memory_space<vmem>>, vector<1x1x32xf32>
      %237 = vector.shape_cast %236 : vector<1x1x32xf32> to vector<1x32xf32>
      %238 = vector.broadcast %237 : vector<1x32xf32> to vector<16x32xf32>
      %239 = arith.addf %234, %238 : vector<16x32xf32>
      %240 = arith.addf %217, %239 : vector<16x32xf32>
      %241 = arith.index_cast %arg26 : i32 to index
      %c0_84 = arith.constant 0 : index
      %c0_85 = arith.constant 0 : index
      %242 = vector.load %arg23[%241, %c0_84, %c0_85] : memref<2x1x32xf32, #tpu.memory_space<vmem>>, vector<1x1x32xf32>
      %243 = vector.shape_cast %242 : vector<1x1x32xf32> to vector<1x32xf32>
      %244 = arith.index_cast %arg26 : i32 to index
      %c0_86 = arith.constant 0 : index
      %c0_87 = arith.constant 0 : index
      %245 = vector.load %arg24[%244, %c0_86, %c0_87] : memref<2x1x32xf32, #tpu.memory_space<vmem>>, vector<1x1x32xf32>
      %246 = vector.shape_cast %245 : vector<1x1x32xf32> to vector<1x32xf32>
      %cst_88 = arith.constant dense<0.000000e+00> : vector<16xf32>
      %247 = vector.multi_reduction <add>, %240, %cst_88 [1] : vector<16x32xf32> to vector<16xf32>
      %248 = vector.shape_cast %247 : vector<16xf32> to vector<16x1xf32>
      %cst_89 = arith.constant 3.200000e+01 : f32
      %249 = vector.broadcast %cst_89 : f32 to vector<16x1xf32>
      %250 = arith.divf %248, %249 : vector<16x1xf32>
      %251 = vector.broadcast %250 : vector<16x1xf32> to vector<16x32xf32>
      %252 = arith.subf %240, %251 : vector<16x32xf32>
      %253 = arith.mulf %252, %252 : vector<16x32xf32>
      %cst_90 = arith.constant dense<0.000000e+00> : vector<16xf32>
      %254 = vector.multi_reduction <add>, %253, %cst_90 [1] : vector<16x32xf32> to vector<16xf32>
      %255 = vector.shape_cast %254 : vector<16xf32> to vector<16x1xf32>
      %cst_91 = arith.constant 3.200000e+01 : f32
      %256 = vector.broadcast %cst_91 : f32 to vector<16x1xf32>
      %257 = arith.divf %255, %256 : vector<16x1xf32>
      %cst_92 = arith.constant 9.99999974E-6 : f32
      %258 = vector.broadcast %cst_92 : f32 to vector<16x1xf32>
      %259 = arith.addf %257, %258 : vector<16x1xf32>
      %260 = math.rsqrt %259 : vector<16x1xf32>
      %261 = vector.broadcast %260 : vector<16x1xf32> to vector<16x32xf32>
      %262 = arith.mulf %252, %261 : vector<16x32xf32>
      %263 = vector.broadcast %243 : vector<1x32xf32> to vector<16x32xf32>
      %264 = arith.mulf %262, %263 : vector<16x32xf32>
      %265 = vector.broadcast %246 : vector<1x32xf32> to vector<16x32xf32>
      %266 = arith.addf %264, %265 : vector<16x32xf32>
      scf.yield %266 : vector<16x32xf32>
    }
    %c2_i32_7 = arith.constant 2 : i32
    %c0_8 = arith.constant 0 : index
    %c0_9 = arith.constant 0 : index
    %11 = vector.load %arg25[%c0_8, %c0_9] : memref<16x32xf32, #tpu.memory_space<vmem>>, vector<16x32xf32>
    tpu.vector_store %arg25[%c0_8, %c0_9], %10 {strides = array<i32>} : memref<16x32xf32, #tpu.memory_space<vmem>>, vector<16x32xf32>,
    return
  }
  func.func @transform_0(%arg0: i32) -> (i32, i32) {
    %c0_i32 = arith.constant 0 : i32
    %c0_i32_0 = arith.constant 0 : i32
    %c0_i32_1 = arith.constant 0 : i32
    return %c0_i32, %c0_i32_0 : i32, i32
  }
  func.func @transform_1(%arg0: i32) -> (i32, i32) {
    %c0_i32 = arith.constant 0 : i32
    %c0_i32_0 = arith.constant 0 : i32
    %c0_i32_1 = arith.constant 0 : i32
    return %c0_i32, %c0_i32_0 : i32, i32
  }
  func.func @transform_2(%arg0: i32) -> (i32, i32) {
    %c0_i32 = arith.constant 0 : i32
    %c0_i32_0 = arith.constant 0 : i32
    %c0_i32_1 = arith.constant 0 : i32
    return %c0_i32, %c0_i32_0 : i32, i32
  }
  func.func @transform_3(%arg0: i32) -> (i32, i32) {
    %c0_i32 = arith.constant 0 : i32
    %c0_i32_0 = arith.constant 0 : i32
    %c0_i32_1 = arith.constant 0 : i32
    return %c0_i32, %c0_i32_0 : i32, i32
  }
  func.func @transform_4(%arg0: i32) -> (i32, i32, i32) {
    %c0_i32 = arith.constant 0 : i32
    %c0_i32_0 = arith.constant 0 : i32
    %c0_i32_1 = arith.constant 0 : i32
    %c0_i32_2 = arith.constant 0 : i32
    return %c0_i32, %c0_i32_0, %c0_i32_1 : i32, i32, i32
  }
  func.func @transform_5(%arg0: i32) -> (i32, i32, i32) {
    %c0_i32 = arith.constant 0 : i32
    %c0_i32_0 = arith.constant 0 : i32
    %c0_i32_1 = arith.constant 0 : i32
    %c0_i32_2 = arith.constant 0 : i32
    return %c0_i32, %c0_i32_0, %c0_i32_1 : i32, i32, i32
  }
  func.func @transform_6(%arg0: i32) -> (i32, i32, i32) {
    %c0_i32 = arith.constant 0 : i32
    %c0_i32_0 = arith.constant 0 : i32
    %c0_i32_1 = arith.constant 0 : i32
    %c0_i32_2 = arith.constant 0 : i32
    return %c0_i32, %c0_i32_0, %c0_i32_1 : i32, i32, i32
  }
  func.func @transform_7(%arg0: i32) -> (i32, i32, i32) {
    %c0_i32 = arith.constant 0 : i32
    %c0_i32_0 = arith.constant 0 : i32
    %c0_i32_1 = arith.constant 0 : i32
    %c0_i32_2 = arith.constant 0 : i32
    return %c0_i32, %c0_i32_0, %c0_i32_1 : i32, i32, i32
  }
  func.func @transform_8(%arg0: i32) -> (i32, i32, i32) {
    %c0_i32 = arith.constant 0 : i32
    %c0_i32_0 = arith.constant 0 : i32
    %c0_i32_1 = arith.constant 0 : i32
    %c0_i32_2 = arith.constant 0 : i32
    return %c0_i32, %c0_i32_0, %c0_i32_1 : i32, i32, i32
  }
  func.func @transform_9(%arg0: i32) -> (i32, i32, i32) {
    %c0_i32 = arith.constant 0 : i32
    %c0_i32_0 = arith.constant 0 : i32
    %c0_i32_1 = arith.constant 0 : i32
    %c0_i32_2 = arith.constant 0 : i32
    return %c0_i32, %c0_i32_0, %c0_i32_1 : i32, i32, i32
  }
  func.func @transform_10(%arg0: i32) -> (i32, i32, i32) {
    %c0_i32 = arith.constant 0 : i32
    %c0_i32_0 = arith.constant 0 : i32
    %c0_i32_1 = arith.constant 0 : i32
    %c0_i32_2 = arith.constant 0 : i32
    return %c0_i32, %c0_i32_0, %c0_i32_1 : i32, i32, i32
  }
  func.func @transform_11(%arg0: i32) -> (i32, i32, i32) {
    %c0_i32 = arith.constant 0 : i32
    %c0_i32_0 = arith.constant 0 : i32
    %c0_i32_1 = arith.constant 0 : i32
    %c0_i32_2 = arith.constant 0 : i32
    return %c0_i32, %c0_i32_0, %c0_i32_1 : i32, i32, i32
  }
  func.func @transform_12(%arg0: i32) -> (i32, i32, i32) {
    %c0_i32 = arith.constant 0 : i32
    %c0_i32_0 = arith.constant 0 : i32
    %c0_i32_1 = arith.constant 0 : i32
    %c0_i32_2 = arith.constant 0 : i32
    return %c0_i32, %c0_i32_0, %c0_i32_1 : i32, i32, i32
  }
  func.func @transform_13(%arg0: i32) -> (i32, i32, i32) {
    %c0_i32 = arith.constant 0 : i32
    %c0_i32_0 = arith.constant 0 : i32
    %c0_i32_1 = arith.constant 0 : i32
    %c0_i32_2 = arith.constant 0 : i32
    return %c0_i32, %c0_i32_0, %c0_i32_1 : i32, i32, i32
  }
  func.func @transform_14(%arg0: i32) -> (i32, i32, i32) {
    %c0_i32 = arith.constant 0 : i32
    %c0_i32_0 = arith.constant 0 : i32
    %c0_i32_1 = arith.constant 0 : i32
    %c0_i32_2 = arith.constant 0 : i32
    return %c0_i32, %c0_i32_0, %c0_i32_1 : i32, i32, i32
  }
  func.func @transform_15(%arg0: i32) -> (i32, i32, i32) {
    %c0_i32 = arith.constant 0 : i32
    %c0_i32_0 = arith.constant 0 : i32
    %c0_i32_1 = arith.constant 0 : i32
    %c0_i32_2 = arith.constant 0 : i32
    return %c0_i32, %c0_i32_0, %c0_i32_1 : i32, i32, i32
  }
  func.func @transform_16(%arg0: i32) -> (i32, i32, i32) {
    %c0_i32 = arith.constant 0 : i32
    %c0_i32_0 = arith.constant 0 : i32
    %c0_i32_1 = arith.constant 0 : i32
    %c0_i32_2 = arith.constant 0 : i32
    return %c0_i32, %c0_i32_0, %c0_i32_1 : i32, i32, i32
  }
  func.func @transform_17(%arg0: i32) -> (i32, i32, i32) {
    %c0_i32 = arith.constant 0 : i32
    %c0_i32_0 = arith.constant 0 : i32
    %c0_i32_1 = arith.constant 0 : i32
    %c0_i32_2 = arith.constant 0 : i32
    return %c0_i32, %c0_i32_0, %c0_i32_1 : i32, i32, i32
  }
  func.func @transform_18(%arg0: i32) -> (i32, i32, i32) {
    %c0_i32 = arith.constant 0 : i32
    %c0_i32_0 = arith.constant 0 : i32
    %c0_i32_1 = arith.constant 0 : i32
    %c0_i32_2 = arith.constant 0 : i32
    return %c0_i32, %c0_i32_0, %c0_i32_1 : i32, i32, i32
  }
  func.func @transform_19(%arg0: i32) -> (i32, i32, i32) {
    %c0_i32 = arith.constant 0 : i32
    %c0_i32_0 = arith.constant 0 : i32
    %c0_i32_1 = arith.constant 0 : i32
    %c0_i32_2 = arith.constant 0 : i32
    return %c0_i32, %c0_i32_0, %c0_i32_1 : i32, i32, i32
  }
  func.func @transform_20(%arg0: i32) -> (i32, i32, i32) {
    %c0_i32 = arith.constant 0 : i32
    %c0_i32_0 = arith.constant 0 : i32
    %c0_i32_1 = arith.constant 0 : i32
    %c0_i32_2 = arith.constant 0 : i32
    return %c0_i32, %c0_i32_0, %c0_i32_1 : i32, i32, i32
  }
  func.func @transform_21(%arg0: i32) -> (i32, i32, i32) {
    %c0_i32 = arith.constant 0 : i32
    %c0_i32_0 = arith.constant 0 : i32
    %c0_i32_1 = arith.constant 0 : i32
    %c0_i32_2 = arith.constant 0 : i32
    return %c0_i32, %c0_i32_0, %c0_i32_1 : i32, i32, i32
  }
  func.func @transform_22(%arg0: i32) -> (i32, i32, i32) {
    %c0_i32 = arith.constant 0 : i32
    %c0_i32_0 = arith.constant 0 : i32
    %c0_i32_1 = arith.constant 0 : i32
    %c0_i32_2 = arith.constant 0 : i32
    return %c0_i32, %c0_i32_0, %c0_i32_1 : i32, i32, i32
  }
  func.func @transform_23(%arg0: i32) -> (i32, i32, i32) {
    %c0_i32 = arith.constant 0 : i32
    %c0_i32_0 = arith.constant 0 : i32
    %c0_i32_1 = arith.constant 0 : i32
    %c0_i32_2 = arith.constant 0 : i32
    return %c0_i32, %c0_i32_0, %c0_i32_1 : i32, i32, i32
  }
  func.func @transform_24(%arg0: i32) -> (i32, i32) {
    %c0_i32 = arith.constant 0 : i32
    %c0_i32_0 = arith.constant 0 : i32
    %c0_i32_1 = arith.constant 0 : i32
    return %c0_i32, %c0_i32_0 : i32, i32
  }
}

</mosaic_0001>

<bundles_post_ra>
// kernel: decoder_forward.3
= control target key start
LH: loop header
LB: loop body
LE: loop exit
PB: predicated region body
PF: predicated region fallthrough
CT: control target
= control target key end

     0   :  { %v151_v1 = vmov 0.0   ;;  %vm152_vm0 = vmmov 0   ;;  %s203_s0 = inlined_call_operand.vmem [shape: f32[16,32], index: 0, kind: input, shape index: {}]   ;;  %s204_s1 = inlined_call_operand.vmem [shape: bf16[32,128], index: 1, kind: input, shape index: {}]   ;;  %s205_s2 = inlined_call_operand.vmem [shape: f32[1,128], index: 2, kind: input, shape index: {}]   ;;  %s206_s3 = inlined_call_operand.hbm [shape: f32[16,128], index: 3, kind: output, shape index: {}]  }
   0x1   :  { %v125_v0 = vld [vmem:[%s204_s1] sm:$0xff]   ;;  %112 = vmatprep.subr.bf16.mxu0 %v151_v1  ;;  %v126_v2 = vld [vmem:[%s204_s1 + $0x8] sm:$0xff]   ;;  %116 = vmatprep.mubr.msk.bf16.mxu0 %vm152_vm0, %v151_v1 }
   0x2   :  { %113 = vmatpush3.bf16.msra.mxu0 %v125_v0  ;;  %v16_v3 = vld [vmem:[%s203_s0] sm:$0xff]  ;;  %v17_v4 = vld [vmem:[%s203_s0 + $0x8] sm:$0xff] }
   0x3   :  { %114 = vmatprep.subr.bf16.mxu0 %v151_v1 }
   0x4   :  { %8 = vsyncpa [#allocation3], 0  ;;  %v18_v5 = vpack.c.bf16 %v17_v4, %v16_v3  ;;  %vm42_vm1 = vcmask 261120   ;;  %v105_v6 = vld [vmem:[%s205_s2] ss:$0 sm:$0xff]  ;;  %s153_s1 = smov [#allocation2]  }
   0x5   :  { %s94_s22 = sshll.u32 %s153_s1, 4  ;;  %s95_s22 = int_to_ptr.vmem [resolvable:$true] %s94_s22 }
   0x6   :  { %115 = vmatpush3.bf16.msra.mxu0 %v126_v2  ;;  %s127_s0 = scalar_lea.vmem %s95_s22, 256  ;;  %p132_p1 = scmp.lt.s32.totalorder %s95_s22, %s95_s22 }
   0x7   :  { %p128_p0 = scmp.ne.s32.totalorder %s95_s22, %s127_s0  ;;  %p133_p2 = scmp.lt.s32.totalorder %s127_s0, %s127_s0 }
   0x9   :  { %117 = vmatmul.mubr.msk.bf16.vlgmr.msra.gmra.mrb[0].mxu0 %vm42_vm1, %v18_v5  ;;  %p134_p3 = por %p133_p2, %p132_p1 }
   0xb   :  { %p135_p4 = pnand %p134_p3, %p128_p0 }
  0xdc   :  { %v80_v7 = vpop.f32.mrb[0].mxu0 }
  0xdd   :  { %v81_v8 = vadd.f32 %v105_v6, %v80_v7  ;;  %v118_v9 = vpop.f32.mrb[1].mxu0 }
  0xde   :  { %v83_v10 = vpop.f32.mrb[2].mxu0 }
  0xdf   :  { %87 = vst [vmem:[#allocation2] sm:$0xff] %v81_v8  ;;  %v84_v11 = vadd.f32 %v105_v6, %v83_v10  ;;  %v119_v12 = vpop.f32.mrb[3].mxu0 }
  0xe1   :  { %88 = vst [vmem:[#allocation2 + $0x8] sm:$0xff] %v84_v11 }
  0xe2   :  { %138 = shalt.err (!%p135_p4)
}
  0xe3   :  { %s139_s24 = scalar_lea.hbm %s206_s3, 256 }
  0xe4   :  { %p140_p5 = scmp.ne.s32.totalorder %s206_s3, %s139_s24  ;;  %p143_p6 = scmp.lt.u32.totalorder %s139_s24, %s206_s3 }
  0xe6   :  { %p145_p7 = pnand %p143_p6, %p140_p5 }
  0xe8   :  { %148 = shalt.err (!%p145_p7)
}
  0xe9   :  { %s154_s29 = smov 128   ;;  %s155_s30 = smov 8  }
  0xea   :  { %100 = dma.vmem_to_hbm [thread:$0]  %s95_s22, 256, %s206_s3, [#allocation3], %s154_s29, %s154_s29, %s155_s30  }
  0xeb   :  { %149 = dma.done.wait [#allocation3], 256  }
  0xec   :  { %150 = vsyncadd [#allocation3], 4294967040 }
  0xed   :  { %104 = vsyncpa [#allocation3], 1 }

// kernel: decoder_forward.2
= control target key start
LH: loop header
LB: loop body
LE: loop exit
PB: predicated region body
PF: predicated region fallthrough
CT: control target
= control target key end

     0   :  { %vm109_vm0 = vcmask 261120   ;;  %s8488_s0 = inlined_call_operand.vmem [shape: f32[16,32], index: 0, kind: input, shape index: {}]   ;;  %s8489_s2 = inlined_call_operand.vmem [shape: bf16[32,32], index: 2, kind: input, shape index: {}]   ;;  %s8490_s4 = inlined_call_operand.vmem [shape: bf16[2,32,96], index: 4, kind: input, shape index: {}]   ;;  %s8491_s5 = inlined_call_operand.vmem [shape: f32[2,1,96], index: 5, kind: input, shape index: {}]   ;;  %s8492_s6 = inlined_call_operand.vmem [shape: bf16[2,32,32], index: 6, kind: input, shape index: {}]   ;;  %s8493_s7 = inlined_call_operand.vmem [shape: f32[2,1,32], index: 7, kind: input, shape index: {}]   ;;  %s8494_s8 = inlined_call_operand.vmem [shape: bf16[2,32,32], index: 8, kind: input, shape index: {}]   ;;  %s8495_s9 = inlined_call_operand.vmem [shape: f32[2,1,32], index: 9, kind: input, shape index: {}]   ;;  %s8496_s10 = inlined_call_operand.vmem [shape: bf16[2,32,64], index: 10, kind: input, shape index: {}]   ;;  %s8497_s11 = inlined_call_operand.vmem [shape: f32[2,1,64], index: 11, kind: input, shape index: {}]   ;;  %s8498_s12 = inlined_call_operand.vmem [shape: bf16[2,32,32], index: 12, kind: input, shape index: {}]   ;;  %s8499_s13 = inlined_call_operand.vmem [shape: f32[2,1,32], index: 13, kind: input, shape index: {}]   ;;  %s8500_s14 = inlined_call_operand.vmem [shape: bf16[2,32,64], index: 14, kind: input, shape index: {}]   ;;  %s8501_s15 = inlined_call_operand.vmem [shape: f32[2,1,64], index: 15, kind: input, shape index: {}]   ;;  %s8502_s16 = inlined_call_operand.vmem [shape: bf16[2,64,32], index: 16, kind: input, shape index: {}]   ;;  %s8503_s17 = inlined_call_operand.vmem [shape: f32[2,1,32], index: 17, kind: input, shape index: {}]   ;;  %s8504_s18 = inlined_call_operand.vmem [shape: f32[2,1,32], index: 18, kind: input, shape index: {}]   ;;  %s8505_s19 = inlined_call_operand.vmem [shape: f32[2,1,32], index: 19, kind: input, shape index: {}]   ;;  %s8506_s20 = inlined_call_operand.vmem [shape: f32[2,1,32], index: 20, kind: input, shape index: {}]   ;;  %s8507_s21 = inlined_call_operand.vmem [shape: f32[2,1,32], index: 21, kind: input, shape index: {}]   ;;  %s8508_s22 = inlined_call_operand.vmem [shape: f32[2,1,32], index: 22, kind: input, shape index: {}]   ;;  %s8509_s23 = inlined_call_operand.vmem [shape: f32[2,1,32], index: 23, kind: input, shape index: {}]   ;;  %s8510_s24 = inlined_call_operand.vmem [shape: f32[16,32], index: 24, kind: output, shape index: {}]   ;;  %s8511_s1 = inlined_call_operand.vmem [shape: f32[32,32], index: 1, kind: input, shape index: {}]   ;;  %s8512_s3 = inlined_call_operand.vmem [shape: f32[1,32], index: 3, kind: input, shape index: {}]  }
   0x1   :  { %8515 = sst [smem:[#allocation2_spill]] %s8488_s0  ;;  %v80_v4 = vld [vmem:[%s8511_s1] sm:$0xff]  ;;  %v81_v5 = vld [vmem:[%s8511_s1 + $0x8] sm:$0xff]  ;;  %v82_v7 = vld [vmem:[%s8511_s1 + $0x10] sm:$0xff] }
   0x2   :  { %8516 = sst [smem:[#allocation3_spill]] %s8489_s2  ;;  %s8524_s27 = sld [smem:[#allocation2_spill]]  ;;  %v84_v6 = vpack.c.bf16 %v81_v5, %v80_v4  ;;  %v83_v8 = vld [vmem:[%s8511_s1 + $0x18] sm:$0xff]  ;;  %v6451_v11 = vld [vmem:[%s8512_s3] ss:$0 sm:$0xff] }
   0x3   :  { %8517 = sst [smem:[#allocation4_spill]] %s8490_s4  ;;  %s8525_s0 = sld [smem:[#allocation3_spill]]  ;;  %v85_v9 = vpack.c.bf16 %v83_v8, %v82_v7 }
   0x4   :  { %8518 = sst [smem:[#allocation5_spill]] %s8491_s5  ;;  %6717 = vmatprep.mubr.msk.bf16.mxu0 %vm109_vm0, %v84_v6  ;;  %s7397_s1 = smov 0  }
   0x5   :  { %8519 = sst [smem:[#allocation6_spill]] %s8492_s6 }
   0x6   :  { %8520 = sst [smem:[#allocation7_spill]] %s8493_s7 }
   0x7   :  { %8521 = sst [smem:[#allocation8_spill]] %s8494_s8 }
   0x8   :  { %8522 = sst [smem:[#allocation9_spill]] %s8495_s9  ;;  %v78_v0 = vld [vmem:[%s8524_s27] sm:$0xff]   ;;  %v79_v1 = vld [vmem:[%s8524_s27 + $0x8] sm:$0xff]  }
   0x9   :  { %8523 = sst [smem:[#allocation10_spill]] %s8496_s10  ;;  %v7066_v2 = vld [vmem:[%s8525_s0] sm:$0xff]   ;;  %v7067_v3 = vld [vmem:[%s8525_s0 + $0x8] sm:$0xff]  }
   0xa   :  { %6713 = vmatprep.subr.bf16.mxu0 %v7066_v2 }
   0xb   :  { %6714 = vmatpush3.bf16.msra.mxu0 %v7066_v2 }
   0xc   :  { %6715 = vmatprep.subr.bf16.mxu0 %v7067_v3 }
   0xf   :  { %6716 = vmatpush3.bf16.msra.mxu0 %v7067_v3 }
  0x12   :  { %6718 = vmatmul.mubr.msk.bf16.vlgmr.msra.gmra.mrb[0].mxu0 %vm109_vm0, %v85_v9 }
  0xe5   :  { %v6719_v10 = vpop.f32.mrb[0].mxu0 }
  0xe6   :  { %v150_v12 = vpop.f32.mrb[1].mxu0  ;;  %v7381_v14 = vadd.f32 %v6719_v10, %v6451_v11 }
  0xe7   :  { %v6720_v13 = vpop.f32.mrb[2].mxu0  ;;  %v7385_v17 = vadd.f32 %v6451_v11, %v150_v12 }
  0xe8   :  { %v7383_v15 = vadd.f32 %v6720_v13, %v6451_v11  ;;  %v153_v16 = vpop.f32.mrb[3].mxu0 }
  0xe9   :  { %v7387_v18 = vadd.f32 %v6451_v11, %v153_v16 }
  0xea   :  { %v166_v19 = vpack.c.bf16 %v7383_v15, %v7381_v14 }
  0xeb   :  { %v165_v20 = vpack.c.bf16 %v7387_v18, %v7385_v17 }
  0xec LB: > { %v7214_v21 = vmov 0.0   ;;  %vm7215_vm1 = vmmov 0   ;;  %s7412_s3 = sshll.u32 %s7212_s1, 4  ;;  %s8526_s0 = sld [smem:[#allocation4_spill]]  ;;  %v175_v24 = vpack.c.bf16 %v7204_v1, %v7208_v0  ;;  %v7220_v35 = vmov 1983009808   ;;  %s7212_s1 = sphi %s7397_s1, %s172_s1   ;;  %v7208_v0 = vphi %v78_v0, %v8536_v0   ;;  %v7204_v1 = vphi %v79_v1, %v8535_v1  }
  0xed   : > { %6721 = vmatprep.subr.bf16.mxu0 %v7214_v21  ;;  %6725 = vmatprep.mubr.msk.bf16.mxu0 %vm7215_vm1, %v7214_v21  ;;  %s8527_s25 = sld [smem:[#allocation5_spill]]  ;;  %s7216_s6 = smov 104   ;;  %v260_v36 = vunpack.c.l.s4 %v7220_v35  ;;  %v262_v37 = vlaneseq  ;;  %v7221_v40 = vmov 1934713408   ;;  %vm693_vm2 = vcmask 64512  }
  0xee   : > { %6734 = vmatprep.subr.mxu1 %v7214_v21  ;;  %6736 = vmatprep.mubr.msk.f32.mxu1 %vm7215_vm1, %v7214_v21  ;;  %s7217_s2 = smov 120   ;;  %s7218_s7 = smov 96   ;;  %v292_v41 = vunpack.c.l.s4 %v7221_v40  ;;  %vm1483_vm3 = vcmask 130048   ;;  %vm1485_vm4 = vcmask 195584   ;;  %vm7937_vm5 = vmpackc.low %vm693_vm2, %vm693_vm2  ;;  %vm6314_vm6 = vcmask 523264  }
  0xef   : > { %s7219_s26 = smov 112   ;;  %v261_v38 = vunpack.c.0.s8 %v260_v36  ;;  %v263_v39 = vshrl.u32 %v262_v37, 7  ;;  %s7222_s27 = smov 64  }
  0xf0   : > { %v293_v47 = vunpack.c.0.s8 %v292_v41  ;;  %s8528_s4 = sld [smem:[#allocation6_spill]]  ;;  %s7225_s30 = smov 24  }
  0xf1   : > { %v7460_v44 = vsub.s32 %v261_v38, %v263_v39  ;;  %s2799_s28 = scalar_lea.vmem %s8505_s19, %s7212_s1  ;;  %s6361_s8 = scalar_lea.vmem %s8508_s22, %s7212_s1 }
  0xf2   : > { %s178_s9 = scalar_lea.vmem %s8526_s0, %s7412_s3  ;;  %v7470_v52 = vsub.s32 %v293_v47, %v263_v39  ;;  %s7223_s0 = smov 16  }
  0xf3   : > { %v7098_v22 = vld [vmem:[%s178_s9] sm:$0xff]   ;;  %v7099_v23 = vld [vmem:[%s178_s9 + $0x8] sm:$0xff]   ;;  %s183_s10 = scalar_lea.vmem %s8527_s25, %s7212_s1  ;;  %s7224_s9 = smov 8  }
  0xf4   : > { %6722 = vmatpush3.bf16.msra.mxu0 %v7098_v22  ;;  %v6458_v25 = vld [vmem:[%s183_s10] ss:$0 sm:$0xff]  ;;  %s8529_s10 = sld [smem:[#allocation7_spill]]  ;;  %s2797_s25 = scalar_lea.vmem %s8504_s18, %s7212_s1 }
  0xf5   : > { %6723 = vmatprep.subr.bf16.mxu0 %v7214_v21 }
  0xf6   : > { %s2726_s29 = scalar_lea.vmem %s8528_s4, %s7412_s3  ;;  %s8530_s4 = sld [smem:[#allocation10_spill]] }
  0xf8   : > { %6724 = vmatpush3.bf16.msra.mxu0 %v7099_v23 }
  0xf9   : > { %6729 = vmatprep.subr.mxu0 %v7214_v21 }
  0xfb   : > { %6726 = vmatmul.mubr.msk.bf16.vlgmr.msra.gmra.mrb[0].mxu0 %vm109_vm0, %v175_v24 }
  0xfc   : > { %6731 = vmatprep.mubr.msk.f32.mxu0 %vm7215_vm1, %v7214_v21 }
 0x1ce   : > { %v240_v26 = vpop.f32.mrb[0].mxu0 }
 0x1cf   : > { %v7432_v27 = vadd.f32 %v6458_v25, %v240_v26  ;;  %v6727_v28 = vpop.f32.mrb[1].mxu0 }
 0x1d0   : > { %v243_v29 = vpop.f32.mrb[2].mxu0 }
 0x1d1   : > { %v7434_v30 = vadd.f32 %v6458_v25, %v243_v29  ;;  %254 = vrot.lane.b32.xlu1 %v7432_v27, %s7216_s6  ;;  %248 = vrot.lane.b32.xlu0 %v7432_v27, %s7217_s2  ;;  %v6728_v31 = vpop.f32.mrb[3].mxu0 }
 0x1d5   : > { %325 = vrot.lane.b32.xlu1 %v7432_v27, %s7218_s7  ;;  %251 = vrot.lane.b32.xlu0 %v7432_v27, %s7219_s26 }
 0x243   : > { %v7444_v32 = vpop.permute.xlu0 %248  ;;  %v7448_v33 = vpop.permute.xlu1 %254 }
 0x244   : > { %327 = vrot.lane.b32.xlu0 %v7444_v32, %s7218_s7  ;;  %v273_v45 = vcombine.low %v7444_v32, %v7448_v33  ;;  %v274_v46 = vcombine.high %v7444_v32, %v7448_v33 }
 0x246   : > { %v281_v50 = vrot.slane %v273_v45, %v7460_v44  ;;  %v288_v51 = vrot.slane %v274_v46, %v7460_v44 }
 0x247   : > { %v7450_v34 = vpop.permute.xlu0 %251  ;;  %v326_v57 = vpop.permute.xlu1 %325 }
 0x248   : > { %331 = vrot.lane.b32.xlu0 %v7448_v33, %s7218_s7  ;;  %329 = vrot.lane.b32.xlu1 %v7450_v34, %s7218_s7  ;;  %v257_v42 = vcombine.low %v7432_v27, %v7450_v34  ;;  %v258_v43 = vcombine.high %v7432_v27, %v7450_v34 }
 0x24a   : > { %v265_v48 = vrot.slane %v257_v42, %v7460_v44  ;;  %v272_v49 = vrot.slane %v258_v43, %v7460_v44 }
 0x24c   : > { %v289_v53 = vcombine.low %v265_v48, %v281_v50  ;;  %v290_v54 = vcombine.high %v265_v48, %v281_v50  ;;  %v305_v55 = vcombine.low %v272_v49, %v288_v51  ;;  %v306_v56 = vcombine.high %v272_v49, %v288_v51 }
 0x24e   : > { %v297_v58 = vrot.slane %v289_v53, %v7470_v52  ;;  %v304_v59 = vrot.slane %v290_v54, %v7470_v52  ;;  %v313_v60 = vrot.slane %v305_v55, %v7470_v52  ;;  %v320_v61 = vrot.slane %v306_v56, %v7470_v52 }
 0x250   : > { %v485_v63 = vcombine.low %v297_v58, %v304_v59  ;;  %v6462_v2 = vcombine.high %v297_v58, %v304_v59  ;;  %v501_v3 = vcombine.low %v313_v60, %v320_v61  ;;  %v6463_v4 = vcombine.high %v313_v60, %v320_v61 }
 0x252   : > { %v492_v22 = vrot.slane %v485_v63, %v7460_v44  ;;  %v500_v23 = vrot.slane %v6462_v2, %v7460_v44  ;;  %v508_v24 = vrot.slane %v501_v3, %v7460_v44  ;;  %v516_v25 = vrot.slane %v6463_v4, %v7460_v44 }
 0x254   : > { %v517_v39 = vcombine.low %v492_v22, %v500_v23  ;;  %v533_v40 = vcombine.low %v508_v24, %v516_v25  ;;  %v518_v53 = vcombine.high %v492_v22, %v500_v23  ;;  %v534_v54 = vcombine.high %v508_v24, %v516_v25 }
 0x256   : > { %v525_v50 = vrot.slane %v517_v39, %v7470_v52  ;;  %v541_v51 = vrot.slane %v533_v40, %v7470_v52  ;;  %v532_v63 = vrot.slane %v518_v53, %v7470_v52  ;;  %v548_v2 = vrot.slane %v534_v54, %v7470_v52 }
 0x258   : > { %v549_v61 = vcombine.low %v525_v50, %v541_v51 }
 0x2b6   : > { %v328_v62 = vpop.permute.xlu0 %327 }
 0x2ba   : > { %v330_v5 = vpop.permute.xlu1 %329  ;;  %v332_v6 = vpop.permute.xlu0 %331 }
 0x2bb   : > { %v337_v7 = vcombine.low %v326_v57, %v330_v5  ;;  %v338_v8 = vcombine.high %v326_v57, %v330_v5  ;;  %v353_v9 = vcombine.low %v328_v62, %v332_v6  ;;  %v354_v10 = vcombine.high %v328_v62, %v332_v6 }
 0x2bc   : > { %v550_v62 = vcombine.high %v525_v50, %v541_v51 }
 0x2bd   : > { %v345_v11 = vrot.slane %v337_v7, %v7460_v44  ;;  %v352_v12 = vrot.slane %v338_v8, %v7460_v44  ;;  %v361_v13 = vrot.slane %v353_v9, %v7460_v44  ;;  %v368_v16 = vrot.slane %v354_v10, %v7460_v44 }
 0x2be   : > { %v553_v7 = vmul.f32 0.35355338, %v549_v61  ;;  %v554_v8 = vmul.f32 0.35355338, %v550_v62  ;;  %v551_v9 = vcombine.low %v532_v63, %v548_v2  ;;  %v552_v10 = vcombine.high %v532_v63, %v548_v2 }
 0x2bf   : > { %v369_v26 = vcombine.low %v345_v11, %v361_v13  ;;  %v370_v28 = vcombine.high %v345_v11, %v361_v13  ;;  %v385_v29 = vcombine.low %v352_v12, %v368_v16  ;;  %v386_v31 = vcombine.high %v352_v12, %v368_v16 }
 0x2c0   : > { %v555_v13 = vmul.f32 0.35355338, %v551_v9  ;;  %v556_v16 = vmul.f32 0.35355338, %v552_v10 }
 0x2c1   : > { %v377_v35 = vrot.slane %v369_v26, %v7470_v52  ;;  %v384_v36 = vrot.slane %v370_v28, %v7470_v52  ;;  %v393_v37 = vrot.slane %v385_v29, %v7470_v52  ;;  %v400_v38 = vrot.slane %v386_v31, %v7470_v52 }
 0x2c3   : > { %v557_v41 = vcombine.low %v377_v35, %v384_v36  ;;  %v6464_v42 = vcombine.high %v377_v35, %v384_v36  ;;  %v573_v43 = vcombine.low %v393_v37, %v400_v38  ;;  %v6465_v45 = vcombine.high %v393_v37, %v400_v38 }
 0x2c5   : > { %v564_v46 = vrot.slane %v557_v41, %v7460_v44  ;;  %v572_v47 = vrot.slane %v6464_v42, %v7460_v44  ;;  %v580_v48 = vrot.slane %v573_v43, %v7460_v44  ;;  %v588_v49 = vrot.slane %v6465_v45, %v7460_v44 }
 0x2c7   : > { %v589_v55 = vcombine.low %v564_v46, %v572_v47  ;;  %v590_v56 = vcombine.high %v564_v46, %v572_v47  ;;  %v605_v57 = vcombine.low %v580_v48, %v588_v49  ;;  %v606_v58 = vcombine.high %v580_v48, %v588_v49 }
 0x2c9   : > { %v597_v59 = vrot.slane %v589_v55, %v7470_v52  ;;  %v613_v60 = vrot.slane %v605_v57, %v7470_v52  ;;  %v604_v5 = vrot.slane %v590_v56, %v7470_v52  ;;  %v620_v6 = vrot.slane %v606_v58, %v7470_v52 }
 0x2cb   : > { %v621_v3 = vcombine.low %v597_v59, %v613_v60  ;;  %v622_v4 = vcombine.high %v597_v59, %v613_v60  ;;  %v623_v11 = vcombine.low %v604_v5, %v620_v6  ;;  %v624_v12 = vcombine.high %v604_v5, %v620_v6 }
 0x2cd   : > { %6730 = vmatpush3.xpose.msk.msra.mxu0 %vm693_vm2, %v621_v3  ;;  %6735 = vmatpush3.xpose.msk.msra.mxu1 %vm693_vm2, %v622_v4 }
 0x2ce   : > { %6739 = vmatprep.subr.mxu1 %v7214_v21  ;;  %6744 = vmatprep.subr.mxu0 %v7214_v21 }
 0x2d0   : > { %6732 = vmatmul.mubr.msk.f32.vlgmr.msra.gmra.mrb[4].mxu0 %vm693_vm2, %v553_v7  ;;  %6737 = vmatmul.mubr.msk.f32.vlgmr.msra.gmra.mrb[0].mxu1 %vm693_vm2, %v554_v8 }
 0x2d1   : > { %6740 = vmatpush3.xpose.msk.msra.mxu1 %vm693_vm2, %v623_v11  ;;  %6745 = vmatpush3.xpose.msk.msra.mxu0 %vm693_vm2, %v624_v12 }
 0x2d2   : > { %6741 = vmatprep.mubr.msk.f32.mxu1 %vm7215_vm1, %v7214_v21  ;;  %6746 = vmatprep.mubr.msk.f32.mxu0 %vm7215_vm1, %v7214_v21 }
 0x2d3   : > { %6749 = vmatprep.subr.mxu1 %v7214_v21  ;;  %6754 = vmatprep.subr.mxu0 %v7214_v21 }
 0x2d4   : > { %6742 = vmatmul.mubr.msk.f32.vlgmr.msra.gmra.mrb[2].mxu1 %vm693_vm2, %v555_v13  ;;  %6747 = vmatmul.mubr.msk.f32.vlgmr.msra.gmra.mrb[6].mxu0 %vm693_vm2, %v556_v16 }
 0x2d5   : > { %6751 = vmatprep.mubr.msk.f32.mxu1 %vm7215_vm1, %v7214_v21  ;;  %6756 = vmatprep.mubr.msk.f32.mxu0 %vm7215_vm1, %v7214_v21 }
 0x3a3   : > { %v766_v22 = vpop.f32.mrb[4].mxu0  ;;  %v842_v23 = vpop.f32.mrb[0].mxu1 }
 0x3a4   : > { %v6733_v24 = vpop.f32.mrb[5].mxu0  ;;  %v6738_v25 = vpop.f32.mrb[1].mxu1  ;;  %v1001_v26 = vsel %vm693_vm2, %v842_v23, -inf  ;;  %v998_v28 = vsel %vm693_vm2, %v766_v22, -inf }
 0x3a5   : > { %1002 = vmax.xlane.f32.xlu0 %v1001_v26  ;;  %999 = vmax.xlane.f32.xlu1 %v998_v28 }
 0x3a7   : > { %v918_v29 = vpop.f32.mrb[2].mxu1  ;;  %v994_v31 = vpop.f32.mrb[6].mxu0 }
 0x3a8   : > { %v6743_v35 = vpop.f32.mrb[3].mxu1  ;;  %v6748_v36 = vpop.f32.mrb[7].mxu0  ;;  %v1004_v37 = vsel %vm693_vm2, %v918_v29, -inf  ;;  %v1007_v38 = vsel %vm693_vm2, %v994_v31, -inf }
 0x3a9   : > { %1005 = vmax.xlane.f32.xlu0 %v1004_v37 }
 0x3b6   : > { %1491 = vrot.lane.b32.xlu1 %v7434_v30, %s7219_s26 }
 0x3ba   : > { %1494 = vrot.lane.b32.xlu1 %v7434_v30, %s7216_s6 }
 0x3bf   : > { %1488 = vrot.lane.b32.xlu0 %v7434_v30, %s7217_s2 }
 0x3c3   : > { %407 = vrot.lane.b32.xlu0 %v7444_v32, %s7222_s27 }
 0x3c7   : > { %1565 = vrot.lane.b32.xlu0 %v7434_v30, %s7218_s7 }
 0x3de   : > { %1008 = vmax.xlane.f32.xlu1 %v1007_v38 }
 0x3ef   : > { %405 = vrot.lane.b32.xlu1 %v7432_v27, %s7222_s27 }
 0x3f3   : > { %409 = vrot.lane.b32.xlu1 %v7450_v34, %s7222_s27 }
 0x3f7   : > { %411 = vrot.lane.b32.xlu1 %v7448_v33, %s7222_s27 }
 0x432   : > { %v1003_v39 = vpop.xlane.xlu0 %1002  ;;  %v1000_v40 = vpop.xlane.xlu1 %999 }
 0x433   : > { %v1010_v41 = vsub.f32 %v766_v22, %v1000_v40  ;;  %v1011_v48 = vsub.f32 %v842_v23, %v1003_v39 }
 0x435   : > { %v1014_v42 = vmul.f32 1.442695, %v1010_v41  ;;  %v1016_v49 = vmul.f32 1.442695, %v1011_v48 }
 0x436   : > { %v1006_v32 = vpop.xlane.xlu0 %1005  ;;  %v7556_v53 = vpop.permute.xlu1 %1491 }
 0x437   : > { %v1012_v43 = vsub.f32 %v918_v29, %v1006_v32  ;;  %7114 = vpow2.f32 %v1014_v42 }
 0x439   : > { %v1018_v45 = vmul.f32 1.442695, %v1012_v43 }
 0x43a   : > { %v7540_v46 = vpop.permute.xlu0 %1488  ;;  %v7558_v54 = vpop.permute.xlu1 %1494 }
 0x43b   : > { %7116 = vpow2.f32 %v1018_v45  ;;  %1567 = vrot.lane.b32.xlu1 %v7540_v46, %s7218_s7 }
 0x43c   : > { %7118 = vpow2.f32 %v1016_v49 }
 0x43e   : > { %v408_v62 = vpop.permute.xlu0 %407 }
 0x441   : > { %v7544_v27 = vpop.eup %7114 }
 0x442   : > { %v1022_v34 = vsel %vm693_vm2, %v7544_v27, 0.0 }
 0x443   : > { %1023 = vadd.xlane.f32.xlu0 %v1022_v34 }
 0x445   : > { %v7548_v33 = vpop.eup %7116 }
 0x446   : > { %v1028_v47 = vsel %vm693_vm2, %v7548_v33, 0.0  ;;  %v7552_v50 = vpop.eup %7118 }
 0x447   : > { %1029 = vadd.xlane.f32.xlu0 %v1028_v47  ;;  %v1025_v51 = vsel %vm693_vm2, %v7552_v50, 0.0 }
 0x45f   : > { %1026 = vadd.xlane.f32.xlu1 %v1025_v51  ;;  %v1566_v51 = vpop.permute.xlu0 %1565 }
 0x46b   : > { %v1009_v55 = vpop.xlane.xlu1 %1008 }
 0x46c   : > { %v1013_v56 = vsub.f32 %v994_v31, %v1009_v55 }
 0x46e   : > { %v1020_v57 = vmul.f32 1.442695, %v1013_v56 }
 0x46f   : > { %v406_v58 = vpop.permute.xlu1 %405 }
 0x470   : > { %7120 = vpow2.f32 %v1020_v57  ;;  %1571 = vrot.lane.b32.xlu1 %v7558_v54, %s7218_s7 }
 0x473   : > { %v410_v59 = vpop.permute.xlu1 %409 }
 0x474   : > { %v417_v60 = vcombine.low %v406_v58, %v410_v59  ;;  %v418_v61 = vcombine.high %v406_v58, %v410_v59 }
 0x476   : > { %v425_v5 = vrot.slane %v417_v60, %v7460_v44  ;;  %v432_v6 = vrot.slane %v418_v61, %v7460_v44 }
 0x477   : > { %v412_v63 = vpop.permute.xlu1 %411 }
 0x478   : > { %v433_v2 = vcombine.low %v408_v62, %v412_v63  ;;  %v434_v3 = vcombine.high %v408_v62, %v412_v63 }
 0x47a   : > { %v7562_v4 = vpop.eup %7120  ;;  %v441_v7 = vrot.slane %v433_v2, %v7460_v44  ;;  %v448_v8 = vrot.slane %v434_v3, %v7460_v44  ;;  %v1514_v2 = vcombine.high %v7540_v46, %v7558_v54  ;;  %v1497_v3 = vcombine.low %v7434_v30, %v7556_v53 }
 0x47b   : > { %v1031_v9 = vsel %vm693_vm2, %v7562_v4, 0.0 }
 0x47c   : > { %v449_v10 = vcombine.low %v425_v5, %v441_v7  ;;  %v450_v11 = vcombine.high %v425_v5, %v441_v7  ;;  %v465_v12 = vcombine.low %v432_v6, %v448_v8  ;;  %v466_v13 = vcombine.high %v432_v6, %v448_v8  ;;  %1032 = vadd.xlane.f32.xlu0 %v1031_v9 }
 0x47d   : > { %v1528_v6 = vrot.slane %v1514_v2, %v7460_v44  ;;  %v1505_v7 = vrot.slane %v1497_v3, %v7460_v44 }
 0x47e   : > { %v457_v16 = vrot.slane %v449_v10, %v7470_v52  ;;  %v464_v22 = vrot.slane %v450_v11, %v7470_v52  ;;  %v473_v23 = vrot.slane %v465_v12, %v7470_v52  ;;  %v480_v24 = vrot.slane %v466_v13, %v7470_v52 }
 0x480   : > { %v625_v25 = vcombine.low %v457_v16, %v464_v22  ;;  %v6466_v26 = vcombine.high %v457_v16, %v464_v22  ;;  %v641_v28 = vcombine.low %v473_v23, %v480_v24  ;;  %v6467_v29 = vcombine.high %v473_v23, %v480_v24 }
 0x482   : > { %v632_v31 = vrot.slane %v625_v25, %v7460_v44  ;;  %v640_v35 = vrot.slane %v6466_v26, %v7460_v44  ;;  %v648_v36 = vrot.slane %v641_v28, %v7460_v44  ;;  %v656_v37 = vrot.slane %v6467_v29, %v7460_v44 }
 0x484   : > { %v657_v38 = vcombine.low %v632_v31, %v640_v35  ;;  %v673_v39 = vcombine.low %v648_v36, %v656_v37  ;;  %v658_v40 = vcombine.high %v632_v31, %v640_v35  ;;  %v674_v41 = vcombine.high %v648_v36, %v656_v37 }
 0x486   : > { %v665_v42 = vrot.slane %v657_v38, %v7470_v52  ;;  %v681_v32 = vrot.slane %v673_v39, %v7470_v52  ;;  %v672_v43 = vrot.slane %v658_v40, %v7470_v52  ;;  %v688_v45 = vrot.slane %v674_v41, %v7470_v52 }
 0x488   : > { %v689_v34 = vcombine.low %v665_v42, %v681_v32  ;;  %v690_v47 = vcombine.high %v665_v42, %v681_v32  ;;  %v691_v48 = vcombine.low %v672_v43, %v688_v45  ;;  %v692_v49 = vcombine.high %v672_v43, %v688_v45 }
 0x48a   : > { %6750 = vmatpush3.msra.mxu1 %v689_v34  ;;  %6755 = vmatpush3.msra.mxu0 %v690_v47 }
 0x48b   : > { %6759 = vmatprep.subr.mxu1 %v7214_v21  ;;  %6764 = vmatprep.subr.mxu0 %v7214_v21 }
 0x492   : > { %1569 = vrot.lane.b32.xlu0 %v7556_v53, %s7218_s7 }
 0x4ad   : > { %v1568_v61 = vpop.permute.xlu1 %1567 }
 0x4d0   : > { %v1024_v55 = vpop.xlane.xlu0 %1023 }
 0x4d1   : > { %7122 = vrcp.f32 %v1024_v55 }
 0x4d4   : > { %v1030_v56 = vpop.xlane.xlu0 %1029 }
 0x4d5   : > { %7124 = vrcp.f32 %v1030_v56 }
 0x4db   : > { %v7123_v57 = vpop.eup %7122 }
 0x4dc   : > { %v1035_v58 = vmul.f32 %v7123_v57, %v7544_v27 }
 0x4de   : > { %6752 = vmatmul.mubr.msk.f32.vlgmr.msra.gmra.mrb[4].mxu1 %vm693_vm2, %v1035_v58 }
 0x4df   : > { %v7125_v59 = vpop.eup %7124  ;;  %6760 = vmatpush3.msra.mxu1 %v691_v48  ;;  %6761 = vmatprep.mubr.msk.f32.mxu1 %vm7215_vm1, %v7214_v21 }
 0x4e0   : > { %v1039_v60 = vmul.f32 %v7125_v59, %v7548_v33  ;;  %6769 = vmatprep.subr.mxu1 %v7214_v21  ;;  %v1513_v33 = vcombine.low %v7540_v46, %v7558_v54 }
 0x4e2   : > { %6762 = vmatmul.mubr.msk.f32.vlgmr.msra.gmra.mrb[6].mxu1 %vm693_vm2, %v1039_v60  ;;  %v1521_v5 = vrot.slane %v1513_v33, %v7460_v44 }
 0x4e3   : > { %6771 = vmatprep.mubr.msk.f32.mxu1 %vm7215_vm1, %v7214_v21 }
 0x4e4   : > { %v1529_v9 = vcombine.low %v1505_v7, %v1521_v5  ;;  %v1530_v10 = vcombine.high %v1505_v7, %v1521_v5 }
 0x4e6   : > { %v1537_v13 = vrot.slane %v1529_v9, %v7470_v52  ;;  %v1544_v16 = vrot.slane %v1530_v10, %v7470_v52 }
 0x4e8   : > { %v1725_v29 = vcombine.low %v1537_v13, %v1544_v16  ;;  %v6482_v31 = vcombine.high %v1537_v13, %v1544_v16 }
 0x4ea   : > { %v1732_v43 = vrot.slane %v1725_v29, %v7460_v44  ;;  %v1740_v45 = vrot.slane %v6482_v31, %v7460_v44 }
 0x4ec   : > { %v1027_v62 = vpop.xlane.xlu1 %1026  ;;  %v1758_v9 = vcombine.high %v1732_v43, %v1740_v45 }
 0x4ed   : > { %7126 = vrcp.f32 %v1027_v62  ;;  %v1757_v62 = vcombine.low %v1732_v43, %v1740_v45 }
 0x4f0   : > { %v1572_v24 = vpop.permute.xlu1 %1571 }
 0x4f1   : > { %v1593_v26 = vcombine.low %v1568_v61, %v1572_v24  ;;  %v1594_v28 = vcombine.high %v1568_v61, %v1572_v24 }
 0x4f3   : > { %v1601_v40 = vrot.slane %v1593_v26, %v7460_v44  ;;  %v1608_v41 = vrot.slane %v1594_v28, %v7460_v44  ;;  %v1772_v26 = vrot.slane %v1758_v9, %v7470_v52 }
 0x4f7   : > { %v7127_v27 = vpop.eup %7126 }
 0x4f8   : > { %v1037_v63 = vmul.f32 %v7127_v27, %v7552_v50  ;;  %v1498_v50 = vcombine.high %v7434_v30, %v7556_v53 }
 0x4fa   : > { %6757 = vmatmul.mubr.msk.f32.vlgmr.msra.gmra.mrb[8].mxu0 %vm693_vm2, %v1037_v63  ;;  %v1512_v8 = vrot.slane %v1498_v50, %v7460_v44 }
 0x4fb   : > { %6765 = vmatpush3.msra.mxu0 %v692_v49  ;;  %6766 = vmatprep.mubr.msk.f32.mxu0 %vm7215_vm1, %v7214_v21 }
 0x4fc   : > { %6774 = vmatprep.subr.mxu0 %v7214_v21  ;;  %v1545_v11 = vcombine.low %v1512_v8, %v1528_v6  ;;  %v1546_v12 = vcombine.high %v1512_v8, %v1528_v6 }
 0x4fe   : > { %v1553_v22 = vrot.slane %v1545_v11, %v7470_v52  ;;  %v1560_v23 = vrot.slane %v1546_v12, %v7470_v52 }
 0x500   : > { %v1741_v35 = vcombine.low %v1553_v22, %v1560_v23  ;;  %v6483_v36 = vcombine.high %v1553_v22, %v1560_v23 }
 0x502   : > { %v1748_v34 = vrot.slane %v1741_v35, %v7460_v44  ;;  %v1756_v47 = vrot.slane %v6483_v36, %v7460_v44 }
 0x504   : > { %v1773_v27 = vcombine.low %v1748_v34, %v1756_v47  ;;  %v1774_v10 = vcombine.high %v1748_v34, %v1756_v47 }
 0x506   : > { %v1781_v8 = vrot.slane %v1773_v27, %v7470_v52  ;;  %v1788_v28 = vrot.slane %v1774_v10, %v7470_v52 }
 0x509   : > { %v1033_v25 = vpop.xlane.xlu0 %1032 }
 0x50a   : > { %7128 = vrcp.f32 %v1033_v25 }
 0x50d   : > { %v1570_v37 = vpop.permute.xlu0 %1569 }
 0x50e   : > { %v1577_v38 = vcombine.low %v1566_v51, %v1570_v37  ;;  %v1578_v39 = vcombine.high %v1566_v51, %v1570_v37 }
 0x510   : > { %v1585_v42 = vrot.slane %v1577_v38, %v7460_v44  ;;  %v1592_v32 = vrot.slane %v1578_v39, %v7460_v44  ;;  %v1791_v39 = vcombine.low %v1772_v26, %v1788_v28 }
 0x512   : > { %v1609_v48 = vcombine.low %v1585_v42, %v1601_v40  ;;  %v1610_v49 = vcombine.high %v1585_v42, %v1601_v40  ;;  %v1625_v55 = vcombine.low %v1592_v32, %v1608_v41  ;;  %v1626_v51 = vcombine.high %v1592_v32, %v1608_v41 }
 0x513   : > { %v1792_v40 = vcombine.high %v1772_v26, %v1788_v28  ;;  %v1795_v32 = vmul.f32 0.35355338, %v1791_v39 }
 0x514   : > { %v7129_v56 = vpop.eup %7128  ;;  %v1617_v57 = vrot.slane %v1609_v48, %v7470_v52  ;;  %v1624_v58 = vrot.slane %v1610_v49, %v7470_v52  ;;  %v1633_v59 = vrot.slane %v1625_v55, %v7470_v52  ;;  %v1640_v60 = vrot.slane %v1626_v51, %v7470_v52 }
 0x515   : > { %v1041_v61 = vmul.f32 %v7129_v56, %v7562_v4  ;;  %v1765_v4 = vrot.slane %v1757_v62, %v7470_v52  ;;  %v1796_v43 = vmul.f32 0.35355338, %v1792_v40 }
 0x516   : > { %v1797_v63 = vcombine.low %v1617_v57, %v1624_v58  ;;  %v6484_v33 = vcombine.high %v1617_v57, %v1624_v58  ;;  %v1813_v2 = vcombine.low %v1633_v59, %v1640_v60  ;;  %v6485_v3 = vcombine.high %v1633_v59, %v1640_v60 }
 0x517   : > { %6767 = vmatmul.mubr.msk.f32.vlgmr.msra.gmra.mrb[10].mxu0 %vm693_vm2, %v1041_v61  ;;  %v1789_v24 = vcombine.low %v1765_v4, %v1781_v8  ;;  %v1790_v25 = vcombine.high %v1765_v4, %v1781_v8 }
 0x518   : > { %v1804_v50 = vrot.slane %v1797_v63, %v7460_v44  ;;  %v1812_v5 = vrot.slane %v6484_v33, %v7460_v44  ;;  %v1820_v6 = vrot.slane %v1813_v2, %v7460_v44  ;;  %v1828_v7 = vrot.slane %v6485_v3, %v7460_v44  ;;  %6776 = vmatprep.mubr.msk.f32.mxu0 %vm7215_vm1, %v7214_v21 }
 0x519   : > { %v1793_v37 = vmul.f32 0.35355338, %v1789_v24  ;;  %v1794_v38 = vmul.f32 0.35355338, %v1790_v25 }
 0x51a   : > { %v1829_v11 = vcombine.low %v1804_v50, %v1812_v5  ;;  %v1830_v12 = vcombine.high %v1804_v50, %v1812_v5  ;;  %v1845_v13 = vcombine.low %v1820_v6, %v1828_v7  ;;  %v1846_v16 = vcombine.high %v1820_v6, %v1828_v7 }
 0x51c   : > { %v1837_v22 = vrot.slane %v1829_v11, %v7470_v52  ;;  %v1853_v23 = vrot.slane %v1845_v13, %v7470_v52  ;;  %v1844_v35 = vrot.slane %v1830_v12, %v7470_v52  ;;  %v1860_v36 = vrot.slane %v1846_v16, %v7470_v52 }
 0x51e   : > { %v1861_v29 = vcombine.low %v1837_v22, %v1853_v23  ;;  %v1862_v31 = vcombine.high %v1837_v22, %v1853_v23  ;;  %v1863_v41 = vcombine.low %v1844_v35, %v1860_v36  ;;  %v1864_v42 = vcombine.high %v1844_v35, %v1860_v36 }
 0x520   : > { %6770 = vmatpush3.xpose.msk.msra.mxu1 %vm693_vm2, %v1861_v29  ;;  %6775 = vmatpush3.xpose.msk.msra.mxu0 %vm693_vm2, %v1862_v31 }
 0x521   : > { %6779 = vmatprep.subr.mxu1 %v7214_v21  ;;  %6784 = vmatprep.subr.mxu0 %v7214_v21 }
 0x523   : > { %6772 = vmatmul.mubr.msk.f32.vlgmr.msra.gmra.mrb[8].mxu1 %vm693_vm2, %v1793_v37  ;;  %6777 = vmatmul.mubr.msk.f32.vlgmr.msra.gmra.mrb[12].mxu0 %vm693_vm2, %v1794_v38 }
 0x524   : > { %6780 = vmatpush3.xpose.msk.msra.mxu1 %vm693_vm2, %v1863_v41  ;;  %6785 = vmatpush3.xpose.msk.msra.mxu0 %vm693_vm2, %v1864_v42 }
 0x525   : > { %6781 = vmatprep.mubr.msk.f32.mxu1 %vm7215_vm1, %v7214_v21  ;;  %6786 = vmatprep.mubr.msk.f32.mxu0 %vm7215_vm1, %v7214_v21 }
 0x526   : > { %6789 = vmatprep.subr.mxu1 %v7214_v21  ;;  %6794 = vmatprep.subr.mxu0 %v7214_v21 }
 0x527   : > { %6782 = vmatmul.mubr.msk.f32.vlgmr.msra.gmra.mrb[10].mxu1 %vm693_vm2, %v1795_v32  ;;  %6787 = vmatmul.mubr.msk.f32.vlgmr.msra.gmra.mrb[14].mxu0 %vm693_vm2, %v1796_v43 }
 0x528   : > { %6791 = vmatprep.mubr.msk.f32.mxu1 %vm7215_vm1, %v7214_v21  ;;  %6796 = vmatprep.mubr.msk.f32.mxu0 %vm7215_vm1, %v7214_v21 }
 0x5b1   : > { %v1111_v45 = vpop.f32.mrb[4].mxu1 }
 0x5b2   : > { %v6753_v34 = vpop.f32.mrb[5].mxu1 }
 0x5b5   : > { %v1257_v47 = vpop.f32.mrb[6].mxu1 }
 0x5b6   : > { %v1334_v48 = vcombine.low %v1111_v45, %v1257_v47  ;;  %v1335_v49 = vcombine.high %v1111_v45, %v1257_v47  ;;  %v6763_v55 = vpop.f32.mrb[7].mxu1 }
 0x5b8   : > { %v1342_v61 = vrot.slane %v1334_v48, %v7460_v44  ;;  %v1349_v62 = vrot.slane %v1335_v49, %v7460_v44 }
 0x5cd   : > { %v1184_v51 = vpop.f32.mrb[8].mxu0 }
 0x5ce   : > { %v6758_v56 = vpop.f32.mrb[9].mxu0 }
 0x5ea   : > { %v1330_v57 = vpop.f32.mrb[10].mxu0 }
 0x5eb   : > { %v1350_v58 = vcombine.low %v1184_v51, %v1330_v57  ;;  %v1351_v59 = vcombine.high %v1184_v51, %v1330_v57  ;;  %v6768_v60 = vpop.f32.mrb[11].mxu0 }
 0x5ed   : > { %v1358_v27 = vrot.slane %v1350_v58, %v7460_v44  ;;  %v1365_v63 = vrot.slane %v1351_v59, %v7460_v44 }
 0x5ef   : > { %v1366_v33 = vcombine.low %v1342_v61, %v1358_v27  ;;  %v1367_v2 = vcombine.high %v1342_v61, %v1358_v27  ;;  %v1382_v3 = vcombine.low %v1349_v62, %v1365_v63  ;;  %v1383_v50 = vcombine.high %v1349_v62, %v1365_v63 }
 0x5f1   : > { %v1374_v5 = vrot.slane %v1366_v33, %v7470_v52  ;;  %v1381_v6 = vrot.slane %v1367_v2, %v7470_v52  ;;  %v1390_v7 = vrot.slane %v1382_v3, %v7470_v52  ;;  %v1397_v4 = vrot.slane %v1383_v50, %v7470_v52 }
 0x5f3   : > { %v1402_v8 = vcombine.low %v1374_v5, %v1381_v6  ;;  %v6480_v9 = vcombine.high %v1374_v5, %v1381_v6  ;;  %v1418_v10 = vcombine.low %v1390_v7, %v1397_v4  ;;  %v6481_v11 = vcombine.high %v1390_v7, %v1397_v4 }
 0x5f5   : > { %v1409_v12 = vrot.slane %v1402_v8, %v7460_v44  ;;  %v1417_v13 = vrot.slane %v6480_v9, %v7460_v44  ;;  %v1425_v16 = vrot.slane %v1418_v10, %v7460_v44  ;;  %v1433_v22 = vrot.slane %v6481_v11, %v7460_v44 }
 0x5f6   : > { %v2005_v23 = vpop.f32.mrb[8].mxu1  ;;  %v2081_v24 = vpop.f32.mrb[12].mxu0 }
 0x5f7   : > { %v6773_v25 = vpop.f32.mrb[9].mxu1  ;;  %v6778_v26 = vpop.f32.mrb[13].mxu0  ;;  %v2237_v28 = vsel %vm693_vm2, %v2005_v23, -inf  ;;  %v2240_v29 = vsel %vm693_vm2, %v2081_v24, -inf  ;;  %v1435_v31 = vcombine.high %v1409_v12, %v1417_v13  ;;  %v1451_v35 = vcombine.high %v1425_v16, %v1433_v22 }
 0x5f8   : > { %2238 = vmax.xlane.f32.xlu0 %v2237_v28  ;;  %2241 = vmax.xlane.f32.xlu1 %v2240_v29  ;;  %v1434_v36 = vcombine.low %v1409_v12, %v1417_v13  ;;  %v1450_v37 = vcombine.low %v1425_v16, %v1433_v22 }
 0x5f9   : > { %v7679_v38 = vrot.slane %v1435_v31, %v7470_v52  ;;  %v7682_v39 = vrot.slane %v1451_v35, %v7470_v52 }
 0x5fa   : > { %v2157_v40 = vpop.f32.mrb[10].mxu1  ;;  %v2233_v41 = vpop.f32.mrb[14].mxu0  ;;  %v7685_v42 = vrot.slane %v1434_v36, %v7470_v52  ;;  %v7688_v32 = vrot.slane %v1450_v37, %v7470_v52 }
 0x5fb   : > { %v6783_v43 = vpop.f32.mrb[11].mxu1  ;;  %v6788_v45 = vpop.f32.mrb[15].mxu0  ;;  %v2243_v34 = vsel %vm693_vm2, %v2157_v40, -inf  ;;  %v1468_v47 = vcombine.low %v7679_v38, %v7682_v39  ;;  %v1469_v48 = vcombine.high %v7679_v38, %v7682_v39  ;;  %v2246_v51 = vsel %vm693_vm2, %v2233_v41, -inf }
 0x5fc   : > { %2244 = vmax.xlane.f32.xlu0 %v2243_v34  ;;  %v1466_v49 = vcombine.low %v7685_v42, %v7688_v32  ;;  %v1467_v55 = vcombine.high %v7685_v42, %v7688_v32 }
 0x600   : > { %2247 = vmax.xlane.f32.xlu0 %v2246_v51 }
 0x609   : > { %1645 = vrot.lane.b32.xlu1 %v7434_v30, %s7222_s27 }
 0x685   : > { %v2239_v56 = vpop.xlane.xlu0 %2238  ;;  %v2242_v57 = vpop.xlane.xlu1 %2241 }
 0x686   : > { %v2249_v58 = vsub.f32 %v2005_v23, %v2239_v56  ;;  %v2250_v59 = vsub.f32 %v2081_v24, %v2242_v57 }
 0x688   : > { %v2253_v60 = vmul.f32 1.442695, %v2249_v58  ;;  %v2255_v61 = vmul.f32 1.442695, %v2250_v59 }
 0x689   : > { %v2245_v62 = vpop.xlane.xlu0 %2244  ;;  %v1646_v10 = vpop.permute.xlu1 %1645 }
 0x68a   : > { %7130 = vpow2.f32 %v2253_v60  ;;  %v2251_v27 = vsub.f32 %v2157_v40, %v2245_v62 }
 0x68b   : > { %7132 = vpow2.f32 %v2255_v61 }
 0x68c   : > { %v2257_v63 = vmul.f32 1.442695, %v2251_v27 }
 0x68d   : > { %v2248_v33 = vpop.xlane.xlu0 %2247 }
 0x68e   : > { %7134 = vpow2.f32 %v2257_v63  ;;  %v2252_v2 = vsub.f32 %v2233_v41, %v2248_v33 }
 0x690   : > { %v2259_v3 = vmul.f32 1.442695, %v2252_v2 }
 0x692   : > { %7136 = vpow2.f32 %v2259_v3 }
 0x694   : > { %v7702_v50 = vpop.eup %7130 }
 0x695   : > { %v7704_v5 = vpop.eup %7132  ;;  %v2261_v30 = vsel %vm693_vm2, %v7702_v50, 0.0 }
 0x696   : > { %2262 = vadd.xlane.f32.xlu1 %v2261_v30  ;;  %v2264_v6 = vsel %vm693_vm2, %v7704_v5, 0.0 }
 0x697   : > { %2265 = vadd.xlane.f32.xlu0 %v2264_v6 }
 0x698   : > { %v7710_v7 = vpop.eup %7134 }
 0x699   : > { %v2267_v4 = vsel %vm693_vm2, %v7710_v7, 0.0 }
 0x69a   : > { %2268 = vadd.xlane.f32.xlu1 %v2267_v4 }
 0x69c   : > { %v7714_v8 = vpop.eup %7136 }
 0x69d   : > { %v2270_v9 = vsel %vm693_vm2, %v7714_v8, 0.0 }
 0x69e   : > { %2271 = vadd.xlane.f32.xlu0 %v2270_v9 }
 0x6ab   : > { %1649 = vrot.lane.b32.xlu1 %v7556_v53, %s7222_s27 }
 0x6af   : > { %1651 = vrot.lane.b32.xlu1 %v7558_v54, %s7222_s27 }
 0x6b4   : > { %1647 = vrot.lane.b32.xlu0 %v7540_v46, %s7222_s27  ;;  %s2731_s27 = scalar_lea.vmem %s8529_s10, %s7212_s1  ;;  %s8531_s10 = sld [smem:[#allocation8_spill]] }
 0x6b5   : > { %v6503_v42 = vld [vmem:[%s2731_s27] ss:$0 sm:$0xff] }
 0x6ba   : > { %s2846_s27 = scalar_lea.vmem %s8531_s10, %s7412_s3  ;;  %s6199_s10 = scalar_lea.vmem %s8500_s14, %s7412_s3 }
 0x723   : > { %v2263_v11 = vpop.xlane.xlu1 %2262 }
 0x724   : > { %v2266_v12 = vpop.xlane.xlu0 %2265  ;;  %7138 = vrcp.f32 %v2263_v11 }
 0x725   : > { %7140 = vrcp.f32 %v2266_v12 }
 0x727   : > { %v2269_v13 = vpop.xlane.xlu1 %2268 }
 0x728   : > { %7142 = vrcp.f32 %v2269_v13 }
 0x72b   : > { %v1650_v16 = vpop.permute.xlu1 %1649  ;;  %v2272_v22 = vpop.xlane.xlu0 %2271 }
 0x72c   : > { %v1657_v23 = vcombine.low %v1646_v10, %v1650_v16  ;;  %v1658_v24 = vcombine.high %v1646_v10, %v1650_v16  ;;  %7144 = vrcp.f32 %v2272_v22 }
 0x72e   : > { %v1665_v53 = vrot.slane %v1657_v23, %v7460_v44  ;;  %v1672_v54 = vrot.slane %v1658_v24, %v7460_v44  ;;  %v7139_v27 = vpop.eup %7138 }
 0x72f   : > { %v1652_v25 = vpop.permute.xlu1 %1651  ;;  %v1648_v26 = vpop.permute.xlu0 %1647  ;;  %v2274_v22 = vmul.f32 %v7139_v27, %v7702_v50 }
 0x730   : > { %v1673_v28 = vcombine.low %v1648_v26, %v1652_v25  ;;  %v1674_v29 = vcombine.high %v1648_v26, %v1652_v25  ;;  %v7141_v30 = vpop.eup %7140 }
 0x731   : > { %v2276_v23 = vmul.f32 %v7141_v30, %v7704_v5 }
 0x732   : > { %v1681_v31 = vrot.slane %v1673_v28, %v7460_v44  ;;  %v1688_v46 = vrot.slane %v1674_v29, %v7460_v44  ;;  %v7143_v9 = vpop.eup %7142 }
 0x733   : > { %v2278_v26 = vmul.f32 %v7143_v9, %v7710_v7 }
 0x734   : > { %v1689_v35 = vcombine.low %v1665_v53, %v1681_v31  ;;  %v1690_v36 = vcombine.high %v1665_v53, %v1681_v31  ;;  %v1705_v37 = vcombine.low %v1672_v54, %v1688_v46  ;;  %v1706_v40 = vcombine.high %v1672_v54, %v1688_v46 }
 0x736   : > { %v1697_v41 = vrot.slane %v1689_v35, %v7470_v52  ;;  %v1704_v43 = vrot.slane %v1690_v36, %v7470_v52  ;;  %v1713_v45 = vrot.slane %v1705_v37, %v7470_v52  ;;  %v1720_v34 = vrot.slane %v1706_v40, %v7470_v52  ;;  %v7145_v16 = vpop.eup %7144 }
 0x737   : > { %v2280_v28 = vmul.f32 %v7145_v16, %v7714_v8 }
 0x738   : > { %v1865_v51 = vcombine.low %v1697_v41, %v1704_v43  ;;  %v6486_v56 = vcombine.high %v1697_v41, %v1704_v43  ;;  %v1881_v57 = vcombine.low %v1713_v45, %v1720_v34  ;;  %v6487_v58 = vcombine.high %v1713_v45, %v1720_v34 }
 0x73a   : > { %v1872_v59 = vrot.slane %v1865_v51, %v7460_v44  ;;  %v1880_v60 = vrot.slane %v6486_v56, %v7460_v44  ;;  %v1888_v61 = vrot.slane %v1881_v57, %v7460_v44  ;;  %v1896_v62 = vrot.slane %v6487_v58, %v7460_v44 }
 0x73c   : > { %v1897_v63 = vcombine.low %v1872_v59, %v1880_v60  ;;  %v1913_v33 = vcombine.low %v1888_v61, %v1896_v62  ;;  %v1898_v2 = vcombine.high %v1872_v59, %v1880_v60  ;;  %v1914_v3 = vcombine.high %v1888_v61, %v1896_v62 }
 0x73e   : > { %v1905_v6 = vrot.slane %v1897_v63, %v7470_v52  ;;  %v1921_v4 = vrot.slane %v1913_v33, %v7470_v52  ;;  %v1912_v10 = vrot.slane %v1898_v2, %v7470_v52  ;;  %v1928_v11 = vrot.slane %v1914_v3, %v7470_v52 }
 0x740   : > { %v1929_v12 = vcombine.low %v1905_v6, %v1921_v4  ;;  %v1930_v13 = vcombine.high %v1905_v6, %v1921_v4  ;;  %v1931_v24 = vcombine.low %v1912_v10, %v1928_v11  ;;  %v1932_v25 = vcombine.high %v1912_v10, %v1928_v11  ;;  %v7100_v4 = vld [vmem:[%s2726_s29] sm:$0xff]  }
 0x742   : > { %6790 = vmatpush3.msra.mxu1 %v1929_v12  ;;  %6795 = vmatpush3.msra.mxu0 %v1930_v13 }
 0x743   : > { %6792 = vmatmul.mubr.msk.f32.vlgmr.msra.gmra.mrb[12].mxu1 %vm693_vm2, %v2274_v22  ;;  %6797 = vmatmul.mubr.msk.f32.vlgmr.msra.gmra.mrb[16].mxu0 %vm693_vm2, %v2276_v23 }
 0x744   : > { %6799 = vmatprep.subr.mxu1 %v7214_v21  ;;  %6804 = vmatprep.subr.mxu0 %v7214_v21 }
 0x745   : > { %6800 = vmatpush3.msra.mxu1 %v1931_v24  ;;  %6805 = vmatpush3.msra.mxu0 %v1932_v25  ;;  %v7101_v24 = vld [vmem:[%s2726_s29 + $0x8] sm:$0xff]   ;;  %s2916_s29 = scalar_lea.vmem %s8530_s4, %s7412_s3  ;;  %s2921_s4 = scalar_lea.vmem %s8497_s11, %s7212_s1 }
 0x746   : > { %6801 = vmatprep.mubr.msk.f32.mxu1 %vm7215_vm1, %v7214_v21  ;;  %6806 = vmatprep.mubr.msk.f32.mxu0 %vm7215_vm1, %v7214_v21 }
 0x747   : > { %6802 = vmatmul.mubr.msk.f32.vlgmr.msra.gmra.mrb[14].mxu1 %vm693_vm2, %v2278_v26  ;;  %6807 = vmatmul.mubr.msk.f32.vlgmr.msra.gmra.mrb[18].mxu0 %vm693_vm2, %v2280_v28 }
 0x748   : > { %6809 = vmatprep.subr.bf16.mxu1 %v7214_v21  ;;  %6813 = vmatprep.mubr.msk.bf16.mxu1 %vm7215_vm1, %v7214_v21 }
 0x749   : > { %6817 = vmatprep.subr.bf16.mxu0 %v7214_v21  ;;  %6821 = vmatprep.mubr.msk.bf16.mxu0 %vm7215_vm1, %v7214_v21 }
 0x74a   : > { %6810 = vmatpush3.bf16.msra.mxu1 %v7100_v4 }
 0x74b   : > { %6811 = vmatprep.subr.bf16.mxu1 %v7214_v21 }
 0x74e   : > { %6812 = vmatpush3.bf16.msra.mxu1 %v7101_v24 }
 0x816   : > { %v2350_v50 = vpop.f32.mrb[12].mxu1  ;;  %v2423_v5 = vpop.f32.mrb[16].mxu0 }
 0x817   : > { %v6793_v7 = vpop.f32.mrb[13].mxu1  ;;  %v6798_v8 = vpop.f32.mrb[17].mxu0 }
 0x81a   : > { %v2496_v29 = vpop.f32.mrb[14].mxu1  ;;  %v2569_v53 = vpop.f32.mrb[18].mxu0 }
 0x81b   : > { %v2573_v54 = vcombine.low %v2350_v50, %v2496_v29  ;;  %v2574_v31 = vcombine.high %v2350_v50, %v2496_v29  ;;  %v2589_v46 = vcombine.low %v2423_v5, %v2569_v53  ;;  %v2590_v35 = vcombine.high %v2423_v5, %v2569_v53  ;;  %v6803_v36 = vpop.f32.mrb[15].mxu1  ;;  %v6808_v37 = vpop.f32.mrb[19].mxu0 }
 0x81d   : > { %v2581_v40 = vrot.slane %v2573_v54, %v7460_v44  ;;  %v2588_v41 = vrot.slane %v2574_v31, %v7460_v44  ;;  %v2597_v43 = vrot.slane %v2589_v46, %v7460_v44  ;;  %v2604_v45 = vrot.slane %v2590_v35, %v7460_v44 }
 0x81f   : > { %v2605_v34 = vcombine.low %v2581_v40, %v2597_v43  ;;  %v2606_v51 = vcombine.high %v2581_v40, %v2597_v43  ;;  %v2621_v56 = vcombine.low %v2588_v41, %v2604_v45  ;;  %v2622_v57 = vcombine.high %v2588_v41, %v2604_v45 }
 0x821   : > { %v2613_v58 = vrot.slane %v2605_v34, %v7470_v52  ;;  %v2620_v59 = vrot.slane %v2606_v51, %v7470_v52  ;;  %v2629_v60 = vrot.slane %v2621_v56, %v7470_v52  ;;  %v2636_v61 = vrot.slane %v2622_v57, %v7470_v52 }
 0x823   : > { %v2641_v62 = vcombine.low %v2613_v58, %v2620_v59  ;;  %v6500_v27 = vcombine.high %v2613_v58, %v2620_v59  ;;  %v2657_v63 = vcombine.low %v2629_v60, %v2636_v61  ;;  %v6501_v33 = vcombine.high %v2629_v60, %v2636_v61  ;;  %v7102_v61 = vld [vmem:[%s2916_s29] sm:$0xff]  }
 0x824   : > { %6825 = vmatprep.subr.bf16.mxu1 %v7102_v61 }
 0x825   : > { %v2648_v2 = vrot.slane %v2641_v62, %v7460_v44  ;;  %v2656_v3 = vrot.slane %v6500_v27, %v7460_v44  ;;  %v2664_v30 = vrot.slane %v2657_v63, %v7460_v44  ;;  %v2672_v6 = vrot.slane %v6501_v33, %v7460_v44  ;;  %v7103_v62 = vld [vmem:[%s2916_s29 + $0x8] sm:$0xff]   ;;  %s8534_s29 = sld [smem:[#allocation9_spill]] }
 0x827   : > { %v2674_v9 = vcombine.high %v2648_v2, %v2656_v3  ;;  %v2690_v10 = vcombine.high %v2664_v30, %v2672_v6  ;;  %v2673_v11 = vcombine.low %v2648_v2, %v2656_v3  ;;  %v2689_v12 = vcombine.low %v2664_v30, %v2672_v6 }
 0x829   : > { %v2688_v13 = vrot.slane %v2674_v9, %v7470_v52  ;;  %v2704_v16 = vrot.slane %v2690_v10, %v7470_v52  ;;  %v2681_v22 = vrot.slane %v2673_v11, %v7470_v52  ;;  %v2697_v23 = vrot.slane %v2689_v12, %v7470_v52  ;;  %v7104_v9 = vld [vmem:[%s2846_s27] sm:$0xff]   ;;  %v7105_v10 = vld [vmem:[%s2846_s27 + $0x8] sm:$0xff]   ;;  %s6604_s27 = sshll.u32 %s7212_s1, 5 }
 0x82a   : > { %6818 = vmatpush3.bf16.msra.mxu0 %v7104_v9  ;;  %v6515_v11 = vld [vmem:[%s2921_s4] ss:$0 sm:$0xff]  ;;  %s8435_s4 = scalar_lea.vmem %s8502_s16, %s6604_s27 }
 0x82b   : > { %v2707_v25 = vcombine.low %v2688_v13, %v2704_v16  ;;  %v2706_v26 = vcombine.high %v2681_v22, %v2697_v23  ;;  %v2705_v28 = vcombine.low %v2681_v22, %v2697_v23  ;;  %v2708_v50 = vcombine.high %v2688_v13, %v2704_v16  ;;  %6819 = vmatprep.subr.bf16.mxu0 %v7214_v21  ;;  %s2851_s5 = scalar_lea.vmem %s8534_s29, %s7212_s1  ;;  %s6363_s29 = scalar_lea.vmem %s8509_s23, %s7212_s1 }
 0x82d   : > { %v7073_v5 = vpack.i.bf16 %v2707_v25, %v1468_v47  ;;  %v7068_v7 = vpack.i.bf16 %v2706_v26, %v1467_v55  ;;  %v7078_v8 = vpack.i.bf16 %v2708_v50, %v1469_v48 }
 0x82e   : > { %6820 = vmatpush3.bf16.msra.mxu0 %v7105_v10 }
 0x82f   : > { %7074 = vrot.lane.b32.xlu1 %v7073_v5, %s7223_s0  ;;  %7069 = vrot.lane.b32.xlu0 %v7068_v7, %s7224_s9 }
 0x833   : > { %7079 = vrot.lane.b32.xlu0 %v7078_v8, %s7225_s30 }
 0x8a1   : > { %v7075_v29 = vpop.permute.xlu1 %7074  ;;  %v7070_v53 = vpop.permute.xlu0 %7069 }
 0x8a2   : > { %v7072_v47 = vunpack.i.h.bf16 %v7070_v53  ;;  %v7071_v54 = vunpack.i.l.bf16 %v7070_v53  ;;  %v7077_v31 = vunpack.i.h.bf16 %v7075_v29  ;;  %v7076_v55 = vunpack.i.l.bf16 %v7075_v29 }
 0x8a4   : > { %v1482_v38 = vsel %vm693_vm2, %v1466_v49, %v7071_v54  ;;  %v2721_v39 = vsel %vm693_vm2, %v2705_v28, %v7072_v47  ;;  %v6507_v47 = vld [vmem:[%s2797_s25] ss:$0 sm:$0xff] }
 0x8a5   : > { %v7080_v48 = vpop.permute.xlu0 %7079  ;;  %v1484_v36 = vsel %vm1483_vm3, %v1482_v38, %v7076_v55  ;;  %v2722_v37 = vsel %vm1483_vm3, %v2721_v39, %v7077_v31  ;;  %v6508_v39 = vld [vmem:[%s2799_s28] ss:$0 sm:$0xff] }
 0x8a6   : > { %v7082_v46 = vunpack.i.h.bf16 %v7080_v48  ;;  %v7081_v35 = vunpack.i.l.bf16 %v7080_v48 }
 0x8a8   : > { %v1486_v40 = vsel %vm1485_vm4, %v1484_v36, %v7081_v35  ;;  %v2723_v41 = vsel %vm1485_vm4, %v2722_v37, %v7082_v46 }
 0x8a9   : > { %v2724_v43 = vpack.c.bf16 %v2723_v41, %v1486_v40 }
 0x8ab   : > { %6814 = vmatmul.mubr.msk.bf16.vlgmr.msra.gmra.mrb[16].mxu1 %vm109_vm0, %v2724_v43 }
 0x8ac   : > { %6829 = vmatprep.mubr.msk.bf16.mxu1 %vm109_vm0, %v165_v20  ;;  %6826 = vmatpush3.bf16.msra.mxu1 %v7102_v61 }
 0x8ad   : > { %6827 = vmatprep.subr.bf16.mxu1 %v7103_v62 }
 0x8b0   : > { %6828 = vmatpush3.bf16.msra.mxu1 %v7103_v62 }
 0x8b3   : > { %6830 = vmatmul.mubr.msk.bf16.vlgmr.msra.gmra.mrb[20].mxu1 %vm109_vm0, %v166_v19 }
 0x8b4   : > { %6844 = vmatprep.mubr.msk.f32.mxu1 %vm7215_vm1, %v7214_v21 }
 0x97e   : > { %v2788_v32 = vpop.f32.mrb[16].mxu1 }
 0x97f   : > { %v2789_v49 = vadd.f32 %v6503_v42, %v2788_v32  ;;  %v6815_v45 = vpop.f32.mrb[17].mxu1 }
 0x980   : > { %v2791_v34 = vpop.f32.mrb[18].mxu1 }
 0x981   : > { %v2792_v51 = vadd.f32 %v6503_v42, %v2791_v34  ;;  %v6816_v56 = vpop.f32.mrb[19].mxu1  ;;  %v2795_v57 = vadd.f32 %v7208_v0, %v2789_v49 }
 0x983   : > { %v2801_v58 = vsel %vm109_vm0, %v2795_v57, 0.0  ;;  %v2796_v59 = vadd.f32 %v7204_v1, %v2792_v51 }
 0x984   : > { %2802 = vadd.xlane.f32.xlu1 %v2801_v58 }
 0x985   : > { %v2804_v60 = vsel %vm109_vm0, %v2796_v59, 0.0 }
 0x986   : > { %2805 = vadd.xlane.f32.xlu0 %v2804_v60  ;;  %v6831_v12 = vpop.f32.mrb[20].mxu1 }
 0x987   : > { %v7836_v13 = vadd.f32 %v6831_v12, %v6515_v11  ;;  %v2981_v16 = vpop.f32.mrb[21].mxu1 }
 0x988   : > { %v7838_v22 = vadd.f32 %v6515_v11, %v2981_v16  ;;  %v6832_v23 = vpop.f32.mrb[22].mxu1 }
 0x989   : > { %v7840_v24 = vadd.f32 %v6832_v23, %v6515_v11  ;;  %v2984_v25 = vpop.f32.mrb[23].mxu1 }
 0x98a   : > { %v7842_v26 = vadd.f32 %v6515_v11, %v2984_v25 }
 0xa11   : > { %v2803_v0 = vpop.xlane.xlu1 %2802 }
 0xa12   : > { %v2808_v1 = vmul.f32 0.03125, %v2803_v0 }
 0xa13   : > { %v2806_v27 = vpop.xlane.xlu0 %2805 }
 0xa14   : > { %v2810_v63 = vsub.f32 %v2795_v57, %v2808_v1  ;;  %v2809_v33 = vmul.f32 0.03125, %v2806_v27 }
 0xa16   : > { %v2811_v2 = vsub.f32 %v2796_v59, %v2809_v33  ;;  %v2812_v3 = vmul.f32 %v2810_v63, %v2810_v63 }
 0xa18   : > { %v2814_v30 = vsel %vm109_vm0, %v2812_v3, 0.0  ;;  %v2813_v6 = vmul.f32 %v2811_v2, %v2811_v2 }
 0xa19   : > { %2815 = vadd.xlane.f32.xlu0 %v2814_v30 }
 0xa1a   : > { %v2817_v4 = vsel %vm109_vm0, %v2813_v6, 0.0 }
 0xa1b   : > { %2818 = vadd.xlane.f32.xlu1 %v2817_v4 }
 0xa2c   : > { %3078 = vrot.lane.b32.xlu1 %v7842_v26, %s7217_s2 }
 0xa2f   : > { %3076 = vrot.lane.b32.xlu0 %v7838_v22, %s7217_s2 }
 0xa30   : > { %3082 = vrot.lane.b32.xlu1 %v7838_v22, %s7219_s26 }
 0xa33   : > { %3084 = vrot.lane.b32.xlu0 %v7842_v26, %s7219_s26 }
 0xa34   : > { %3088 = vrot.lane.b32.xlu1 %v7838_v22, %s7216_s6 }
 0xa37   : > { %3090 = vrot.lane.b32.xlu0 %v7842_v26, %s7216_s6 }
 0xaa6   : > { %v2816_v28 = vpop.xlane.xlu0 %2815 }
 0xaa7   : > { %v2820_v50 = vmul.f32 0.03125, %v2816_v28 }
 0xaa8   : > { %v2819_v5 = vpop.xlane.xlu1 %2818 }
 0xaa9   : > { %v2822_v7 = vadd.f32 1e-05, %v2820_v50  ;;  %v2821_v8 = vmul.f32 0.03125, %v2819_v5 }
 0xaaa   : > { %v7873_v37 = vpop.permute.xlu0 %3076 }
 0xaab   : > { %7146 = vrsqrt.f32 %v2822_v7  ;;  %v2823_v29 = vadd.f32 1e-05, %v2821_v8 }
 0xaac   : > { %v7875_v40 = vpop.permute.xlu1 %3078 }
 0xaad   : > { %7148 = vrsqrt.f32 %v2823_v29 }
 0xaae   : > { %v7877_v41 = vpop.permute.xlu0 %3084 }
 0xaaf   : > { %v3162_v43 = vcombine.low %v7842_v26, %v7877_v41  ;;  %v3163_v32 = vcombine.high %v7842_v26, %v7877_v41 }
 0xab0   : > { %v7881_v42 = vpop.permute.xlu1 %3082 }
 0xab1   : > { %v3094_v49 = vcombine.low %v7838_v22, %v7881_v42  ;;  %v3095_v45 = vcombine.high %v7838_v22, %v7881_v42  ;;  %v3170_v51 = vrot.slane %v3162_v43, %v7460_v44  ;;  %v3177_v60 = vrot.slane %v3163_v32, %v7460_v44 }
 0xab2   : > { %v7889_v34 = vpop.permute.xlu0 %3090 }
 0xab3   : > { %v3178_v56 = vcombine.low %v7875_v40, %v7889_v34  ;;  %v3179_v57 = vcombine.high %v7875_v40, %v7889_v34  ;;  %v3102_v58 = vrot.slane %v3094_v49, %v7460_v44  ;;  %v3109_v59 = vrot.slane %v3095_v45, %v7460_v44 }
 0xab4   : > { %v7899_v61 = vpop.permute.xlu1 %3088 }
 0xab5   : > { %v7147_v53 = vpop.eup %7146  ;;  %v3110_v62 = vcombine.low %v7873_v37, %v7899_v61  ;;  %v3111_v0 = vcombine.high %v7873_v37, %v7899_v61  ;;  %v3186_v1 = vrot.slane %v3178_v56, %v7460_v44  ;;  %v3193_v27 = vrot.slane %v3179_v57, %v7460_v44 }
 0xab6   : > { %v2826_v54 = vmul.f32 %v7147_v53, %v2810_v63 }
 0xab7   : > { %v7149_v31 = vpop.eup %7148  ;;  %v3118_v63 = vrot.slane %v3110_v62, %v7460_v44  ;;  %v3125_v33 = vrot.slane %v3111_v0, %v7460_v44  ;;  %v3195_v3 = vcombine.high %v3170_v51, %v3186_v1  ;;  %v3210_v30 = vcombine.low %v3177_v60, %v3193_v27 }
 0xab8   : > { %v2827_v55 = vmul.f32 %v7149_v31, %v2811_v2  ;;  %v2834_v38 = vmul.f32 %v6507_v47, %v2826_v54  ;;  %v3194_v2 = vcombine.low %v3170_v51, %v3186_v1  ;;  %v3211_v6 = vcombine.high %v3177_v60, %v3193_v27 }
 0xab9   : > { %v3126_v4 = vcombine.low %v3102_v58, %v3118_v63  ;;  %v3127_v9 = vcombine.high %v3102_v58, %v3118_v63  ;;  %v3142_v10 = vcombine.low %v3109_v59, %v3125_v33  ;;  %v3143_v11 = vcombine.high %v3109_v59, %v3125_v33 }
 0xaba   : > { %v2835_v48 = vmul.f32 %v6507_v47, %v2827_v55  ;;  %v7864_v46 = vadd.f32 %v6508_v39, %v2834_v38  ;;  %v3202_v12 = vrot.slane %v3194_v2, %v7470_v52  ;;  %v3209_v16 = vrot.slane %v3195_v3, %v7470_v52 }
 0xabb   : > { %v3218_v23 = vrot.slane %v3210_v30, %v7470_v52  ;;  %v3225_v25 = vrot.slane %v3211_v6, %v7470_v52  ;;  %v3134_v28 = vrot.slane %v3126_v4, %v7470_v52  ;;  %v3141_v50 = vrot.slane %v3127_v9, %v7470_v52 }
 0xabc   : > { %v7866_v35 = vadd.f32 %v6508_v39, %v2835_v48  ;;  %v3150_v5 = vrot.slane %v3142_v10, %v7470_v52  ;;  %v3157_v7 = vrot.slane %v3143_v11, %v7470_v52  ;;  %v3530_v8 = vcombine.low %v3202_v12, %v3209_v16 }
 0xabd   : > { %v6524_v29 = vcombine.high %v3202_v12, %v3209_v16  ;;  %v3546_v53 = vcombine.low %v3218_v23, %v3225_v25  ;;  %v6525_v47 = vcombine.high %v3218_v23, %v3225_v25  ;;  %v3462_v54 = vcombine.low %v3134_v28, %v3141_v50 }
 0xabe   : > { %v2844_v36 = vpack.c.bf16 %v7866_v35, %v7864_v46  ;;  %v6522_v31 = vcombine.high %v3134_v28, %v3141_v50  ;;  %v3478_v55 = vcombine.low %v3150_v5, %v3157_v7  ;;  %v6523_v38 = vcombine.high %v3150_v5, %v3157_v7 }
 0xabf   : > { %v3537_v39 = vrot.slane %v3530_v8, %v7460_v44  ;;  %v3545_v48 = vrot.slane %v6524_v29, %v7460_v44  ;;  %v3561_v43 = vrot.slane %v6525_v47, %v7460_v44  ;;  %v3469_v32 = vrot.slane %v3462_v54, %v7460_v44  ;;  %v6510_v47 = vld [vmem:[%s2851_s5] ss:$0 sm:$0xff]  ;;  %s6151_s5 = scalar_lea.vmem %s8506_s20, %s7212_s1 }
 0xac0   : > { %6822 = vmatmul.mubr.msk.bf16.vlgmr.msra.gmra.mrb[20].mxu0 %vm109_vm0, %v2844_v36  ;;  %v3553_v36 = vrot.slane %v3546_v53, %v7460_v44  ;;  %v3477_v49 = vrot.slane %v6522_v31, %v7460_v44  ;;  %v3485_v45 = vrot.slane %v3478_v55, %v7460_v44  ;;  %v3493_v51 = vrot.slane %v6523_v38, %v7460_v44 }
 0xac1   : > { %6837 = vmatprep.mubr.msk.f32.mxu0 %vm7215_vm1, %v7214_v21  ;;  %v3563_v56 = vcombine.high %v3537_v39, %v3545_v48  ;;  %v3562_v0 = vcombine.low %v3537_v39, %v3545_v48  ;;  %v7226_v7 = vmov 0.0|0.0  }
 0xac2   : > { %v3579_v57 = vcombine.high %v3553_v36, %v3561_v43  ;;  %v3495_v58 = vcombine.high %v3469_v32, %v3477_v49  ;;  %v3511_v59 = vcombine.high %v3485_v45, %v3493_v51  ;;  %v3494_v60 = vcombine.low %v3469_v32, %v3477_v49  ;;  %6973 = vmatprep.subr.bf16.mxu0 %v7226_v7 }
 0xac3   : > { %v3510_v62 = vcombine.low %v3485_v45, %v3493_v51  ;;  %v3578_v1 = vcombine.low %v3553_v36, %v3561_v43  ;;  %v3570_v33 = vrot.slane %v3562_v0, %v7470_v52  ;;  %v3577_v6 = vrot.slane %v3563_v56, %v7470_v52  ;;  %6977 = vmatprep.subr.bf16.mxu1 %v7226_v7 }
 0xac4   : > { %v3502_v27 = vrot.slane %v3494_v60, %v7470_v52  ;;  %v3509_v3 = vrot.slane %v3495_v58, %v7470_v52  ;;  %v3525_v30 = vrot.slane %v3511_v59, %v7470_v52  ;;  %v3593_v4 = vrot.slane %v3579_v57, %v7470_v52 }
 0xac5   : > { %v3518_v63 = vrot.slane %v3510_v62, %v7470_v52  ;;  %v3586_v2 = vrot.slane %v3578_v1, %v7470_v52 }
 0xac6   : > { %v3528_v16 = vcombine.low %v3509_v3, %v3525_v30  ;;  %v3596_v23 = vcombine.low %v3577_v6, %v3593_v4  ;;  %v3529_v25 = vcombine.high %v3509_v3, %v3525_v30  ;;  %v3597_v28 = vcombine.high %v3577_v6, %v3593_v4 }
 0xac7   : > { %v3526_v9 = vcombine.low %v3502_v27, %v3518_v63  ;;  %v3594_v10 = vcombine.low %v3570_v33, %v3586_v2  ;;  %v3527_v11 = vcombine.high %v3502_v27, %v3518_v63  ;;  %v3595_v12 = vcombine.high %v3570_v33, %v3586_v2 }
 0xac8   : > { %v6982_v29 = vpack.c.bf16 %v3596_v23, %v3528_v16  ;;  %v6986_v53 = vpack.c.bf16 %v3597_v28, %v3529_v25 }
 0xac9   : > { %v6974_v50 = vpack.c.bf16 %v3594_v10, %v3526_v9  ;;  %v6978_v5 = vpack.c.bf16 %v3595_v12, %v3527_v11 }
 0xacb   : > { %6976 = vmatpush3.bf16.xpose.msk.msra.mxu0 %vm7937_vm5, %v6974_v50  ;;  %6980 = vmatpush3.bf16.xpose.msk.msra.mxu1 %vm7937_vm5, %v6978_v5 }
 0xacc   : > { %6981 = vmatprep.subr.bf16.mxu0 %v7226_v7  ;;  %6985 = vmatprep.subr.bf16.mxu1 %v7226_v7 }
 0xb93   : > { %v2908_v54 = vpop.f32.mrb[20].mxu0 }
 0xb94   : > { %v2909_v31 = vadd.f32 %v6510_v47, %v2908_v54  ;;  %v6823_v55 = vpop.f32.mrb[21].mxu0 }
 0xb95   : > { %v2911_v38 = vpop.f32.mrb[22].mxu0 }
 0xb96   : > { %v7951_v39 = vadd.f32 %v6510_v47, %v2911_v38  ;;  %3000 = vrot.lane.b32.xlu0 %v2909_v31, %s7219_s26  ;;  %2997 = vrot.lane.b32.xlu1 %v2909_v31, %s7217_s2  ;;  %v6824_v48 = vpop.f32.mrb[23].mxu0 }
 0xb9a   : > { %3230 = vrot.lane.b32.xlu0 %v7838_v22, %s7218_s7  ;;  %3003 = vrot.lane.b32.xlu1 %v2909_v31, %s7216_s6 }
 0xb9e   : > { %3232 = vrot.lane.b32.xlu1 %v7842_v26, %s7218_s7 }
 0xba2   : > { %3234 = vrot.lane.b32.xlu1 %v7873_v37, %s7218_s7 }
 0xc08   : > { %v3001_v36 = vpop.permute.xlu0 %3000  ;;  %v2998_v43 = vpop.permute.xlu1 %2997 }
 0xc09   : > { %v3006_v32 = vcombine.low %v2909_v31, %v3001_v36  ;;  %v3007_v49 = vcombine.high %v2909_v31, %v3001_v36 }
 0xc0b   : > { %v3014_v57 = vrot.slane %v3006_v32, %v7460_v44  ;;  %v3021_v58 = vrot.slane %v3007_v49, %v7460_v44 }
 0xc0c   : > { %v3004_v45 = vpop.permute.xlu1 %3003 }
 0xc0d   : > { %v3022_v51 = vcombine.low %v2998_v43, %v3004_v45  ;;  %v3023_v56 = vcombine.high %v2998_v43, %v3004_v45 }
 0xc0f   : > { %v3030_v22 = vrot.slane %v3022_v51, %v7460_v44  ;;  %v3037_v59 = vrot.slane %v3023_v56, %v7460_v44 }
 0xc11   : > { %v3038_v60 = vcombine.low %v3014_v57, %v3030_v22  ;;  %v3039_v26 = vcombine.high %v3014_v57, %v3030_v22  ;;  %v3054_v62 = vcombine.low %v3021_v58, %v3037_v59  ;;  %v3055_v0 = vcombine.high %v3021_v58, %v3037_v59  ;;  %v3231_v59 = vpop.permute.xlu0 %3230 }
 0xc13   : > { %v3046_v37 = vrot.slane %v3038_v60, %v7470_v52  ;;  %v3053_v1 = vrot.slane %v3039_v26, %v7470_v52  ;;  %v3062_v27 = vrot.slane %v3054_v62, %v7470_v52  ;;  %v3069_v63 = vrot.slane %v3055_v0, %v7470_v52 }
 0xc15   : > { %v3390_v33 = vcombine.low %v3046_v37, %v3053_v1  ;;  %v6520_v2 = vcombine.high %v3046_v37, %v3053_v1  ;;  %v3406_v3 = vcombine.low %v3062_v27, %v3069_v63  ;;  %v6521_v30 = vcombine.high %v3062_v27, %v3069_v63 }
 0xc17   : > { %v3397_v6 = vrot.slane %v3390_v33, %v7460_v44  ;;  %v3405_v4 = vrot.slane %v6520_v2, %v7460_v44  ;;  %v3413_v9 = vrot.slane %v3406_v3, %v7460_v44  ;;  %v3421_v10 = vrot.slane %v6521_v30, %v7460_v44 }
 0xc19   : > { %v3422_v11 = vcombine.low %v3397_v6, %v3405_v4  ;;  %v3438_v12 = vcombine.low %v3413_v9, %v3421_v10  ;;  %v3423_v16 = vcombine.high %v3397_v6, %v3405_v4  ;;  %v3439_v23 = vcombine.high %v3413_v9, %v3421_v10 }
 0xc1b   : > { %v3430_v25 = vrot.slane %v3422_v11, %v7470_v52  ;;  %v3446_v28 = vrot.slane %v3438_v12, %v7470_v52  ;;  %v3437_v31 = vrot.slane %v3423_v16, %v7470_v52  ;;  %v3453_v55 = vrot.slane %v3439_v23, %v7470_v52 }
 0xc1d   : > { %v3454_v50 = vcombine.low %v3430_v25, %v3446_v28  ;;  %v3455_v5 = vcombine.high %v3430_v25, %v3446_v28  ;;  %v3456_v38 = vcombine.low %v3437_v31, %v3453_v55  ;;  %v3457_v48 = vcombine.high %v3437_v31, %v3453_v55 }
 0xc1f   : > { %v3458_v47 = vmul.f32 0.35355338, %v3454_v50  ;;  %v3459_v54 = vmul.f32 0.35355338, %v3455_v5  ;;  %v3460_v36 = vmul.f32 0.35355338, %v3456_v38 }
 0xc20   : > { %v3461_v43 = vmul.f32 0.35355338, %v3457_v48 }
 0xc21   : > { %6838 = vmatmul.mubr.msk.f32.vlgmr.msra.gmra.mrb[24].mxu0 %vm693_vm2, %v3458_v47  ;;  %6845 = vmatmul.mubr.msk.f32.vlgmr.msra.gmra.mrb[24].mxu1 %vm693_vm2, %v3459_v54 }
 0xc22   : > { %6984 = vmatpush3.bf16.xpose.msk.msra.mxu0 %vm7937_vm5, %v6982_v29  ;;  %6988 = vmatpush3.bf16.xpose.msk.msra.mxu1 %vm7937_vm5, %v6986_v53 }
 0xc23   : > { %6851 = vmatprep.mubr.msk.f32.mxu0 %vm7215_vm1, %v7214_v21  ;;  %6858 = vmatprep.mubr.msk.f32.mxu1 %vm7215_vm1, %v7214_v21 }
 0xc24   : > { %6989 = vmatprep.subr.bf16.mxu0 %v7226_v7  ;;  %6995 = vmatprep.subr.bf16.mxu1 %v7226_v7 }
 0xc29   : > { %6852 = vmatmul.mubr.msk.f32.vlgmr.msra.gmra.mrb[26].mxu0 %vm693_vm2, %v3460_v36  ;;  %6859 = vmatmul.mubr.msk.f32.vlgmr.msra.gmra.mrb[26].mxu1 %vm693_vm2, %v3461_v43 }
 0xc2a   : > { %6865 = vmatprep.mubr.msk.f32.mxu0 %vm7215_vm1, %v7214_v21  ;;  %6879 = vmatprep.mubr.msk.f32.mxu1 %vm7215_vm1, %v7214_v21 }
 0xcf4   : > { %v3809_v29 = vpop.f32.mrb[24].mxu0  ;;  %v3888_v53 = vpop.f32.mrb[24].mxu1 }
 0xcf5   : > { %v6839_v32 = vpop.f32.mrb[25].mxu0  ;;  %v6846_v49 = vpop.f32.mrb[25].mxu1  ;;  %v4053_v45 = vsel %vm1483_vm3, %v3888_v53, -inf  ;;  %v4050_v51 = vsel %vm1483_vm3, %v3809_v29, -inf }
 0xcf6   : > { %4054 = vmax.xlane.f32.xlu1 %v4053_v45  ;;  %4051 = vmax.xlane.f32.xlu0 %v4050_v51 }
 0xcfc   : > { %v7998_v56 = vpop.f32.mrb[26].mxu0  ;;  %v8000_v57 = vpop.f32.mrb[26].mxu1 }
 0xcfd   : > { %v6853_v58 = vpop.f32.mrb[27].mxu0  ;;  %v6860_v22 = vpop.f32.mrb[27].mxu1 }
 0xd07   : > { %3238 = vrot.lane.b32.xlu1 %v7881_v42, %s7218_s7  ;;  %v4056_v42 = vsel %vm1483_vm3, %v7998_v56, -inf }
 0xd0b   : > { %3242 = vrot.lane.b32.xlu1 %v7899_v61, %s7218_s7  ;;  %v4059_v61 = vsel %vm1483_vm3, %v8000_v57, -inf }
 0xd0c   : > { %3236 = vrot.lane.b32.xlu0 %v7875_v40, %s7218_s7  ;;  %v8030_v40 = vpop.permute.xlu1 %3232 }
 0xd0f   : > { %4617 = vrot.lane.b32.xlu1 %v7836_v13, %s7217_s2 }
 0xd10   : > { %v3235_v60 = vpop.permute.xlu1 %3234 }
 0xd13   : > { %4623 = vrot.lane.b32.xlu1 %v7836_v13, %s7219_s26 }
 0xd17   : > { %4625 = vrot.lane.b32.xlu1 %v7840_v24, %s7219_s26 }
 0xd1b   : > { %4631 = vrot.lane.b32.xlu1 %v7840_v24, %s7216_s6 }
 0xd2b   : > { %4057 = vmax.xlane.f32.xlu0 %v4056_v42 }
 0xd2f   : > { %4060 = vmax.xlane.f32.xlu0 %v4059_v61 }
 0xd45   : > { %3240 = vrot.lane.b32.xlu0 %v7877_v41, %s7218_s7 }
 0xd49   : > { %3244 = vrot.lane.b32.xlu0 %v7889_v34, %s7218_s7 }
 0xd4d   : > { %4619 = vrot.lane.b32.xlu0 %v7840_v24, %s7217_s2 }
 0xd51   : > { %4629 = vrot.lane.b32.xlu0 %v7836_v13, %s7216_s6 }
 0xd55   : > { %4538 = vrot.lane.b32.xlu0 %v7951_v39, %s7217_s2 }
 0xd83   : > { %v4055_v26 = vpop.xlane.xlu1 %4054  ;;  %v4052_v62 = vpop.xlane.xlu0 %4051 }
 0xd84   : > { %v4063_v0 = vsub.f32 %v3888_v53, %v4055_v26  ;;  %v4062_v41 = vsub.f32 %v3809_v29, %v4052_v62 }
 0xd86   : > { %v4066_v37 = vmul.f32 1.442695, %v4062_v41  ;;  %v4068_v34 = vmul.f32 1.442695, %v4063_v0 }
 0xd87   : > { %v3239_v1 = vpop.permute.xlu1 %3238  ;;  %v3237_v41 = vpop.permute.xlu0 %3236 }
 0xd88   : > { %7150 = vpow2.f32 %v4066_v37  ;;  %v3254_v27 = vcombine.low %v3231_v59, %v3239_v1  ;;  %v3255_v63 = vcombine.high %v3231_v59, %v3239_v1 }
 0xd89   : > { %7152 = vpow2.f32 %v4068_v34 }
 0xd8a   : > { %v3262_v30 = vrot.slane %v3254_v27, %v7460_v44  ;;  %v3269_v6 = vrot.slane %v3255_v63, %v7460_v44 }
 0xd8b   : > { %v3243_v33 = vpop.permute.xlu1 %3242 }
 0xd8c   : > { %v3270_v2 = vcombine.low %v3235_v60, %v3243_v33  ;;  %v3271_v3 = vcombine.high %v3235_v60, %v3243_v33 }
 0xd8e   : > { %v3278_v4 = vrot.slane %v3270_v2, %v7460_v44  ;;  %v3285_v9 = vrot.slane %v3271_v3, %v7460_v44 }
 0xd90   : > { %v3286_v10 = vcombine.low %v3262_v30, %v3278_v4  ;;  %v3287_v11 = vcombine.high %v3262_v30, %v3278_v4  ;;  %v3302_v12 = vcombine.low %v3269_v6, %v3285_v9  ;;  %v3303_v16 = vcombine.high %v3269_v6, %v3285_v9 }
 0xd92   : > { %v3294_v23 = vrot.slane %v3286_v10, %v7470_v52  ;;  %v3301_v25 = vrot.slane %v3287_v11, %v7470_v52  ;;  %v3310_v28 = vrot.slane %v3302_v12, %v7470_v52  ;;  %v3317_v50 = vrot.slane %v3303_v16, %v7470_v52  ;;  %v8040_v5 = vpop.eup %7150 }
 0xd93   : > { %v4074_v38 = vsel %vm1483_vm3, %v8040_v5, 0.0  ;;  %v8044_v48 = vpop.eup %7152 }
 0xd94   : > { %v3598_v47 = vcombine.low %v3294_v23, %v3301_v25  ;;  %v6526_v54 = vcombine.high %v3294_v23, %v3301_v25  ;;  %v3614_v31 = vcombine.low %v3310_v28, %v3317_v50  ;;  %v6527_v55 = vcombine.high %v3310_v28, %v3317_v50  ;;  %4075 = vadd.xlane.f32.xlu1 %v4074_v38 }
 0xd95   : > { %v4077_v45 = vsel %vm1483_vm3, %v8044_v48, 0.0 }
 0xd96   : > { %v3605_v36 = vrot.slane %v3598_v47, %v7460_v44  ;;  %v3613_v43 = vrot.slane %v6526_v54, %v7460_v44  ;;  %v3621_v29 = vrot.slane %v3614_v31, %v7460_v44  ;;  %v3629_v53 = vrot.slane %v6527_v55, %v7460_v44 }
 0xd98   : > { %v3630_v32 = vcombine.low %v3605_v36, %v3613_v43  ;;  %v3646_v49 = vcombine.low %v3621_v29, %v3629_v53  ;;  %v3631_v51 = vcombine.high %v3605_v36, %v3613_v43  ;;  %v3647_v58 = vcombine.high %v3621_v29, %v3629_v53  ;;  %4078 = vadd.xlane.f32.xlu1 %v4077_v45 }
 0xd9a   : > { %v3638_v22 = vrot.slane %v3630_v32, %v7470_v52  ;;  %v3654_v42 = vrot.slane %v3646_v49, %v7470_v52  ;;  %v8055_v61 = vrot.slane %v3631_v51, %v7470_v52  ;;  %v8058_v59 = vrot.slane %v3647_v58, %v7470_v52 }
 0xd9c   : > { %v3662_v60 = vcombine.low %v3638_v22, %v3654_v42  ;;  %v3663_v26 = vcombine.high %v3638_v22, %v3654_v42  ;;  %v3664_v62 = vcombine.low %v8055_v61, %v8058_v59  ;;  %v3665_v0 = vcombine.high %v8055_v61, %v8058_v59 }
 0xda9   : > { %4541 = vrot.lane.b32.xlu1 %v7951_v39, %s7219_s26 }
 0xdb8   : > { %v4058_v37 = vpop.xlane.xlu0 %4057 }
 0xdb9   : > { %v4064_v1 = vsub.f32 %v7998_v56, %v4058_v37 }
 0xdbb   : > { %v4070_v34 = vmul.f32 1.442695, %v4064_v1 }
 0xdbc   : > { %v4061_v27 = vpop.xlane.xlu0 %4060 }
 0xdbd   : > { %7154 = vpow2.f32 %v4070_v34  ;;  %v4065_v63 = vsub.f32 %v8000_v57, %v4061_v27 }
 0xdbf   : > { %v4072_v33 = vmul.f32 1.442695, %v4065_v63 }
 0xdc0   : > { %v3241_v2 = vpop.permute.xlu0 %3240 }
 0xdc1   : > { %7156 = vpow2.f32 %v4072_v33  ;;  %v3322_v3 = vcombine.low %v8030_v40, %v3241_v2  ;;  %v3323_v30 = vcombine.high %v8030_v40, %v3241_v2 }
 0xdc3   : > { %v3330_v11 = vrot.slane %v3322_v3, %v7460_v44  ;;  %v3337_v56 = vrot.slane %v3323_v30, %v7460_v44 }
 0xdc4   : > { %v3245_v6 = vpop.permute.xlu0 %3244 }
 0xdc5   : > { %v3338_v4 = vcombine.low %v3237_v41, %v3245_v6  ;;  %v3339_v9 = vcombine.high %v3237_v41, %v3245_v6 }
 0xdc7   : > { %v8070_v10 = vpop.eup %7154  ;;  %v3346_v12 = vrot.slane %v3338_v4, %v7460_v44  ;;  %v3353_v57 = vrot.slane %v3339_v9, %v7460_v44  ;;  %v8098_v4 = vpop.permute.xlu1 %4617 }
 0xdc8   : > { %v4080_v16 = vsel %vm1483_vm3, %v8070_v10, 0.0 }
 0xdc9   : > { %v3354_v23 = vcombine.low %v3330_v11, %v3346_v12  ;;  %v3355_v25 = vcombine.high %v3330_v11, %v3346_v12  ;;  %v3370_v28 = vcombine.low %v3337_v56, %v3353_v57  ;;  %v3371_v40 = vcombine.high %v3337_v56, %v3353_v57  ;;  %4081 = vadd.xlane.f32.xlu0 %v4080_v16  ;;  %v8112_v16 = vpop.permute.xlu0 %4619 }
 0xdcb   : > { %v8078_v50 = vpop.eup %7156  ;;  %v3362_v47 = vrot.slane %v3354_v23, %v7470_v52  ;;  %v3369_v54 = vrot.slane %v3355_v25, %v7470_v52  ;;  %v3378_v31 = vrot.slane %v3370_v28, %v7470_v52  ;;  %v3385_v55 = vrot.slane %v3371_v40, %v7470_v52 }
 0xdcc   : > { %v4083_v38 = vsel %vm1483_vm3, %v8078_v50, 0.0 }
 0xdcd   : > { %v3666_v36 = vcombine.low %v3362_v47, %v3369_v54  ;;  %v6528_v43 = vcombine.high %v3362_v47, %v3369_v54  ;;  %v3682_v29 = vcombine.low %v3378_v31, %v3385_v55  ;;  %v6529_v53 = vcombine.high %v3378_v31, %v3385_v55  ;;  %4084 = vadd.xlane.f32.xlu0 %v4083_v38 }
 0xdcf   : > { %v3673_v32 = vrot.slane %v3666_v36, %v7460_v44  ;;  %v3681_v49 = vrot.slane %v6528_v43, %v7460_v44  ;;  %v3689_v45 = vrot.slane %v3682_v29, %v7460_v44  ;;  %v3697_v51 = vrot.slane %v6529_v53, %v7460_v44 }
 0xdd1   : > { %v3698_v58 = vcombine.low %v3673_v32, %v3681_v49  ;;  %v3714_v22 = vcombine.low %v3689_v45, %v3697_v51  ;;  %v3699_v41 = vcombine.high %v3673_v32, %v3681_v49  ;;  %v3715_v37 = vcombine.high %v3689_v45, %v3697_v51 }
 0xdd3   : > { %v3706_v42 = vrot.slane %v3698_v58, %v7470_v52  ;;  %v3722_v61 = vrot.slane %v3714_v22, %v7470_v52  ;;  %v3713_v27 = vrot.slane %v3699_v41, %v7470_v52  ;;  %v3729_v63 = vrot.slane %v3715_v37, %v7470_v52 }
 0xdd5   : > { %v3730_v59 = vcombine.low %v3706_v42, %v3722_v61  ;;  %v3731_v1 = vcombine.high %v3706_v42, %v3722_v61  ;;  %v3732_v2 = vcombine.low %v3713_v27, %v3729_v63  ;;  %v3733_v3 = vcombine.high %v3713_v27, %v3729_v63 }
 0xdd7   : > { %v6990_v34 = vpack.c.bf16 %v3730_v59, %v3662_v60  ;;  %v6993_v33 = vpack.c.bf16 %v3731_v1, %v3663_v26  ;;  %v6996_v30 = vpack.c.bf16 %v3732_v2, %v3664_v62  ;;  %v6999_v6 = vpack.c.bf16 %v3733_v3, %v3665_v0  ;;  %v8100_v60 = vpop.permute.xlu1 %4623 }
 0xdd8   : > { %v4635_v25 = vcombine.low %v7836_v13, %v8100_v60  ;;  %v4636_v28 = vcombine.high %v7836_v13, %v8100_v60 }
 0xdd9   : > { %6991 = vmatpush3.bf16.msra.mxu0 %v6990_v34  ;;  %6997 = vmatpush3.bf16.msra.mxu1 %v6996_v30 }
 0xdda   : > { %6992 = vmatprep.subr.bf16.mxu0 %v7226_v7  ;;  %7001 = vmatprep.subr.bf16.mxu1 %v7226_v7  ;;  %v4643_v36 = vrot.slane %v4635_v25, %v7460_v44  ;;  %v4650_v43 = vrot.slane %v4636_v28, %v7460_v44 }
 0xddb   : > { %v8102_v9 = vpop.permute.xlu1 %4625 }
 0xddc   : > { %v4703_v54 = vcombine.low %v7840_v24, %v8102_v9  ;;  %v4704_v31 = vcombine.high %v7840_v24, %v8102_v9 }
 0xdde   : > { %v4711_v32 = vrot.slane %v4703_v54, %v7460_v44  ;;  %v4718_v49 = vrot.slane %v4704_v31, %v7460_v44 }
 0xddf   : > { %v8104_v26 = vpop.permute.xlu1 %4631 }
 0xde0   : > { %v4719_v40 = vcombine.low %v8112_v16, %v8104_v26  ;;  %v4720_v47 = vcombine.high %v8112_v16, %v8104_v26 }
 0xde2   : > { %v4727_v29 = vrot.slane %v4719_v40, %v7460_v44  ;;  %v4734_v53 = vrot.slane %v4720_v47, %v7460_v44 }
 0xde3   : > { %4544 = vrot.lane.b32.xlu0 %v7951_v39, %s7216_s6 }
 0xde4   : > { %v4735_v42 = vcombine.low %v4711_v32, %v4727_v29  ;;  %v4736_v61 = vcombine.high %v4711_v32, %v4727_v29  ;;  %v4751_v59 = vcombine.low %v4718_v49, %v4734_v53  ;;  %v4752_v41 = vcombine.high %v4718_v49, %v4734_v53 }
 0xde6   : > { %v4743_v63 = vrot.slane %v4735_v42, %v7470_v52  ;;  %v4759_v2 = vrot.slane %v4751_v59, %v7470_v52  ;;  %v4766_v3 = vrot.slane %v4752_v41, %v7470_v52 }
 0xe21   : > { %v4076_v11 = vpop.xlane.xlu1 %4075 }
 0xe22   : > { %7158 = vrcp.f32 %v4076_v11 }
 0xe25   : > { %v4079_v56 = vpop.xlane.xlu1 %4078 }
 0xe26   : > { %7160 = vrcp.f32 %v4079_v56 }
 0xe29   : > { %v4542_v32 = vpop.permute.xlu1 %4541 }
 0xe2a   : > { %v4547_v42 = vcombine.low %v7951_v39, %v4542_v32 }
 0xe2c   : > { %v7159_v62 = vpop.eup %7158 }
 0xe2d   : > { %v4087_v0 = vmul.f32 %v7159_v62, %v8040_v5  ;;  %v8118_v5 = vpop.permute.xlu0 %4629 }
 0xe2e   : > { %v4651_v23 = vcombine.low %v8098_v4, %v8118_v5 }
 0xe2f   : > { %6866 = vmatmul.mubr.msk.f32.vlgmr.msra.gmra.mrb[28].mxu0 %vm1483_vm3, %v4087_v0 }
 0xe30   : > { %v7161_v12 = vpop.eup %7160  ;;  %6994 = vmatpush3.bf16.msra.mxu0 %v6993_v33  ;;  %6872 = vmatprep.mubr.msk.f32.mxu0 %vm7215_vm1, %v7214_v21  ;;  %v4659_v55 = vrot.slane %v4651_v23, %v7460_v44  ;;  %v4750_v33 = vrot.slane %v4736_v61, %v7470_v52  ;;  %v4548_v61 = vcombine.high %v7951_v39, %v4542_v32 }
 0xe31   : > { %v4089_v57 = vmul.f32 %v7161_v12, %v8044_v48  ;;  %6998 = vmatprep.subr.bf16.mxu0 %v7226_v7  ;;  %v4652_v48 = vcombine.high %v8098_v4, %v8118_v5  ;;  %v5087_v12 = vcombine.low %v4759_v2, %v4766_v3  ;;  %v4539_v40 = vpop.permute.xlu0 %4538 }
 0xe32   : > { %v4667_v45 = vcombine.low %v4643_v36, %v4659_v55  ;;  %v4668_v51 = vcombine.high %v4643_v36, %v4659_v55  ;;  %v5071_v62 = vcombine.low %v4743_v63, %v4750_v33  ;;  %v6552_v0 = vcombine.high %v4743_v63, %v4750_v33 }
 0xe33   : > { %6873 = vmatmul.mubr.msk.f32.vlgmr.msra.gmra.mrb[30].mxu0 %vm1483_vm3, %v4089_v57  ;;  %v4666_v38 = vrot.slane %v4652_v48, %v7460_v44  ;;  %v6553_v57 = vcombine.high %v4759_v2, %v4766_v3  ;;  %v8171_v31 = vrot.slane %v5087_v12, %v7460_v44  ;;  %v4555_v63 = vrot.slane %v4547_v42, %v7460_v44 }
 0xe34   : > { %7000 = vmatpush3.bf16.msra.mxu0 %v6999_v6  ;;  %6886 = vmatprep.mubr.msk.f32.mxu0 %vm7215_vm1, %v7214_v21  ;;  %v4675_v37 = vrot.slane %v4667_v45, %v7470_v52  ;;  %v4682_v1 = vrot.slane %v4668_v51, %v7470_v52  ;;  %v8165_v47 = vrot.slane %v5071_v62, %v7460_v44 }
 0xe35   : > { %7005 = vmatprep.subr.bf16.mxu0 %v7226_v7  ;;  %v4683_v58 = vcombine.low %v4650_v43, %v4666_v38  ;;  %v4684_v22 = vcombine.high %v4650_v43, %v4666_v38  ;;  %v8168_v54 = vrot.slane %v6552_v0, %v7460_v44  ;;  %v8174_v55 = vrot.slane %v6553_v57, %v7460_v44 }
 0xe36   : > { %v5003_v30 = vcombine.low %v4675_v37, %v4682_v1  ;;  %v6550_v6 = vcombine.high %v4675_v37, %v4682_v1  ;;  %v4562_v33 = vrot.slane %v4548_v61, %v7460_v44 }
 0xe37   : > { %v4691_v34 = vrot.slane %v4683_v58, %v7470_v52  ;;  %v4698_v27 = vrot.slane %v4684_v22, %v7470_v52  ;;  %v5103_v29 = vcombine.low %v8165_v47, %v8168_v54  ;;  %v5119_v53 = vcombine.low %v8171_v31, %v8174_v55 }
 0xe38   : > { %v8153_v23 = vrot.slane %v5003_v30, %v7460_v44  ;;  %v8156_v48 = vrot.slane %v6550_v6, %v7460_v44 }
 0xe39   : > { %v5019_v11 = vcombine.low %v4691_v34, %v4698_v27  ;;  %v6551_v56 = vcombine.high %v4691_v34, %v4698_v27  ;;  %v5111_v58 = vrot.slane %v5103_v29, %v7470_v52  ;;  %v5127_v22 = vrot.slane %v5119_v53, %v7470_v52 }
 0xe3a   : > { %v5035_v38 = vcombine.low %v8153_v23, %v8156_v48  ;;  %v5036_v12 = vcombine.high %v8153_v23, %v8156_v48 }
 0xe3b   : > { %v8159_v25 = vrot.slane %v5019_v11, %v7460_v44  ;;  %v8162_v28 = vrot.slane %v6551_v56, %v7460_v44  ;;  %v5135_v34 = vcombine.low %v5111_v58, %v5127_v22  ;;  %v5136_v57 = vcombine.high %v5111_v58, %v5127_v22 }
 0xe3c   : > { %v5043_v45 = vrot.slane %v5035_v38, %v7470_v52  ;;  %v5120_v58 = vcombine.high %v8171_v31, %v8174_v55 }
 0xe3d   : > { %v5051_v36 = vcombine.low %v8159_v25, %v8162_v28  ;;  %v5052_v29 = vcombine.high %v8159_v25, %v8162_v28 }
 0xe3e   : > { %v5134_v61 = vrot.slane %v5120_v58, %v7470_v52 }
 0xe3f   : > { %v5059_v51 = vrot.slane %v5051_v36, %v7470_v52 }
 0xe41   : > { %v5067_v41 = vcombine.low %v5043_v45, %v5059_v51  ;;  %v5068_v11 = vcombine.high %v5043_v45, %v5059_v51  ;;  %v5104_v51 = vcombine.high %v8165_v47, %v8168_v54  ;;  %v5050_v47 = vrot.slane %v5036_v12, %v7470_v52 }
 0xe42   : > { %v5066_v54 = vrot.slane %v5052_v29, %v7470_v52 }
 0xe43   : > { %v7002_v6 = vpack.c.bf16 %v5135_v34, %v5067_v41  ;;  %v7006_v48 = vpack.c.bf16 %v5136_v57, %v5068_v11  ;;  %v5118_v42 = vrot.slane %v5104_v51, %v7470_v52 }
 0xe44   : > { %v5069_v34 = vcombine.low %v5050_v47, %v5066_v54 }
 0xe56   : > { %v4082_v43 = vpop.xlane.xlu0 %4081 }
 0xe57   : > { %7162 = vrcp.f32 %v4082_v43 }
 0xe5a   : > { %v4085_v49 = vpop.xlane.xlu0 %4084 }
 0xe5b   : > { %7164 = vrcp.f32 %v4085_v49 }
 0xe5e   : > { %v4545_v59 = vpop.permute.xlu0 %4544 }
 0xe5f   : > { %v4563_v37 = vcombine.low %v4539_v40, %v4545_v59  ;;  %v4564_v1 = vcombine.high %v4539_v40, %v4545_v59 }
 0xe61   : > { %v7163_v27 = vpop.eup %7162  ;;  %v4571_v2 = vrot.slane %v4563_v37, %v7460_v44  ;;  %v4578_v3 = vrot.slane %v4564_v1, %v7460_v44 }
 0xe62   : > { %v4091_v30 = vmul.f32 %v7163_v27, %v8070_v10  ;;  %v5070_v27 = vcombine.high %v5050_v47, %v5066_v54 }
 0xe63   : > { %v4579_v56 = vcombine.low %v4555_v63, %v4571_v2  ;;  %v4580_v39 = vcombine.high %v4555_v63, %v4571_v2  ;;  %v4595_v62 = vcombine.low %v4562_v33, %v4578_v3  ;;  %v4596_v0 = vcombine.high %v4562_v33, %v4578_v3 }
 0xe64   : > { %6880 = vmatmul.mubr.msk.f32.vlgmr.msra.gmra.mrb[28].mxu1 %vm1483_vm3, %v4091_v30  ;;  %v5137_v2 = vcombine.low %v5118_v42, %v5134_v61  ;;  %v5138_v3 = vcombine.high %v5118_v42, %v5134_v61 }
 0xe65   : > { %v7165_v40 = vpop.eup %7164  ;;  %v4587_v38 = vrot.slane %v4579_v56, %v7470_v52  ;;  %v4594_v36 = vrot.slane %v4580_v39, %v7470_v52  ;;  %v4603_v43 = vrot.slane %v4595_v62, %v7470_v52  ;;  %v4610_v10 = vrot.slane %v4596_v0, %v7470_v52  ;;  %7004 = vmatpush3.bf16.xpose.msk.msra.mxu1 %vm7937_vm5, %v7002_v6 }
 0xe66   : > { %v4093_v23 = vmul.f32 %v7165_v40, %v8078_v50  ;;  %6893 = vmatprep.mubr.msk.f32.mxu1 %vm7215_vm1, %v7214_v21  ;;  %7009 = vmatprep.subr.bf16.mxu1 %v7226_v7  ;;  %v7010_v39 = vpack.c.bf16 %v5137_v2, %v5069_v34  ;;  %v7014_v62 = vpack.c.bf16 %v5138_v3, %v5070_v27 }
 0xe67   : > { %v4931_v53 = vcombine.low %v4587_v38, %v4594_v36  ;;  %v6548_v32 = vcombine.high %v4587_v38, %v4594_v36  ;;  %v4947_v49 = vcombine.low %v4603_v43, %v4610_v10  ;;  %v6549_v45 = vcombine.high %v4603_v43, %v4610_v10 }
 0xe68   : > { %6887 = vmatmul.mubr.msk.f32.vlgmr.msra.gmra.mrb[32].mxu0 %vm1483_vm3, %v4093_v23 }
 0xe69   : > { %v4938_v50 = vrot.slane %v4931_v53, %v7460_v44  ;;  %v4946_v25 = vrot.slane %v6548_v32, %v7460_v44  ;;  %v4954_v28 = vrot.slane %v4947_v49, %v7460_v44  ;;  %v4962_v22 = vrot.slane %v6549_v45, %v7460_v44  ;;  %7008 = vmatpush3.bf16.xpose.msk.msra.mxu0 %vm7937_vm5, %v7006_v48 }
 0xe6a   : > { %6900 = vmatprep.mubr.msk.f32.mxu0 %vm7215_vm1, %v7214_v21  ;;  %7013 = vmatprep.subr.bf16.mxu0 %v7226_v7 }
 0xe6b   : > { %v4963_v31 = vcombine.low %v4938_v50, %v4946_v25  ;;  %v4979_v55 = vcombine.low %v4954_v28, %v4962_v22  ;;  %v4964_v59 = vcombine.high %v4938_v50, %v4946_v25  ;;  %v4980_v41 = vcombine.high %v4954_v28, %v4962_v22 }
 0xe6d   : > { %v4971_v37 = vrot.slane %v4963_v31, %v7470_v52  ;;  %v4987_v1 = vrot.slane %v4979_v55, %v7470_v52  ;;  %v4978_v11 = vrot.slane %v4964_v59, %v7470_v52  ;;  %v4994_v56 = vrot.slane %v4980_v41, %v7470_v52 }
 0xe6f   : > { %v4995_v63 = vcombine.low %v4971_v37, %v4987_v1  ;;  %v4996_v33 = vcombine.high %v4971_v37, %v4987_v1  ;;  %v4997_v0 = vcombine.low %v4978_v11, %v4994_v56  ;;  %v4998_v12 = vcombine.high %v4978_v11, %v4994_v56 }
 0xe71   : > { %v4999_v30 = vmul.f32 0.35355338, %v4995_v63  ;;  %v5000_v6 = vmul.f32 0.35355338, %v4996_v33  ;;  %v5001_v57 = vmul.f32 0.35355338, %v4997_v0 }
 0xe72   : > { %v5002_v40 = vmul.f32 0.35355338, %v4998_v12 }
 0xe73   : > { %6894 = vmatmul.mubr.msk.f32.vlgmr.msra.gmra.mrb[30].mxu1 %vm693_vm2, %v4999_v30  ;;  %6901 = vmatmul.mubr.msk.f32.vlgmr.msra.gmra.mrb[34].mxu0 %vm693_vm2, %v5000_v6 }
 0xe74   : > { %7012 = vmatpush3.bf16.xpose.msk.msra.mxu1 %vm7937_vm5, %v7010_v39  ;;  %7016 = vmatpush3.bf16.xpose.msk.msra.mxu0 %vm7937_vm5, %v7014_v62 }
 0xe75   : > { %6907 = vmatprep.mubr.msk.f32.mxu1 %vm7215_vm1, %v7214_v21  ;;  %6914 = vmatprep.mubr.msk.f32.mxu0 %vm7215_vm1, %v7214_v21 }
 0xe76   : > { %7017 = vmatprep.subr.bf16.mxu1 %v7226_v7  ;;  %7020 = vmatprep.subr.bf16.mxu0 %v7226_v7 }
 0xe7b   : > { %6908 = vmatmul.mubr.msk.f32.vlgmr.msra.gmra.mrb[32].mxu1 %vm693_vm2, %v5001_v57  ;;  %6915 = vmatmul.mubr.msk.f32.vlgmr.msra.gmra.mrb[36].mxu0 %vm693_vm2, %v5002_v40 }
 0xe7c   : > { %6921 = vmatprep.mubr.msk.f32.mxu1 %vm7215_vm1, %v7214_v21  ;;  %6928 = vmatprep.mubr.msk.f32.mxu0 %vm7215_vm1, %v7214_v21 }
 0xf02   : > { %v4163_v8 = vpop.f32.mrb[28].mxu0 }
 0xf03   : > { %v6867_v38 = vpop.f32.mrb[29].mxu0 }
 0xf06   : > { %v4236_v36 = vpop.f32.mrb[30].mxu0 }
 0xf07   : > { %v6874_v43 = vpop.f32.mrb[31].mxu0 }
 0xf37   : > { %v4309_v10 = vpop.f32.mrb[28].mxu1 }
 0xf38   : > { %v4386_v29 = vcombine.low %v4163_v8, %v4309_v10  ;;  %v4387_v23 = vcombine.high %v4163_v8, %v4309_v10  ;;  %v6881_v48 = vpop.f32.mrb[29].mxu1 }
 0xf3a   : > { %v4394_v51 = vrot.slane %v4386_v29, %v7460_v44  ;;  %v4401_v58 = vrot.slane %v4387_v23, %v7460_v44 }
 0xf3b   : > { %v4382_v53 = vpop.f32.mrb[32].mxu0 }
 0xf3c   : > { %v4402_v32 = vcombine.low %v4236_v36, %v4382_v53  ;;  %v4403_v49 = vcombine.high %v4236_v36, %v4382_v53  ;;  %v6888_v45 = vpop.f32.mrb[33].mxu0 }
 0xf3e   : > { %v4410_v50 = vrot.slane %v4402_v32, %v7460_v44  ;;  %v4417_v25 = vrot.slane %v4403_v49, %v7460_v44 }
 0xf40   : > { %v4418_v28 = vcombine.low %v4394_v51, %v4410_v50  ;;  %v4419_v22 = vcombine.high %v4394_v51, %v4410_v50  ;;  %v4434_v47 = vcombine.low %v4401_v58, %v4417_v25  ;;  %v4435_v54 = vcombine.high %v4401_v58, %v4417_v25 }
 0xf42   : > { %v4426_v31 = vrot.slane %v4418_v28, %v7470_v52  ;;  %v4433_v55 = vrot.slane %v4419_v22, %v7470_v52  ;;  %v4442_v42 = vrot.slane %v4434_v47, %v7470_v52  ;;  %v4449_v61 = vrot.slane %v4435_v54, %v7470_v52 }
 0xf44   : > { %v4454_v59 = vcombine.low %v4426_v31, %v4433_v55  ;;  %v6546_v41 = vcombine.high %v4426_v31, %v4433_v55  ;;  %v4470_v37 = vcombine.low %v4442_v42, %v4449_v61  ;;  %v6547_v1 = vcombine.high %v4442_v42, %v4449_v61 }
 0xf46   : > { %v4461_v34 = vrot.slane %v4454_v59, %v7460_v44  ;;  %v4469_v27 = vrot.slane %v6546_v41, %v7460_v44  ;;  %v4477_v63 = vrot.slane %v4470_v37, %v7460_v44  ;;  %v4485_v33 = vrot.slane %v6547_v1, %v7460_v44  ;;  %v5350_v2 = vpop.f32.mrb[30].mxu1  ;;  %v5429_v3 = vpop.f32.mrb[34].mxu0 }
 0xf47   : > { %v6895_v30 = vpop.f32.mrb[31].mxu1  ;;  %v6902_v6 = vpop.f32.mrb[35].mxu0  ;;  %v5591_v11 = vsel %vm1483_vm3, %v5350_v2, -inf  ;;  %v5594_v56 = vsel %vm1483_vm3, %v5429_v3, -inf }
 0xf48   : > { %5592 = vmax.xlane.f32.xlu1 %v5591_v11  ;;  %5595 = vmax.xlane.f32.xlu0 %v5594_v56  ;;  %v4487_v39 = vcombine.high %v4461_v34, %v4469_v27  ;;  %v4503_v62 = vcombine.high %v4477_v63, %v4485_v33  ;;  %v4486_v0 = vcombine.low %v4461_v34, %v4469_v27 }
 0xf49   : > { %v4502_v12 = vcombine.low %v4477_v63, %v4485_v33 }
 0xf4a   : > { %v8265_v57 = vrot.slane %v4487_v39, %v7470_v52  ;;  %v8268_v40 = vrot.slane %v4503_v62, %v7470_v52  ;;  %v8271_v8 = vrot.slane %v4486_v0, %v7470_v52 }
 0xf4b   : > { %v8274_v38 = vrot.slane %v4502_v12, %v7470_v52 }
 0xf4c   : > { %v4520_v36 = vcombine.low %v8265_v57, %v8268_v40  ;;  %v4521_v43 = vcombine.high %v8265_v57, %v8268_v40 }
 0xf4d   : > { %v4518_v10 = vcombine.low %v8271_v8, %v8274_v38  ;;  %v4519_v29 = vcombine.high %v8271_v8, %v8274_v38 }
 0xf4e   : > { %v5508_v23 = vpop.f32.mrb[32].mxu1  ;;  %v5587_v48 = vpop.f32.mrb[36].mxu0 }
 0xf4f   : > { %v6909_v53 = vpop.f32.mrb[33].mxu1  ;;  %v6916_v32 = vpop.f32.mrb[37].mxu0  ;;  %v5597_v49 = vsel %vm1483_vm3, %v5508_v23, -inf  ;;  %v5600_v45 = vsel %vm1483_vm3, %v5587_v48, -inf }
 0xf50   : > { %5598 = vmax.xlane.f32.xlu0 %v5597_v49  ;;  %5601 = vmax.xlane.f32.xlu1 %v5600_v45 }
 0xf61   : > { %4773 = vrot.lane.b32.xlu1 %v7840_v24, %s7218_s7 }
 0xf65   : > { %4775 = vrot.lane.b32.xlu1 %v8098_v4, %s7218_s7 }
 0xf66   : > { %4771 = vrot.lane.b32.xlu0 %v7836_v13, %s7218_s7 }
 0xf69   : > { %4779 = vrot.lane.b32.xlu1 %v8100_v60, %s7218_s7 }
 0xf6a   : > { %4777 = vrot.lane.b32.xlu0 %v8112_v16, %s7218_s7 }
 0xf6d   : > { %4783 = vrot.lane.b32.xlu1 %v8118_v5, %s7218_s7 }
 0xf6e   : > { %4781 = vrot.lane.b32.xlu0 %v8102_v9, %s7218_s7 }
 0xf72   : > { %4785 = vrot.lane.b32.xlu0 %v8104_v26, %s7218_s7  ;;  %s6080_s7 = scalar_lea.vmem %s8498_s12, %s7412_s3 }
 0xfd5   : > { %v5593_v24 = vpop.xlane.xlu1 %5592  ;;  %v5596_v4 = vpop.xlane.xlu0 %5595 }
 0xfd6   : > { %v5603_v51 = vsub.f32 %v5350_v2, %v5593_v24  ;;  %v5604_v58 = vsub.f32 %v5429_v3, %v5596_v4 }
 0xfd8   : > { %v5607_v13 = vmul.f32 1.442695, %v5603_v51  ;;  %v5609_v50 = vmul.f32 1.442695, %v5604_v58 }
 0xfda   : > { %7166 = vpow2.f32 %v5607_v13 }
 0xfdb   : > { %7168 = vpow2.f32 %v5609_v50 }
 0xfdd   : > { %v5599_v60 = vpop.xlane.xlu0 %5598  ;;  %v5602_v25 = vpop.xlane.xlu1 %5601 }
 0xfde   : > { %v5605_v16 = vsub.f32 %v5508_v23, %v5599_v60  ;;  %v5606_v28 = vsub.f32 %v5587_v48, %v5602_v25 }
 0xfe0   : > { %v5611_v22 = vmul.f32 1.442695, %v5605_v16  ;;  %v5613_v5 = vmul.f32 1.442695, %v5606_v28 }
 0xfe1   : > { %v4772_v47 = vpop.permute.xlu0 %4771  ;;  %v4774_v54 = vpop.permute.xlu1 %4773 }
 0xfe2   : > { %7170 = vpow2.f32 %v5611_v22 }
 0xfe3   : > { %7172 = vpow2.f32 %v5613_v5 }
 0xfe4   : > { %v8302_v9 = vpop.eup %7166 }
 0xfe5   : > { %v8304_v26 = vpop.eup %7168  ;;  %v4778_v31 = vpop.permute.xlu0 %4777  ;;  %v5615_v42 = vsel %vm1483_vm3, %v8302_v9, 0.0 }
 0xfe6   : > { %v4776_v55 = vpop.permute.xlu1 %4775  ;;  %5616 = vadd.xlane.f32.xlu0 %v5615_v42  ;;  %v5618_v61 = vsel %vm1483_vm3, %v8304_v26, 0.0 }
 0xfe7   : > { %5619 = vadd.xlane.f32.xlu1 %v5618_v61 }
 0xfe9   : > { %v4782_v59 = vpop.permute.xlu0 %4781 }
 0xfea   : > { %v4780_v41 = vpop.permute.xlu1 %4779  ;;  %v4863_v37 = vcombine.low %v4774_v54, %v4782_v59  ;;  %v4864_v1 = vcombine.high %v4774_v54, %v4782_v59 }
 0xfeb   : > { %v4795_v63 = vcombine.low %v4772_v47, %v4780_v41  ;;  %v4796_v33 = vcombine.high %v4772_v47, %v4780_v41 }
 0xfec   : > { %v8310_v34 = vpop.eup %7170  ;;  %v4871_v62 = vrot.slane %v4863_v37, %v7460_v44  ;;  %v4878_v0 = vrot.slane %v4864_v1, %v7460_v44 }
 0xfed   : > { %v8312_v27 = vpop.eup %7172  ;;  %v4786_v2 = vpop.permute.xlu0 %4785  ;;  %v5621_v30 = vsel %vm1483_vm3, %v8310_v34, 0.0  ;;  %v4803_v49 = vrot.slane %v4795_v63, %v7460_v44  ;;  %v4810_v45 = vrot.slane %v4796_v33, %v7460_v44 }
 0xfee   : > { %v4784_v3 = vpop.permute.xlu1 %4783  ;;  %v4879_v6 = vcombine.low %v4778_v31, %v4786_v2  ;;  %v4880_v11 = vcombine.high %v4778_v31, %v4786_v2  ;;  %5622 = vadd.xlane.f32.xlu1 %v5621_v30  ;;  %v5624_v12 = vsel %vm1483_vm3, %v8312_v27, 0.0 }
 0xfef   : > { %v4811_v56 = vcombine.low %v4776_v55, %v4784_v3  ;;  %v4812_v39 = vcombine.high %v4776_v55, %v4784_v3  ;;  %5625 = vadd.xlane.f32.xlu0 %v5624_v12 }
 0xff0   : > { %v4887_v23 = vrot.slane %v4879_v6, %v7460_v44  ;;  %v4894_v48 = vrot.slane %v4880_v11, %v7460_v44 }
 0xff1   : > { %v4819_v53 = vrot.slane %v4811_v56, %v7460_v44  ;;  %v4826_v32 = vrot.slane %v4812_v39, %v7460_v44 }
 0xff2   : > { %v4895_v24 = vcombine.low %v4871_v62, %v4887_v23  ;;  %v4896_v4 = vcombine.high %v4871_v62, %v4887_v23  ;;  %v4911_v51 = vcombine.low %v4878_v0, %v4894_v48  ;;  %v4912_v58 = vcombine.high %v4878_v0, %v4894_v48 }
 0xff3   : > { %v4827_v13 = vcombine.low %v4803_v49, %v4819_v53  ;;  %v4828_v50 = vcombine.high %v4803_v49, %v4819_v53  ;;  %v4843_v60 = vcombine.low %v4810_v45, %v4826_v32  ;;  %v4844_v25 = vcombine.high %v4810_v45, %v4826_v32 }
 0xff4   : > { %v4903_v16 = vrot.slane %v4895_v24, %v7470_v52  ;;  %v4910_v28 = vrot.slane %v4896_v4, %v7470_v52  ;;  %v4919_v22 = vrot.slane %v4911_v51, %v7470_v52  ;;  %v4926_v5 = vrot.slane %v4912_v58, %v7470_v52 }
 0xff5   : > { %v4835_v47 = vrot.slane %v4827_v13, %v7470_v52  ;;  %v4842_v54 = vrot.slane %v4828_v50, %v7470_v52  ;;  %v4851_v31 = vrot.slane %v4843_v60, %v7470_v52  ;;  %v4858_v55 = vrot.slane %v4844_v25, %v7470_v52 }
 0xff6   : > { %v5207_v42 = vcombine.low %v4903_v16, %v4910_v28  ;;  %v6556_v61 = vcombine.high %v4903_v16, %v4910_v28  ;;  %v5223_v59 = vcombine.low %v4919_v22, %v4926_v5  ;;  %v6557_v41 = vcombine.high %v4919_v22, %v4926_v5 }
 0xff7   : > { %v5139_v37 = vcombine.low %v4835_v47, %v4842_v54  ;;  %v6554_v1 = vcombine.high %v4835_v47, %v4842_v54  ;;  %v5155_v63 = vcombine.low %v4851_v31, %v4858_v55  ;;  %v6555_v33 = vcombine.high %v4851_v31, %v4858_v55 }
 0xff8   : > { %v5214_v2 = vrot.slane %v5207_v42, %v7460_v44  ;;  %v5222_v3 = vrot.slane %v6556_v61, %v7460_v44  ;;  %v5230_v30 = vrot.slane %v5223_v59, %v7460_v44  ;;  %v5238_v6 = vrot.slane %v6557_v41, %v7460_v44 }
 0xff9   : > { %v5146_v11 = vrot.slane %v5139_v37, %v7460_v44  ;;  %v5154_v56 = vrot.slane %v6554_v1, %v7460_v44  ;;  %v5162_v39 = vrot.slane %v5155_v63, %v7460_v44  ;;  %v5170_v62 = vrot.slane %v6555_v33, %v7460_v44 }
 0xffa   : > { %v5239_v0 = vcombine.low %v5214_v2, %v5222_v3  ;;  %v5255_v12 = vcombine.low %v5230_v30, %v5238_v6  ;;  %v5240_v23 = vcombine.high %v5214_v2, %v5222_v3  ;;  %v5256_v48 = vcombine.high %v5230_v30, %v5238_v6 }
 0xffb   : > { %v5171_v53 = vcombine.low %v5146_v11, %v5154_v56  ;;  %v5187_v32 = vcombine.low %v5162_v39, %v5170_v62  ;;  %v5172_v49 = vcombine.high %v5146_v11, %v5154_v56  ;;  %v5188_v45 = vcombine.high %v5162_v39, %v5170_v62 }
 0xffc   : > { %v5247_v24 = vrot.slane %v5239_v0, %v7470_v52  ;;  %v5263_v4 = vrot.slane %v5255_v12, %v7470_v52  ;;  %v5254_v51 = vrot.slane %v5240_v23, %v7470_v52  ;;  %v5270_v58 = vrot.slane %v5256_v48, %v7470_v52 }
 0xffd   : > { %v5179_v13 = vrot.slane %v5171_v53, %v7470_v52  ;;  %v5195_v50 = vrot.slane %v5187_v32, %v7470_v52  ;;  %v5186_v60 = vrot.slane %v5172_v49, %v7470_v52  ;;  %v5202_v25 = vrot.slane %v5188_v45, %v7470_v52 }
 0xffe   : > { %v5271_v16 = vcombine.low %v5247_v24, %v5263_v4  ;;  %v5272_v28 = vcombine.high %v5247_v24, %v5263_v4  ;;  %v5273_v22 = vcombine.low %v5254_v51, %v5270_v58  ;;  %v5274_v5 = vcombine.high %v5254_v51, %v5270_v58 }
 0xfff   : > { %v5203_v47 = vcombine.low %v5179_v13, %v5195_v50  ;;  %v5204_v54 = vcombine.high %v5179_v13, %v5195_v50  ;;  %v5205_v31 = vcombine.low %v5186_v60, %v5202_v25  ;;  %v5206_v55 = vcombine.high %v5186_v60, %v5202_v25 }
0x1001   : > { %v7018_v42 = vpack.c.bf16 %v5271_v16, %v5203_v47  ;;  %v7021_v61 = vpack.c.bf16 %v5272_v28, %v5204_v54  ;;  %v7024_v59 = vpack.c.bf16 %v5273_v22, %v5205_v31  ;;  %v7027_v41 = vpack.c.bf16 %v5274_v5, %v5206_v55 }
0x1003   : > { %7019 = vmatpush3.bf16.msra.mxu1 %v7018_v42  ;;  %7022 = vmatpush3.bf16.msra.mxu0 %v7021_v61 }
0x1004   : > { %7023 = vmatprep.subr.bf16.mxu1 %v7226_v7  ;;  %7026 = vmatprep.subr.bf16.mxu0 %v7226_v7 }
0x1073   : > { %v5617_v37 = vpop.xlane.xlu0 %5616 }
0x1074   : > { %7174 = vrcp.f32 %v5617_v37  ;;  %v5620_v1 = vpop.xlane.xlu1 %5619 }
0x1075   : > { %7176 = vrcp.f32 %v5620_v1 }
0x107b   : > { %v5623_v63 = vpop.xlane.xlu1 %5622 }
0x107c   : > { %7178 = vrcp.f32 %v5623_v63  ;;  %v5626_v33 = vpop.xlane.xlu0 %5625 }
0x107d   : > { %7180 = vrcp.f32 %v5626_v33 }
0x107e   : > { %v7175_v2 = vpop.eup %7174 }
0x107f   : > { %v7177_v3 = vpop.eup %7176  ;;  %v5628_v30 = vmul.f32 %v7175_v2, %v8302_v9 }
0x1080   : > { %v5630_v6 = vmul.f32 %v7177_v3, %v8304_v26 }
0x1081   : > { %6922 = vmatmul.mubr.msk.f32.vlgmr.msra.gmra.mrb[34].mxu1 %vm1483_vm3, %v5628_v30 }
0x1082   : > { %6929 = vmatmul.mubr.msk.f32.vlgmr.msra.gmra.mrb[38].mxu0 %vm1483_vm3, %v5630_v6  ;;  %7025 = vmatpush3.bf16.msra.mxu1 %v7024_v59 }
0x1083   : > { %7028 = vmatpush3.bf16.msra.mxu0 %v7027_v41  ;;  %6935 = vmatprep.mubr.msk.f32.mxu1 %vm7215_vm1, %v7214_v21  ;;  %v7106_v41 = vld [vmem:[%s6080_s7] sm:$0xff]  }
0x1084   : > { %6942 = vmatprep.mubr.msk.f32.mxu0 %vm7215_vm1, %v7214_v21  ;;  %6945 = vmatprep.subr.bf16.mxu1 %v7214_v21 }
0x1085   : > { %6953 = vmatprep.subr.bf16.mxu0 %v7214_v21 }
0x1086   : > { %v7179_v7 = vpop.eup %7178 }
0x1087   : > { %v5632_v9 = vmul.f32 %v7179_v7, %v8310_v34  ;;  %v7181_v26 = vpop.eup %7180  ;;  %v7107_v7 = vld [vmem:[%s6080_s7 + $0x8] sm:$0xff]   ;;  %s6153_s7 = scalar_lea.vmem %s8507_s21, %s7212_s1 }
0x1088   : > { %v5634_v11 = vmul.f32 %v7181_v26, %v8312_v27 }
0x1089   : > { %6936 = vmatmul.mubr.msk.f32.vlgmr.msra.gmra.mrb[36].mxu1 %vm1483_vm3, %v5632_v9 }
0x108a   : > { %6949 = vmatprep.mubr.msk.bf16.mxu1 %vm7215_vm1, %v7214_v21  ;;  %6943 = vmatmul.mubr.msk.f32.vlgmr.msra.gmra.mrb[40].mxu0 %vm1483_vm3, %v5634_v11 }
0x108b   : > { %6957 = vmatprep.mubr.msk.bf16.mxu0 %vm7215_vm1, %v7214_v21  ;;  %6946 = vmatpush3.bf16.msra.mxu1 %v7106_v41  ;;  %v7111_v41 = vld [vmem:[%s8435_s4 + $0x8] sm:$0xff]  }
0x108c   : > { %6947 = vmatprep.subr.bf16.mxu1 %v7214_v21 }
0x108f   : > { %6948 = vmatpush3.bf16.msra.mxu1 %v7107_v7  ;;  %v6581_v7 = vld [vmem:[%s6151_s5] ss:$0 sm:$0xff] }
0x1090   : > { %6961 = vmatprep.subr.bf16.mxu1 %v7214_v21 }
0x1154   : > { %v5704_v56 = vpop.f32.mrb[34].mxu1 }
0x1155   : > { %v5777_v39 = vpop.f32.mrb[38].mxu0  ;;  %v6923_v62 = vpop.f32.mrb[35].mxu1 }
0x1156   : > { %v6930_v0 = vpop.f32.mrb[39].mxu0 }
0x115c   : > { %v5850_v12 = vpop.f32.mrb[36].mxu1 }
0x115d   : > { %v5927_v23 = vcombine.low %v5704_v56, %v5850_v12  ;;  %v5928_v34 = vcombine.high %v5704_v56, %v5850_v12  ;;  %v6937_v48 = vpop.f32.mrb[37].mxu1  ;;  %v5923_v53 = vpop.f32.mrb[40].mxu0 }
0x115e   : > { %v5943_v49 = vcombine.low %v5777_v39, %v5923_v53  ;;  %v5944_v45 = vcombine.high %v5777_v39, %v5923_v53  ;;  %v6944_v24 = vpop.f32.mrb[41].mxu0 }
0x115f   : > { %v5935_v27 = vrot.slane %v5927_v23, %v7460_v44  ;;  %v5942_v32 = vrot.slane %v5928_v34, %v7460_v44 }
0x1160   : > { %v5951_v4 = vrot.slane %v5943_v49, %v7460_v44  ;;  %v5958_v51 = vrot.slane %v5944_v45, %v7460_v44 }
0x1162   : > { %v5959_v58 = vcombine.low %v5935_v27, %v5951_v4  ;;  %v5960_v13 = vcombine.high %v5935_v27, %v5951_v4  ;;  %v5975_v50 = vcombine.low %v5942_v32, %v5958_v51  ;;  %v5976_v60 = vcombine.high %v5942_v32, %v5958_v51 }
0x1164   : > { %v5967_v25 = vrot.slane %v5959_v58, %v7470_v52  ;;  %v5974_v16 = vrot.slane %v5960_v13, %v7470_v52  ;;  %v5983_v28 = vrot.slane %v5975_v50, %v7470_v52  ;;  %v5990_v22 = vrot.slane %v5976_v60, %v7470_v52 }
0x1166   : > { %v5995_v5 = vcombine.low %v5967_v25, %v5974_v16  ;;  %v6574_v47 = vcombine.high %v5967_v25, %v5974_v16  ;;  %v6011_v54 = vcombine.low %v5983_v28, %v5990_v22  ;;  %v6575_v31 = vcombine.high %v5983_v28, %v5990_v22 }
0x1168   : > { %v6002_v55 = vrot.slane %v5995_v5, %v7460_v44  ;;  %v6010_v42 = vrot.slane %v6574_v47, %v7460_v44  ;;  %v6018_v61 = vrot.slane %v6011_v54, %v7460_v44  ;;  %v6026_v59 = vrot.slane %v6575_v31, %v7460_v44 }
0x116a   : > { %v6028_v37 = vcombine.high %v6002_v55, %v6010_v42  ;;  %v6044_v1 = vcombine.high %v6018_v61, %v6026_v59  ;;  %v6027_v63 = vcombine.low %v6002_v55, %v6010_v42  ;;  %v6043_v33 = vcombine.low %v6018_v61, %v6026_v59  ;;  %v7108_v42 = vld [vmem:[%s6199_s10] sm:$0xff]   ;;  %v7109_v61 = vld [vmem:[%s6199_s10 + $0x8] sm:$0xff]   ;;  %s6282_s10 = scalar_lea.vmem %s8503_s17, %s7212_s1 }
0x116b   : > { %6954 = vmatpush3.bf16.msra.mxu0 %v7108_v42  ;;  %v7110_v59 = vld [vmem:[%s8435_s4] sm:$0xff]  }
0x116c   : > { %v6042_v2 = vrot.slane %v6028_v37, %v7470_v52  ;;  %v6058_v3 = vrot.slane %v6044_v1, %v7470_v52  ;;  %v6035_v30 = vrot.slane %v6027_v63, %v7470_v52  ;;  %v6051_v6 = vrot.slane %v6043_v33, %v7470_v52  ;;  %6955 = vmatprep.subr.bf16.mxu0 %v7214_v21 }
0x116e   : > { %v6061_v9 = vcombine.low %v6042_v2, %v6058_v3  ;;  %v6060_v26 = vcombine.high %v6035_v30, %v6051_v6  ;;  %v6059_v44 = vcombine.low %v6035_v30, %v6051_v6  ;;  %v6062_v11 = vcombine.high %v6042_v2, %v6058_v3 }
0x116f   : > { %6956 = vmatpush3.bf16.msra.mxu0 %v7109_v61 }
0x1170   : > { %v7088_v56 = vpack.i.bf16 %v6061_v9, %v4520_v36  ;;  %v7083_v39 = vpack.i.bf16 %v6060_v26, %v4519_v29  ;;  %v7093_v52 = vpack.i.bf16 %v6062_v11, %v4521_v43  ;;  %v6582_v11 = vld [vmem:[%s6153_s7] ss:$0 sm:$0xff] }
0x1172   : > { %7089 = vrot.lane.b32.xlu1 %v7088_v56, %s7223_s0  ;;  %7084 = vrot.lane.b32.xlu0 %v7083_v39, %s7224_s9  ;;  %s6085_s9 = scalar_lea.vmem %s8499_s13, %s7212_s1 }
0x1173   : > { %v6577_v8 = vld [vmem:[%s6085_s9] ss:$0 sm:$0xff]  ;;  %s6204_s9 = scalar_lea.vmem %s8501_s15, %s7212_s1  ;;  %s172_s1 = sadd.s32 1, %s7212_s1  }
0x1174   : > { %p169_p0 = scmp.ge.s32.totalorder %s172_s1, 2  }
0x1176   : > { %7094 = vrot.lane.b32.xlu1 %v7093_v52, %s7225_s30 }
0x11e4   : > { %v7090_v62 = vpop.permute.xlu1 %7089  ;;  %v7085_v0 = vpop.permute.xlu0 %7084 }
0x11e5   : > { %v7087_v12 = vunpack.i.h.bf16 %v7085_v0  ;;  %v7086_v23 = vunpack.i.l.bf16 %v7085_v0  ;;  %v7092_v36 = vunpack.i.h.bf16 %v7090_v62  ;;  %v7091_v34 = vunpack.i.l.bf16 %v7090_v62  ;;  %v7112_v0 = vld [vmem:[%s8435_s4 + $0x10] sm:$0xff]  }
0x11e7   : > { %v4534_v29 = vsel %vm693_vm2, %v4518_v10, %v7086_v23  ;;  %v6075_v57 = vsel %vm693_vm2, %v6059_v44, %v7087_v12  ;;  %v7113_v12 = vld [vmem:[%s8435_s4 + $0x18] sm:$0xff]   ;;  %v6584_v23 = vld [vmem:[%s6204_s9] ss:$0 sm:$0xff] }
0x11e8   : > { %v7095_v40 = vpop.permute.xlu1 %7094  ;;  %v4535_v53 = vsel %vm1483_vm3, %v4534_v29, %v7091_v34  ;;  %v6076_v27 = vsel %vm1483_vm3, %v6075_v57, %v7092_v36 }
0x11e9   : > { %v7097_v43 = vunpack.i.h.bf16 %v7095_v40  ;;  %v7096_v48 = vunpack.i.l.bf16 %v7095_v40 }
0x11eb   : > { %v4536_v32 = vsel %vm1485_vm4, %v4535_v53, %v7096_v48  ;;  %v6077_v49 = vsel %vm1485_vm4, %v6076_v27, %v7097_v43 }
0x11ec   : > { %v6078_v45 = vpack.c.bf16 %v6077_v49, %v4536_v32 }
0x11ee   : > { %6950 = vmatmul.mubr.msk.bf16.vlgmr.msra.gmra.mrb[40].mxu1 %vm109_vm0, %v6078_v45 }
0x11ef   : > { %6969 = vmatprep.mubr.msk.bf16.mxu1 %vm7215_vm1, %v7214_v21  ;;  %6962 = vmatpush3.bf16.msra.mxu1 %v7110_v59 }
0x11f0   : > { %6963 = vmatprep.subr.bf16.mxu1 %v7214_v21 }
0x11f3   : > { %6964 = vmatpush3.bf16.msra.mxu1 %v7111_v41  ;;  %v6596_v41 = vld [vmem:[%s6361_s8] ss:$0 sm:$0xff] }
0x11f4   : > { %6965 = vmatprep.subr.bf16.mxu1 %v7214_v21 }
0x11f7   : > { %6966 = vmatpush3.bf16.msra.mxu1 %v7112_v0 }
0x11f8   : > { %6967 = vmatprep.subr.bf16.mxu1 %v7214_v21  ;;  %v6590_v21 = vld [vmem:[%s6282_s10] ss:$0 sm:$0xff] }
0x11fb   : > { %6968 = vmatpush3.bf16.msra.mxu1 %v7113_v12 }
0x12c1   : > { %v6142_v38 = vpop.f32.mrb[40].mxu1 }
0x12c2   : > { %v6143_v10 = vadd.f32 %v6577_v8, %v6142_v38  ;;  %v6951_v24 = vpop.f32.mrb[41].mxu1 }
0x12c3   : > { %v6145_v4 = vpop.f32.mrb[42].mxu1 }
0x12c4   : > { %v6149_v51 = vadd.f32 %v6143_v10, %v7864_v46  ;;  %v6146_v58 = vadd.f32 %v6577_v8, %v6145_v4  ;;  %v6952_v13 = vpop.f32.mrb[43].mxu1 }
0x12c6   : > { %v6150_v50 = vadd.f32 %v6146_v58, %v7866_v35  ;;  %v6155_v60 = vsel %vm109_vm0, %v6149_v51, 0.0 }
0x12c7   : > { %6156 = vadd.xlane.f32.xlu0 %v6155_v60 }
0x12c8   : > { %v6158_v25 = vsel %vm109_vm0, %v6150_v50, 0.0 }
0x12c9   : > { %6159 = vadd.xlane.f32.xlu1 %v6158_v25 }
0x1354   : > { %v6157_v16 = vpop.xlane.xlu0 %6156 }
0x1355   : > { %v6161_v28 = vmul.f32 0.03125, %v6157_v16 }
0x1356   : > { %v6160_v22 = vpop.xlane.xlu1 %6159 }
0x1357   : > { %v6163_v5 = vsub.f32 %v6149_v51, %v6161_v28  ;;  %v6162_v47 = vmul.f32 0.03125, %v6160_v22 }
0x1359   : > { %v6164_v54 = vsub.f32 %v6150_v50, %v6162_v47  ;;  %v6165_v31 = vmul.f32 %v6163_v5, %v6163_v5 }
0x135b   : > { %v6167_v46 = vsel %vm109_vm0, %v6165_v31, 0.0  ;;  %v6166_v55 = vmul.f32 %v6164_v54, %v6164_v54 }
0x135c   : > { %6168 = vadd.xlane.f32.xlu0 %v6167_v46 }
0x135d   : > { %v6170_v35 = vsel %vm109_vm0, %v6166_v55, 0.0 }
0x1360   : > { %6171 = vadd.xlane.f32.xlu0 %v6170_v35 }
0x13e9   : > { %v6169_v37 = vpop.xlane.xlu0 %6168 }
0x13ea   : > { %v6173_v1 = vmul.f32 0.03125, %v6169_v37 }
0x13ec   : > { %v6175_v63 = vadd.f32 1e-05, %v6173_v1 }
0x13ed   : > { %v6172_v33 = vpop.xlane.xlu0 %6171 }
0x13ee   : > { %7182 = vrsqrt.f32 %v6175_v63  ;;  %v6174_v2 = vmul.f32 0.03125, %v6172_v33  ;;  %v6597_v63 = vld [vmem:[%s6363_s29] ss:$0 sm:$0xff] }
0x13f0   : > { %v6176_v3 = vadd.f32 1e-05, %v6174_v2 }
0x13f2   : > { %7184 = vrsqrt.f32 %v6176_v3 }
0x13f8   : > { %v7183_v30 = vpop.eup %7182 }
0x13f9   : > { %v6179_v6 = vmul.f32 %v7183_v30, %v6163_v5 }
0x13fb   : > { %v6187_v44 = vmul.f32 %v6581_v7, %v6179_v6 }
0x13fc   : > { %v7185_v9 = vpop.eup %7184 }
0x13fd   : > { %v6180_v26 = vmul.f32 %v7185_v9, %v6164_v54  ;;  %v6195_v39 = vadd.f32 %v6582_v11, %v6187_v44 }
0x13ff   : > { %v6188_v56 = vmul.f32 %v6581_v7, %v6180_v26 }
0x1401   : > { %v6196_v52 = vadd.f32 %v6582_v11, %v6188_v56 }
0x1403   : > { %v6197_v62 = vpack.c.bf16 %v6196_v52, %v6195_v39 }
0x1405   : > { %6958 = vmatmul.mubr.msk.bf16.vlgmr.msra.gmra.mrb[44].mxu0 %vm109_vm0, %v6197_v62 }
0x14d8   : > { %v6261_v36 = vpop.f32.mrb[44].mxu0 }
0x14d9   : > { %v6262_v34 = vadd.f32 %v6584_v23, %v6261_v36  ;;  %v6959_v29 = vpop.f32.mrb[45].mxu0 }
0x14da   : > { %v6264_v57 = vpop.f32.mrb[46].mxu0 }
0x14db   : > { %v6265_v40 = vadd.f32 %v6584_v23, %v6264_v57  ;;  %v6960_v43 = vpop.f32.mrb[47].mxu0  ;;  %v6268_v48 = vmax.f32 %v6262_v34, 0.0 }
0x14dd   : > { %v6269_v53 = vmax.f32 %v6265_v40, 0.0 }
0x14df   : > { %v6270_v27 = vpack.c.bf16 %v6269_v53, %v6268_v48 }
0x14e1   : > { %6970 = vmatmul.mubr.msk.bf16.vlgmr.msra.gmra.mrb[44].mxu1 %vm6314_vm6, %v6270_v27 }
0x15b4   : > { %v6352_v32 = vpop.f32.mrb[44].mxu1 }
0x15b5   : > { %v6353_v49 = vadd.f32 %v6590_v21, %v6352_v32  ;;  %v6971_v45 = vpop.f32.mrb[45].mxu1 }
0x15b6   : > { %v6355_v8 = vpop.f32.mrb[46].mxu1 }
0x15b7   : > { %v6359_v38 = vadd.f32 %v6353_v49, %v6195_v39  ;;  %v6356_v10 = vadd.f32 %v6590_v21, %v6355_v8  ;;  %v6972_v24 = vpop.f32.mrb[47].mxu1 }
0x15b9   : > { %v6360_v4 = vadd.f32 %v6356_v10, %v6196_v52  ;;  %v6365_v51 = vsel %vm109_vm0, %v6359_v38, 0.0 }
0x15ba   : > { %6366 = vadd.xlane.f32.xlu1 %v6365_v51 }
0x15bb   : > { %v6368_v58 = vsel %vm109_vm0, %v6360_v4, 0.0 }
0x15bc   : > { %6369 = vadd.xlane.f32.xlu0 %v6368_v58 }
0x1647   : > { %v6367_v13 = vpop.xlane.xlu1 %6366 }
0x1648   : > { %v6371_v50 = vmul.f32 0.03125, %v6367_v13 }
0x1649   : > { %v6370_v60 = vpop.xlane.xlu0 %6369 }
0x164a   : > { %v6373_v25 = vsub.f32 %v6359_v38, %v6371_v50  ;;  %v6372_v16 = vmul.f32 0.03125, %v6370_v60 }
0x164c   : > { %v6374_v28 = vsub.f32 %v6360_v4, %v6372_v16  ;;  %v6375_v22 = vmul.f32 %v6373_v25, %v6373_v25 }
0x164e   : > { %v6377_v5 = vsel %vm109_vm0, %v6375_v22, 0.0  ;;  %v6376_v47 = vmul.f32 %v6374_v28, %v6374_v28 }
0x164f   : > { %6378 = vadd.xlane.f32.xlu1 %v6377_v5 }
0x1650   : > { %v6380_v54 = vsel %vm109_vm0, %v6376_v47, 0.0 }
0x1651   : > { %6381 = vadd.xlane.f32.xlu0 %v6380_v54 }
0x16dc   : > { %v6379_v31 = vpop.xlane.xlu1 %6378 }
0x16dd   : > { %v6383_v46 = vmul.f32 0.03125, %v6379_v31 }
0x16de   : > { %v6382_v55 = vpop.xlane.xlu0 %6381 }
0x16df   : > { %v6385_v35 = vadd.f32 1e-05, %v6383_v46  ;;  %v6384_v42 = vmul.f32 0.03125, %v6382_v55 }
0x16e1   : > { %7186 = vrsqrt.f32 %v6385_v35  ;;  %v6386_v61 = vadd.f32 1e-05, %v6384_v42 }
0x16e3   : > { %7188 = vrsqrt.f32 %v6386_v61 }
0x16eb   : > { %v7187_v59 = vpop.eup %7186 }
0x16ec   : > { %v6389_v37 = vmul.f32 %v7187_v59, %v6373_v25 }
0x16ed   : > { %v7189_v1 = vpop.eup %7188 }
0x16ee   : > { %v6397_v33 = vmul.f32 %v6596_v41, %v6389_v37  ;;  %v6390_v2 = vmul.f32 %v7189_v1, %v6374_v28  ;;  %171 = sbr.rel (!%p169_p0) target bundleno = 236 (0xec), region = 143 }
0x16f0   : > { %v6405_v3 = vadd.f32 %v6597_v63, %v6397_v33   ;;  %v6398_v30 = vmul.f32 %v6596_v41, %v6390_v2 }
0x16f2   : > { %v6406_v6 = vadd.f32 %v6597_v63, %v6398_v30   ;;  %v8536_v0 = vmov %v6405_v3  ;;  %6407 = vst.msk [vmem:[%s8510_s24] sm:$0xff] (%p169_p0), %vm109_vm0, %v6405_v3 }
0x16f4   : > { %v8535_v1 = vmov %v6406_v6  ;;  %6408 = vst.msk [vmem:[%s8510_s24 + $0x8] sm:$0xff] (%p169_p0), %vm109_vm0, %v6406_v6 }

</bundles_post_ra>
